<compile_context>
chip_gen: v7x
topology: tpu7x:2x2x1
jax: 0.10.0
libtpu: 0.0.40
codegen_flags: <defaults>
</compile_context>

<pallas_src>
import functools

import jax
import jax.numpy as jnp
from jax import lax
from jax.experimental import pallas as pl
from jax.experimental.pallas import tpu as pltpu


def _round_up(x, m):
    return ((x + m - 1) // m) * m


# -----------------------------------------------------------------------------
# Parameter folding / packing (done once, outside the hot path)
# -----------------------------------------------------------------------------
def fold_bn(p, eps=1e-5):
    """Fold conv bias + eval-mode BN into per-channel scale & shift (1-D)."""
    scale = p["gamma"] / jnp.sqrt(p["rvar"] + eps)
    shift = p["beta"] - p["rmean"] * scale + p["bias"] * scale
    return scale, shift


def pack_postnet_params(params):
    """Pack layers into lane-padded, VMEM-resident tensors.

    Layer 0 / last layer keep their own (narrow) channel padding so the input
    DMA, layer-0 contraction depth and the output writeback stay minimal.
    """
    n_layers = len(params)
    assert n_layers >= 3, "Postnet needs >= 3 convolutions"
    K = params[0]["w"].shape[0]
    c_in = params[0]["w"].shape[1]
    c_mid = params[0]["w"].shape[2]
    c_out = params[-1]["w"].shape[2]
    c_in_pad = _round_up(c_in, 128)
    C = _round_up(c_mid, 128)
    c_out_pad = _round_up(c_out, 128)

    w0 = jnp.zeros((K, c_in_pad, C), jnp.bfloat16)
    w0 = w0.at[:, :c_in, :c_mid].set(params[0]["w"].astype(jnp.bfloat16))

    w_mid = jnp.zeros((n_layers - 2, K, C, C), jnp.bfloat16)
    for i in range(1, n_layers - 1):
        w_mid = w_mid.at[i - 1, :, :c_mid, :c_mid].set(
            params[i]["w"].astype(jnp.bfloat16))

    w_last = jnp.zeros((K, C, c_out_pad), jnp.bfloat16)
    w_last = w_last.at[:, :c_mid, :c_out].set(params[-1]["w"].astype(jnp.bfloat16))

    scale = jnp.zeros((n_layers - 1, 1, C), jnp.float32)
    shift = jnp.zeros((n_layers - 1, 1, C), jnp.float32)
    for i in range(n_layers - 1):
        sc, sh = fold_bn(params[i])
        scale = scale.at[i, 0, :c_mid].set(sc)
        shift = shift.at[i, 0, :c_mid].set(sh)
    sc, sh = fold_bn(params[-1])
    scale_last = jnp.zeros((1, c_out_pad), jnp.float32).at[0, :c_out].set(sc)
    shift_last = jnp.zeros((1, c_out_pad), jnp.float32).at[0, :c_out].set(sh)

    return dict(w0=w0, w_mid=w_mid, w_last=w_last,
                scale=scale, shift=shift,
                scale_last=scale_last, shift_last=shift_last,
                c_in=c_in, c_out=c_out,
                c_in_pad=c_in_pad, c_out_pad=c_out_pad, c_mid=C,
                n_layers=n_layers, ksize=K)


# -----------------------------------------------------------------------------
# Fused kernel body: one (batch, T-tile) grid step through all Postnet layers.
# -----------------------------------------------------------------------------
def _postnet_fused_kernel(x_ref, w0_ref, wmid_ref, wlast_ref,
                          scale_ref, shift_ref, scale_last_ref, shift_last_ref,
                          o_ref, buf_a, buf_b, *,
                          n_layers, ksize, t_tile, halo, seq_len):
    """
    x_ref          : (1, 1, w_len, c_in_pad) bf16  halo'd input window
                                                   (auto-pipelined / double-buffered)
    w0_ref         : (K, c_in_pad, C)        bf16  layer-0 conv weight
    wmid_ref       : (n_layers-2, K, C, C)   bf16  middle conv weights
    wlast_ref      : (K, C, c_out_pad)       bf16  last conv weight
    scale/shift    : (n_layers-1, 1, C)      f32   folded conv-bias+BN, layers 0..n-2
    scale/shift_last: (1, c_out_pad)         f32   folded conv-bias+BN, last layer
    o_ref          : (1, t_tile, c_out_pad)  f32   output block (lane-dense)
    buf_a / buf_b  : (w_len, C)              bf16  ping-pong activation scratch
    """
    t = pl.program_id(1)
    pad = (ksize - 1) // 2
    w_len = t_tile + 2 * halo
    s = t * t_tile                       # tile start in (un-padded) T coordinates

    # Hoisted once per tile: 0/1 validity mask of every window row (global
    # position in [0, seq_len)).  Reproduces per-layer 'same' zero padding at
    # tile/sequence edges with one iota + compares total (then 1 vmul/layer),
    # instead of 3-4 VALU ops per layer.
    rows = lax.broadcasted_iota(jnp.int32, (w_len, 1), 0)
    gpos = rows + (s - halo)
    win_mask = ((gpos >= 0) & (gpos < seq_len)).astype(jnp.float32)

    def conv(src_rows, w_tap, l_out):
        # Conv1d as `ksize` shifted MXU matmuls, bf16 inputs, f32 accumulation.
        acc = jnp.dot(src_rows(0, l_out), w_tap(0),
                      preferred_element_type=jnp.float32)
        for k in range(1, ksize):
            acc = acc + jnp.dot(src_rows(k, k + l_out), w_tap(k),
                                preferred_element_type=jnp.float32)
        return acc

    bufs = (buf_a, buf_b)
    l_in = w_len
    for layer in range(n_layers):
        l_out = l_in - 2 * pad
        off = pad * (layer + 1)          # window-row offset of this layer's output

        if layer == 0:
            src_rows = lambda a, b: x_ref[0, 0, a:b, :]
            w_tap = lambda k: w0_ref[k]
        else:
            src = bufs[(layer - 1) % 2]
            src_rows = lambda a, b, _s=src: _s[a:b, :]
            if layer < n_layers - 1:
                w_tap = lambda k, _l=layer: wmid_ref[_l - 1, k]
            else:
                w_tap = lambda k: wlast_ref[k]

        acc = conv(src_rows, w_tap, l_out)

        if layer < n_layers - 1:
            y = acc * scale_ref[layer] + shift_ref[layer]      # folded bias+BN (f32)
            y = jnp.tanh(y)
            y = y * win_mask[off:off + l_out]                  # zero out-of-sequence rows
            dst = bufs[layer % 2]
            # Intentional inference-precision tradeoff: bf16 inter-layer activations.
            dst[0:l_out, :] = y.astype(dst.dtype)
        else:
            # Final (linear) layer: l_out == t_tile exactly.
            y = acc * scale_last_ref[...] + shift_last_ref[...]
            o_ref[0, :, :] = y.astype(o_ref.dtype)

        l_in = l_out


# -----------------------------------------------------------------------------
# VMEM sizing helpers
# -----------------------------------------------------------------------------
def _vmem_capacity_bytes():
    try:
        return int(pltpu.get_tpu_info().vmem_capacity_bytes)
    except Exception:
        return 64 * 1024 * 1024          # conservative (v7x-sized) default


def _vmem_need_bytes(packed, t_tile, halo, single_buffer_weights=False):
    w_len = t_tile + 2 * halo
    C, cin, cout = packed["c_mid"], packed["c_in_pad"], packed["c_out_pad"]
    w_bytes = 2 * (packed["w0"].size + packed["w_mid"].size + packed["w_last"].size)
    s_bytes = 4 * (packed["scale"].size + packed["shift"].size
                   + packed["scale_last"].size + packed["shift_last"].size)
    buf_factor = 1 if single_buffer_weights else 2
    return (buf_factor * (w_bytes + s_bytes)   # grid-invariant params
            + 2 * w_len * cin * 2              # double-buffered input window (bf16)
            + 2 * t_tile * cout * 4            # double-buffered output block (f32)
            + 2 * w_len * C * 2)               # ping-pong activation scratch (bf16)


def _vmem_limit_bytes(packed, t_tile, halo, single_buffer_weights, cap):
    need = _vmem_need_bytes(packed, t_tile, halo, single_buffer_weights)
    return int(min(max(32 * 1024 * 1024, need + (6 << 20)), cap - (4 << 20)))


# -----------------------------------------------------------------------------
# Forward wrapper
# -----------------------------------------------------------------------------
def postnet_forward(x_bct, packed, *, t_tile=None):
    """x_bct: (B, n_mel, T) PyTorch NCL layout -> (B, n_mel, T)."""
    B, c_in, T = x_bct.shape
    assert c_in == packed["c_in"]
    n_layers, K = packed["n_layers"], packed["ksize"]
    C, c_in_pad, c_out_pad = packed["c_mid"], packed["c_in_pad"], packed["c_out_pad"]
    pad = (K - 1) // 2
    halo = n_layers * pad                # fused receptive-field halo (=10 for 5x k5)

    # ---- T tiling ------------------------------------------------------------
    vmem_cap = _vmem_capacity_bytes()
    if t_tile is None:
        t_tile = min(1024, _round_up(T, 8))
        if B == 1 and T > 8:
            # Keep >= 2 grid points so both v7x TensorCores get work.
            t_tile = min(t_tile, _round_up(pl.cdiv(T, 2), 8))
    t_tile = max(8, _round_up(t_tile, 8))
    # Shrink the tile if the (worst-case, double-buffered-weight) working set
    # would overflow a safe fraction of physical VMEM.
    while t_tile > 64 and _vmem_need_bytes(packed, t_tile, halo) > int(0.7 * vmem_cap):
        t_tile = max(64, _round_up(t_tile // 2, 8))
    t_pad = _round_up(T, t_tile)
    n_t = t_pad // t_tile
    w_len = t_tile + 2 * halo

    # ---- one-time input layout pass: NCL -> halo'd channels-last windows -----
    x = jnp.transpose(x_bct, (0, 2, 1)).astype(jnp.bfloat16)            # (B, T, c_in)
    x = jnp.pad(x, ((0, 0), (halo, halo + t_pad - T), (0, c_in_pad - c_in)))
    win_idx = jnp.arange(n_t)[:, None] * t_tile + jnp.arange(w_len)[None, :]
    x_win = x[:, win_idx, :]             # (B, n_t, w_len, c_in_pad), ~2% duplication

    kernel = functools.partial(_postnet_fused_kernel, n_layers=n_layers, ksize=K,
                               t_tile=t_tile, halo=halo, seq_len=T)

    def build(single_buffer_weights):
        wpm = pl.Buffered(1) if single_buffer_weights else None

        def const_spec(shape):
            nm = len(shape)
            return pl.BlockSpec(shape, lambda *a, _n=nm: (0,) * _n, pipeline_mode=wpm)

        grid_spec = pltpu.PrefetchScalarGridSpec(
            num_scalar_prefetch=0,
            grid=(B, n_t),
            in_specs=[
                pl.BlockSpec((1, 1, w_len, c_in_pad), lambda b, t: (b, t, 0, 0)),
                const_spec((K, c_in_pad, C)),
                const_spec((n_layers - 2, K, C, C)),
                const_spec((K, C, c_out_pad)),
                const_spec((n_layers - 1, 1, C)),
                const_spec((n_layers - 1, 1, C)),
                const_spec((1, c_out_pad)),
                const_spec((1, c_out_pad)),
            ],
            out_specs=pl.BlockSpec((1, t_tile, c_out_pad), lambda b, t: (b, t, 0)),
            scratch_shapes=[
                pltpu.VMEM((w_len, C), jnp.bfloat16),    # ping
                pltpu.VMEM((w_len, C), jnp.bfloat16),    # pong
            ])
        return pl.pallas_call(
            kernel,
            out_shape=jax.ShapeDtypeStruct((B, t_pad, c_out_pad), jnp.float32),
            grid_spec=grid_spec,
            compiler_params=pltpu.CompilerParams(
                dimension_semantics=("parallel", "parallel"),
                vmem_limit_bytes=_vmem_limit_bytes(
                    packed, t_tile, halo, single_buffer_weights, vmem_cap)),
        )

    args = (x_win, packed["w0"], packed["w_mid"], packed["w_last"],
            packed["scale"], packed["shift"],
            packed["scale_last"], packed["shift_last"])
    try:
        out = build(True)(*args)         # single-buffered grid-invariant weights
    except Exception:
        out = build(False)(*args)        # fallback if pipeline_mode=Buffered(1) rejected

    out = out[:, :T, :packed["c_out"]]                    # drop T / channel padding
    return jnp.transpose(out, (0, 2, 1)).astype(x_bct.dtype)   # back to (B, C, T)


# -----------------------------------------------------------------------------
# Synthetic params + pure-JAX references
# -----------------------------------------------------------------------------
def make_postnet_params(key, n_mel, emb_dim, ksize, n_convs):
    dims = [n_mel] + [emb_dim] * (n_convs - 1) + [n_mel]
    params = []
    for i in range(n_convs):
        c_in, c_out = dims[i], dims[i + 1]
        key, k1, k2, k3, k4, k5, k6 = jax.random.split(key, 7)
        w = 0.1 * jax.random.normal(k1, (ksize, c_in, c_out), jnp.float32)
        bias = 0.1 * jax.random.normal(k2, (c_out,), jnp.float32)
        gamma = 1.0 + 0.1 * jax.random.normal(k3, (c_out,), jnp.float32)
        beta = 0.1 * jax.random.normal(k4, (c_out,), jnp.float32)
        rmean = 0.1 * jax.random.normal(k5, (c_out,), jnp.float32)
        rvar = jnp.abs(1.0 + 0.1 * jax.random.normal(k6, (c_out,), jnp.float32))
        params.append(dict(w=w, bias=bias, gamma=gamma, beta=beta,
                           rmean=rmean, rvar=rvar))
    return params


def postnet_reference_f32(x_bct, params, eps=1e-5):
    """Pure-f32 reference (matches the PyTorch module in eval mode)."""
    x = jnp.transpose(x_bct, (0, 2, 1))
    n = len(params)
    for i, p in enumerate(params):
        K = p["w"].shape[0]
        pad = (K - 1) // 2
        T = x.shape[1]
        xp = jnp.pad(x, ((0, 0), (pad, pad), (0, 0)))
        y = sum(jnp.einsum("btc,cd->btd", xp[:, k:k + T, :], p["w"][k])
                for k in range(K)) + p["bias"]
        scale = p["gamma"] / jnp.sqrt(p["rvar"] + eps)
        y = (y - p["rmean"]) * scale + p["beta"]
        if i < n - 1:
            y = jnp.tanh(y)
        x = y
    return jnp.transpose(x, (0, 2, 1))


def postnet_reference_bf16(x_bct, params, eps=1e-5):
    """Reference emulating the kernel's precision (bf16 matmuls, f32 epilogue)."""
    x = jnp.transpose(x_bct, (0, 2, 1)).astype(jnp.bfloat16)
    n = len(params)
    for i, p in enumerate(params):
        K = p["w"].shape[0]
        pad = (K - 1) // 2
        T = x.shape[1]
        xp = jnp.pad(x, ((0, 0), (pad, pad), (0, 0)))
        w = p["w"].astype(jnp.bfloat16)
        acc = jnp.einsum("btc,cd->btd", xp[:, 0:T, :], w[0],
                         preferred_element_type=jnp.float32)
        for k in range(1, K):
            acc = acc + jnp.einsum("btc,cd->btd", xp[:, k:k + T, :], w[k],
                                   preferred_element_type=jnp.float32)
        sc, sh = fold_bn(p, eps)
        y = acc * sc[None, None, :] + sh[None, None, :]
        if i < n - 1:
            x = jnp.tanh(y).astype(jnp.bfloat16)
        else:
            x = y
    return jnp.transpose(x, (0, 2, 1)).astype(jnp.float32)


if __name__ == "__main__":
    # Small hparams: n_mel_channels=16, postnet_embedding_dim=32,
    # postnet_kernel_size=5, postnet_n_convolutions=5; batch=2, seq=16.
    N_MEL, EMB, KSIZE, NCONV = 16, 32, 5, 5
    B, T = 2, 16

    key = jax.random.PRNGKey(0)
    key, xkey = jax.random.split(key)
    x = jax.random.normal(xkey, (B, N_MEL, T), jnp.float32)   # PyTorch NCL layout

    params = make_postnet_params(key, N_MEL, EMB, KSIZE, NCONV)
    packed = pack_postnet_params(params)

    out = jax.block_until_ready(postnet_forward(x, packed))
    assert out.shape == (B, N_MEL, T)
    # Tight check vs. a reference that uses the same bf16-matmul precision.
    assert jnp.allclose(out, postnet_reference_bf16(x, params),
                        atol=5e-3, rtol=5e-3), "mismatch vs bf16 reference"
    # Looser semantic check vs. the pure-f32 PyTorch-equivalent math.
    assert jnp.allclose(out, postnet_reference_f32(x, params),
                        atol=1e-1, rtol=1e-1), "mismatch vs f32 reference"

    # Exercise the multi-tile (T-tiled, halo'd windows + edge-mask) path as well.
    key, xkey2 = jax.random.split(key)
    T2 = 40
    x2 = jax.random.normal(xkey2, (B, N_MEL, T2), jnp.float32)
    out2 = jax.block_until_ready(postnet_forward(x2, packed, t_tile=16))
    assert out2.shape == (B, N_MEL, T2)
    assert jnp.allclose(out2, postnet_reference_bf16(x2, params),
                        atol=5e-3, rtol=5e-3), "mismatch vs bf16 reference (tiled)"

    print("KERNEL_OK")
</pallas_src>

<mosaic_0001>
module attributes {stable_mosaic.version = 11 : i64} {
  func.func @_postnet_fused_kernel(%arg0: i32, %arg1: i32, %arg2: memref<1x1x36x128xbf16, #tpu.memory_space<vmem>>, %arg3: memref<5x128x128xbf16, #tpu.memory_space<vmem>>, %arg4: memref<3x5x128x128xbf16, #tpu.memory_space<vmem>>, %arg5: memref<5x128x128xbf16, #tpu.memory_space<vmem>>, %arg6: memref<4x1x128xf32, #tpu.memory_space<vmem>>, %arg7: memref<4x1x128xf32, #tpu.memory_space<vmem>>, %arg8: memref<1x128xf32, #tpu.memory_space<vmem>>, %arg9: memref<1x128xf32, #tpu.memory_space<vmem>>, %arg10: memref<1x16x128xf32, #tpu.memory_space<vmem>>, %arg11: memref<36x128xbf16, #tpu.memory_space<vmem>>, %arg12: memref<36x128xbf16, #tpu.memory_space<vmem>>) attributes {dimension_semantics = [#tpu.dimension_semantics<parallel>, #tpu.dimension_semantics<parallel>], iteration_bounds = array<i64: 2, 1>, scalar_prefetch = 0 : i64, scratch_operands = 2 : i64, tpu.core_type = #tpu.core_type<tc>, window_params = [{transform_indices = @transform_0, window_bounds = array<i64: 1, 1, 36, 128>}, {pipeline_mode = #tpu.pipeline_mode<synchronous>, transform_indices = @transform_1, window_bounds = array<i64: 5, 128, 128>}, {pipeline_mode = #tpu.pipeline_mode<synchronous>, transform_indices = @transform_2, window_bounds = array<i64: 3, 5, 128, 128>}, {pipeline_mode = #tpu.pipeline_mode<synchronous>, transform_indices = @transform_3, window_bounds = array<i64: 5, 128, 128>}, {pipeline_mode = #tpu.pipeline_mode<synchronous>, transform_indices = @transform_4, window_bounds = array<i64: 4, 1, 128>}, {pipeline_mode = #tpu.pipeline_mode<synchronous>, transform_indices = @transform_5, window_bounds = array<i64: 4, 1, 128>}, {pipeline_mode = #tpu.pipeline_mode<synchronous>, transform_indices = @transform_6, window_bounds = array<i64: 1, 128>}, {pipeline_mode = #tpu.pipeline_mode<synchronous>, transform_indices = @transform_7, window_bounds = array<i64: 1, 128>}, {transform_indices = @transform_8, window_bounds = array<i64: 1, 16, 128>}]} {
    %c16_i32 = arith.constant 16 : i32
    %0 = arith.muli %arg1, %c16_i32 : i32
    %1 = tpu.iota {dimensions = array<i32: 0>} : vector<36x1xi32>
    %c10_i32 = arith.constant 10 : i32
    %2 = arith.subi %0, %c10_i32 : i32
    %3 = vector.broadcast %2 : i32 to vector<36x1xi32>
    %4 = arith.addi %1, %3 : vector<36x1xi32>
    %c0_i32 = arith.constant 0 : i32
    %5 = vector.broadcast %c0_i32 : i32 to vector<36x1xi32>
    %6 = arith.cmpi sge, %4, %5 : vector<36x1xi32>
    %c16_i32_0 = arith.constant 16 : i32
    %7 = vector.broadcast %c16_i32_0 : i32 to vector<36x1xi32>
    %8 = arith.cmpi slt, %4, %7 : vector<36x1xi32>
    %9 = arith.andi %6, %8 : vector<36x1xi1>
    %10 = arith.extui %9 : vector<36x1xi1> to vector<36x1xi32>
    %11 = arith.sitofp %10 : vector<36x1xi32> to vector<36x1xf32>
    %c0 = arith.constant 0 : index
    %c0_1 = arith.constant 0 : index
    %c0_2 = arith.constant 0 : index
    %c0_3 = arith.constant 0 : index
    %12 = vector.load %arg2[%c0, %c0_1, %c0_2, %c0_3] : memref<1x1x36x128xbf16, #tpu.memory_space<vmem>>, vector<1x1x32x128xbf16>
    %13 = vector.shape_cast %12 : vector<1x1x32x128xbf16> to vector<32x128xbf16>
    %c0_4 = arith.constant 0 : index
    %c0_5 = arith.constant 0 : index
    %c0_6 = arith.constant 0 : index
    %14 = vector.load %arg3[%c0_4, %c0_5, %c0_6] : memref<5x128x128xbf16, #tpu.memory_space<vmem>>, vector<1x128x128xbf16>
    %15 = vector.shape_cast %14 : vector<1x128x128xbf16> to vector<128x128xbf16>
    %cst = arith.constant dense<0.000000e+00> : vector<32x128xf32>
    %16 = tpu.matmul %13, %15, %cst {dimension_numbers = #tpu.dot_dimension_numbers<[1], [0], [0], [1], [0, 0, 1, 1], [], []>} : vector<32x128xbf16>, vector<128x128xbf16>, vector<32x128xf32> -> vector<32x128xf32>
    %c0_7 = arith.constant 0 : index
    %c0_8 = arith.constant 0 : index
    %c1 = arith.constant 1 : index
    %c0_9 = arith.constant 0 : index
    %17 = vector.load %arg2[%c0_7, %c0_8, %c1, %c0_9] : memref<1x1x36x128xbf16, #tpu.memory_space<vmem>>, vector<1x1x32x128xbf16>
    %18 = vector.shape_cast %17 : vector<1x1x32x128xbf16> to vector<32x128xbf16>
    %c1_10 = arith.constant 1 : index
    %c0_11 = arith.constant 0 : index
    %c0_12 = arith.constant 0 : index
    %19 = vector.load %arg3[%c1_10, %c0_11, %c0_12] : memref<5x128x128xbf16, #tpu.memory_space<vmem>>, vector<1x128x128xbf16>
    %20 = vector.shape_cast %19 : vector<1x128x128xbf16> to vector<128x128xbf16>
    %cst_13 = arith.constant dense<0.000000e+00> : vector<32x128xf32>
    %21 = tpu.matmul %18, %20, %cst_13 {dimension_numbers = #tpu.dot_dimension_numbers<[1], [0], [0], [1], [0, 0, 1, 1], [], []>} : vector<32x128xbf16>, vector<128x128xbf16>, vector<32x128xf32> -> vector<32x128xf32>
    %22 = arith.addf %16, %21 : vector<32x128xf32>
    %c0_14 = arith.constant 0 : index
    %c0_15 = arith.constant 0 : index
    %c2 = arith.constant 2 : index
    %c0_16 = arith.constant 0 : index
    %23 = vector.load %arg2[%c0_14, %c0_15, %c2, %c0_16] : memref<1x1x36x128xbf16, #tpu.memory_space<vmem>>, vector<1x1x32x128xbf16>
    %24 = vector.shape_cast %23 : vector<1x1x32x128xbf16> to vector<32x128xbf16>
    %c2_17 = arith.constant 2 : index
    %c0_18 = arith.constant 0 : index
    %c0_19 = arith.constant 0 : index
    %25 = vector.load %arg3[%c2_17, %c0_18, %c0_19] : memref<5x128x128xbf16, #tpu.memory_space<vmem>>, vector<1x128x128xbf16>
    %26 = vector.shape_cast %25 : vector<1x128x128xbf16> to vector<128x128xbf16>
    %cst_20 = arith.constant dense<0.000000e+00> : vector<32x128xf32>
    %27 = tpu.matmul %24, %26, %cst_20 {dimension_numbers = #tpu.dot_dimension_numbers<[1], [0], [0], [1], [0, 0, 1, 1], [], []>} : vector<32x128xbf16>, vector<128x128xbf16>, vector<32x128xf32> -> vector<32x128xf32>
    %28 = arith.addf %22, %27 : vector<32x128xf32>
    %c0_21 = arith.constant 0 : index
    %c0_22 = arith.constant 0 : index
    %c3 = arith.constant 3 : index
    %c0_23 = arith.constant 0 : index
    %29 = vector.load %arg2[%c0_21, %c0_22, %c3, %c0_23] : memref<1x1x36x128xbf16, #tpu.memory_space<vmem>>, vector<1x1x32x128xbf16>
    %30 = vector.shape_cast %29 : vector<1x1x32x128xbf16> to vector<32x128xbf16>
    %c3_24 = arith.constant 3 : index
    %c0_25 = arith.constant 0 : index
    %c0_26 = arith.constant 0 : index
    %31 = vector.load %arg3[%c3_24, %c0_25, %c0_26] : memref<5x128x128xbf16, #tpu.memory_space<vmem>>, vector<1x128x128xbf16>
    %32 = vector.shape_cast %31 : vector<1x128x128xbf16> to vector<128x128xbf16>
    %cst_27 = arith.constant dense<0.000000e+00> : vector<32x128xf32>
    %33 = tpu.matmul %30, %32, %cst_27 {dimension_numbers = #tpu.dot_dimension_numbers<[1], [0], [0], [1], [0, 0, 1, 1], [], []>} : vector<32x128xbf16>, vector<128x128xbf16>, vector<32x128xf32> -> vector<32x128xf32>
    %34 = arith.addf %28, %33 : vector<32x128xf32>
    %c0_28 = arith.constant 0 : index
    %c0_29 = arith.constant 0 : index
    %c4 = arith.constant 4 : index
    %c0_30 = arith.constant 0 : index
    %35 = vector.load %arg2[%c0_28, %c0_29, %c4, %c0_30] : memref<1x1x36x128xbf16, #tpu.memory_space<vmem>>, vector<1x1x32x128xbf16>
    %36 = vector.shape_cast %35 : vector<1x1x32x128xbf16> to vector<32x128xbf16>
    %c4_31 = arith.constant 4 : index
    %c0_32 = arith.constant 0 : index
    %c0_33 = arith.constant 0 : index
    %37 = vector.load %arg3[%c4_31, %c0_32, %c0_33] : memref<5x128x128xbf16, #tpu.memory_space<vmem>>, vector<1x128x128xbf16>
    %38 = vector.shape_cast %37 : vector<1x128x128xbf16> to vector<128x128xbf16>
    %cst_34 = arith.constant dense<0.000000e+00> : vector<32x128xf32>
    %39 = tpu.matmul %36, %38, %cst_34 {dimension_numbers = #tpu.dot_dimension_numbers<[1], [0], [0], [1], [0, 0, 1, 1], [], []>} : vector<32x128xbf16>, vector<128x128xbf16>, vector<32x128xf32> -> vector<32x128xf32>
    %40 = arith.addf %34, %39 : vector<32x128xf32>
    %c0_35 = arith.constant 0 : index
    %c0_36 = arith.constant 0 : index
    %c0_37 = arith.constant 0 : index
    %41 = vector.load %arg6[%c0_35, %c0_36, %c0_37] : memref<4x1x128xf32, #tpu.memory_space<vmem>>, vector<1x1x128xf32>
    %42 = vector.shape_cast %41 : vector<1x1x128xf32> to vector<1x128xf32>
    %43 = vector.broadcast %42 : vector<1x128xf32> to vector<32x128xf32>
    %44 = arith.mulf %40, %43 : vector<32x128xf32>
    %c0_38 = arith.constant 0 : index
    %c0_39 = arith.constant 0 : index
    %c0_40 = arith.constant 0 : index
    %45 = vector.load %arg7[%c0_38, %c0_39, %c0_40] : memref<4x1x128xf32, #tpu.memory_space<vmem>>, vector<1x1x128xf32>
    %46 = vector.shape_cast %45 : vector<1x1x128xf32> to vector<1x128xf32>
    %47 = vector.broadcast %46 : vector<1x128xf32> to vector<32x128xf32>
    %48 = arith.addf %44, %47 : vector<32x128xf32>
    %49 = math.tanh %48 : vector<32x128xf32>
    %50 = vector.extract_strided_slice %11 {offsets = [2, 0], sizes = [32, 1], strides = [1, 1]} : vector<36x1xf32> to vector<32x1xf32>
    %51 = vector.broadcast %50 : vector<32x1xf32> to vector<32x128xf32>
    %52 = arith.mulf %49, %51 : vector<32x128xf32>
    %53 = arith.truncf %52 : vector<32x128xf32> to vector<32x128xbf16>
    %c0_41 = arith.constant 0 : index
    %c0_42 = arith.constant 0 : index
    %54 = vector.load %arg11[%c0_41, %c0_42] : memref<36x128xbf16, #tpu.memory_space<vmem>>, vector<32x128xbf16>
    tpu.vector_store %arg11[%c0_41, %c0_42], %53 {strides = array<i32>} : memref<36x128xbf16, #tpu.memory_space<vmem>>, vector<32x128xbf16>,
    %c0_43 = arith.constant 0 : index
    %c0_44 = arith.constant 0 : index
    %55 = vector.load %arg11[%c0_43, %c0_44] : memref<36x128xbf16, #tpu.memory_space<vmem>>, vector<28x128xbf16>
    %c0_45 = arith.constant 0 : index
    %c0_46 = arith.constant 0 : index
    %c0_47 = arith.constant 0 : index
    %c0_48 = arith.constant 0 : index
    %56 = vector.load %arg4[%c0_45, %c0_46, %c0_47, %c0_48] : memref<3x5x128x128xbf16, #tpu.memory_space<vmem>>, vector<1x1x128x128xbf16>
    %57 = vector.shape_cast %56 : vector<1x1x128x128xbf16> to vector<128x128xbf16>
    %cst_49 = arith.constant dense<0.000000e+00> : vector<28x128xf32>
    %58 = tpu.matmul %55, %57, %cst_49 {dimension_numbers = #tpu.dot_dimension_numbers<[1], [0], [0], [1], [0, 0, 1, 1], [], []>} : vector<28x128xbf16>, vector<128x128xbf16>, vector<28x128xf32> -> vector<28x128xf32>
    %c1_50 = arith.constant 1 : index
    %c0_51 = arith.constant 0 : index
    %59 = vector.load %arg11[%c1_50, %c0_51] : memref<36x128xbf16, #tpu.memory_space<vmem>>, vector<28x128xbf16>
    %c0_52 = arith.constant 0 : index
    %c1_53 = arith.constant 1 : index
    %c0_54 = arith.constant 0 : index
    %c0_55 = arith.constant 0 : index
    %60 = vector.load %arg4[%c0_52, %c1_53, %c0_54, %c0_55] : memref<3x5x128x128xbf16, #tpu.memory_space<vmem>>, vector<1x1x128x128xbf16>
    %61 = vector.shape_cast %60 : vector<1x1x128x128xbf16> to vector<128x128xbf16>
    %cst_56 = arith.constant dense<0.000000e+00> : vector<28x128xf32>
    %62 = tpu.matmul %59, %61, %cst_56 {dimension_numbers = #tpu.dot_dimension_numbers<[1], [0], [0], [1], [0, 0, 1, 1], [], []>} : vector<28x128xbf16>, vector<128x128xbf16>, vector<28x128xf32> -> vector<28x128xf32>
    %63 = arith.addf %58, %62 : vector<28x128xf32>
    %c2_57 = arith.constant 2 : index
    %c0_58 = arith.constant 0 : index
    %64 = vector.load %arg11[%c2_57, %c0_58] : memref<36x128xbf16, #tpu.memory_space<vmem>>, vector<28x128xbf16>
    %c0_59 = arith.constant 0 : index
    %c2_60 = arith.constant 2 : index
    %c0_61 = arith.constant 0 : index
    %c0_62 = arith.constant 0 : index
    %65 = vector.load %arg4[%c0_59, %c2_60, %c0_61, %c0_62] : memref<3x5x128x128xbf16, #tpu.memory_space<vmem>>, vector<1x1x128x128xbf16>
    %66 = vector.shape_cast %65 : vector<1x1x128x128xbf16> to vector<128x128xbf16>
    %cst_63 = arith.constant dense<0.000000e+00> : vector<28x128xf32>
    %67 = tpu.matmul %64, %66, %cst_63 {dimension_numbers = #tpu.dot_dimension_numbers<[1], [0], [0], [1], [0, 0, 1, 1], [], []>} : vector<28x128xbf16>, vector<128x128xbf16>, vector<28x128xf32> -> vector<28x128xf32>
    %68 = arith.addf %63, %67 : vector<28x128xf32>
    %c3_64 = arith.constant 3 : index
    %c0_65 = arith.constant 0 : index
    %69 = vector.load %arg11[%c3_64, %c0_65] : memref<36x128xbf16, #tpu.memory_space<vmem>>, vector<28x128xbf16>
    %c0_66 = arith.constant 0 : index
    %c3_67 = arith.constant 3 : index
    %c0_68 = arith.constant 0 : index
    %c0_69 = arith.constant 0 : index
    %70 = vector.load %arg4[%c0_66, %c3_67, %c0_68, %c0_69] : memref<3x5x128x128xbf16, #tpu.memory_space<vmem>>, vector<1x1x128x128xbf16>
    %71 = vector.shape_cast %70 : vector<1x1x128x128xbf16> to vector<128x128xbf16>
    %cst_70 = arith.constant dense<0.000000e+00> : vector<28x128xf32>
    %72 = tpu.matmul %69, %71, %cst_70 {dimension_numbers = #tpu.dot_dimension_numbers<[1], [0], [0], [1], [0, 0, 1, 1], [], []>} : vector<28x128xbf16>, vector<128x128xbf16>, vector<28x128xf32> -> vector<28x128xf32>
    %73 = arith.addf %68, %72 : vector<28x128xf32>
    %c4_71 = arith.constant 4 : index
    %c0_72 = arith.constant 0 : index
    %74 = vector.load %arg11[%c4_71, %c0_72] : memref<36x128xbf16, #tpu.memory_space<vmem>>, vector<28x128xbf16>
    %c0_73 = arith.constant 0 : index
    %c4_74 = arith.constant 4 : index
    %c0_75 = arith.constant 0 : index
    %c0_76 = arith.constant 0 : index
    %75 = vector.load %arg4[%c0_73, %c4_74, %c0_75, %c0_76] : memref<3x5x128x128xbf16, #tpu.memory_space<vmem>>, vector<1x1x128x128xbf16>
    %76 = vector.shape_cast %75 : vector<1x1x128x128xbf16> to vector<128x128xbf16>
    %cst_77 = arith.constant dense<0.000000e+00> : vector<28x128xf32>
    %77 = tpu.matmul %74, %76, %cst_77 {dimension_numbers = #tpu.dot_dimension_numbers<[1], [0], [0], [1], [0, 0, 1, 1], [], []>} : vector<28x128xbf16>, vector<128x128xbf16>, vector<28x128xf32> -> vector<28x128xf32>
    %78 = arith.addf %73, %77 : vector<28x128xf32>
    %c1_78 = arith.constant 1 : index
    %c0_79 = arith.constant 0 : index
    %c0_80 = arith.constant 0 : index
    %79 = vector.load %arg6[%c1_78, %c0_79, %c0_80] : memref<4x1x128xf32, #tpu.memory_space<vmem>>, vector<1x1x128xf32>
    %80 = vector.shape_cast %79 : vector<1x1x128xf32> to vector<1x128xf32>
    %81 = vector.broadcast %80 : vector<1x128xf32> to vector<28x128xf32>
    %82 = arith.mulf %78, %81 : vector<28x128xf32>
    %c1_81 = arith.constant 1 : index
    %c0_82 = arith.constant 0 : index
    %c0_83 = arith.constant 0 : index
    %83 = vector.load %arg7[%c1_81, %c0_82, %c0_83] : memref<4x1x128xf32, #tpu.memory_space<vmem>>, vector<1x1x128xf32>
    %84 = vector.shape_cast %83 : vector<1x1x128xf32> to vector<1x128xf32>
    %85 = vector.broadcast %84 : vector<1x128xf32> to vector<28x128xf32>
    %86 = arith.addf %82, %85 : vector<28x128xf32>
    %87 = math.tanh %86 : vector<28x128xf32>
    %88 = vector.extract_strided_slice %11 {offsets = [4, 0], sizes = [28, 1], strides = [1, 1]} : vector<36x1xf32> to vector<28x1xf32>
    %89 = vector.broadcast %88 : vector<28x1xf32> to vector<28x128xf32>
    %90 = arith.mulf %87, %89 : vector<28x128xf32>
    %91 = arith.truncf %90 : vector<28x128xf32> to vector<28x128xbf16>
    %c0_84 = arith.constant 0 : index
    %c0_85 = arith.constant 0 : index
    %92 = vector.load %arg12[%c0_84, %c0_85] : memref<36x128xbf16, #tpu.memory_space<vmem>>, vector<28x128xbf16>
    tpu.vector_store %arg12[%c0_84, %c0_85], %91 {strides = array<i32>} : memref<36x128xbf16, #tpu.memory_space<vmem>>, vector<28x128xbf16>,
    %c0_86 = arith.constant 0 : index
    %c0_87 = arith.constant 0 : index
    %93 = vector.load %arg12[%c0_86, %c0_87] : memref<36x128xbf16, #tpu.memory_space<vmem>>, vector<24x128xbf16>
    %c1_88 = arith.constant 1 : index
    %c0_89 = arith.constant 0 : index
    %c0_90 = arith.constant 0 : index
    %c0_91 = arith.constant 0 : index
    %94 = vector.load %arg4[%c1_88, %c0_89, %c0_90, %c0_91] : memref<3x5x128x128xbf16, #tpu.memory_space<vmem>>, vector<1x1x128x128xbf16>
    %95 = vector.shape_cast %94 : vector<1x1x128x128xbf16> to vector<128x128xbf16>
    %cst_92 = arith.constant dense<0.000000e+00> : vector<24x128xf32>
    %96 = tpu.matmul %93, %95, %cst_92 {dimension_numbers = #tpu.dot_dimension_numbers<[1], [0], [0], [1], [0, 0, 1, 1], [], []>} : vector<24x128xbf16>, vector<128x128xbf16>, vector<24x128xf32> -> vector<24x128xf32>
    %c1_93 = arith.constant 1 : index
    %c0_94 = arith.constant 0 : index
    %97 = vector.load %arg12[%c1_93, %c0_94] : memref<36x128xbf16, #tpu.memory_space<vmem>>, vector<24x128xbf16>
    %c1_95 = arith.constant 1 : index
    %c1_96 = arith.constant 1 : index
    %c0_97 = arith.constant 0 : index
    %c0_98 = arith.constant 0 : index
    %98 = vector.load %arg4[%c1_95, %c1_96, %c0_97, %c0_98] : memref<3x5x128x128xbf16, #tpu.memory_space<vmem>>, vector<1x1x128x128xbf16>
    %99 = vector.shape_cast %98 : vector<1x1x128x128xbf16> to vector<128x128xbf16>
    %cst_99 = arith.constant dense<0.000000e+00> : vector<24x128xf32>
    %100 = tpu.matmul %97, %99, %cst_99 {dimension_numbers = #tpu.dot_dimension_numbers<[1], [0], [0], [1], [0, 0, 1, 1], [], []>} : vector<24x128xbf16>, vector<128x128xbf16>, vector<24x128xf32> -> vector<24x128xf32>
    %101 = arith.addf %96, %100 : vector<24x128xf32>
    %c2_100 = arith.constant 2 : index
    %c0_101 = arith.constant 0 : index
    %102 = vector.load %arg12[%c2_100, %c0_101] : memref<36x128xbf16, #tpu.memory_space<vmem>>, vector<24x128xbf16>
    %c1_102 = arith.constant 1 : index
    %c2_103 = arith.constant 2 : index
    %c0_104 = arith.constant 0 : index
    %c0_105 = arith.constant 0 : index
    %103 = vector.load %arg4[%c1_102, %c2_103, %c0_104, %c0_105] : memref<3x5x128x128xbf16, #tpu.memory_space<vmem>>, vector<1x1x128x128xbf16>
    %104 = vector.shape_cast %103 : vector<1x1x128x128xbf16> to vector<128x128xbf16>
    %cst_106 = arith.constant dense<0.000000e+00> : vector<24x128xf32>
    %105 = tpu.matmul %102, %104, %cst_106 {dimension_numbers = #tpu.dot_dimension_numbers<[1], [0], [0], [1], [0, 0, 1, 1], [], []>} : vector<24x128xbf16>, vector<128x128xbf16>, vector<24x128xf32> -> vector<24x128xf32>
    %106 = arith.addf %101, %105 : vector<24x128xf32>
    %c3_107 = arith.constant 3 : index
    %c0_108 = arith.constant 0 : index
    %107 = vector.load %arg12[%c3_107, %c0_108] : memref<36x128xbf16, #tpu.memory_space<vmem>>, vector<24x128xbf16>
    %c1_109 = arith.constant 1 : index
    %c3_110 = arith.constant 3 : index
    %c0_111 = arith.constant 0 : index
    %c0_112 = arith.constant 0 : index
    %108 = vector.load %arg4[%c1_109, %c3_110, %c0_111, %c0_112] : memref<3x5x128x128xbf16, #tpu.memory_space<vmem>>, vector<1x1x128x128xbf16>
    %109 = vector.shape_cast %108 : vector<1x1x128x128xbf16> to vector<128x128xbf16>
    %cst_113 = arith.constant dense<0.000000e+00> : vector<24x128xf32>
    %110 = tpu.matmul %107, %109, %cst_113 {dimension_numbers = #tpu.dot_dimension_numbers<[1], [0], [0], [1], [0, 0, 1, 1], [], []>} : vector<24x128xbf16>, vector<128x128xbf16>, vector<24x128xf32> -> vector<24x128xf32>
    %111 = arith.addf %106, %110 : vector<24x128xf32>
    %c4_114 = arith.constant 4 : index
    %c0_115 = arith.constant 0 : index
    %112 = vector.load %arg12[%c4_114, %c0_115] : memref<36x128xbf16, #tpu.memory_space<vmem>>, vector<24x128xbf16>
    %c1_116 = arith.constant 1 : index
    %c4_117 = arith.constant 4 : index
    %c0_118 = arith.constant 0 : index
    %c0_119 = arith.constant 0 : index
    %113 = vector.load %arg4[%c1_116, %c4_117, %c0_118, %c0_119] : memref<3x5x128x128xbf16, #tpu.memory_space<vmem>>, vector<1x1x128x128xbf16>
    %114 = vector.shape_cast %113 : vector<1x1x128x128xbf16> to vector<128x128xbf16>
    %cst_120 = arith.constant dense<0.000000e+00> : vector<24x128xf32>
    %115 = tpu.matmul %112, %114, %cst_120 {dimension_numbers = #tpu.dot_dimension_numbers<[1], [0], [0], [1], [0, 0, 1, 1], [], []>} : vector<24x128xbf16>, vector<128x128xbf16>, vector<24x128xf32> -> vector<24x128xf32>
    %116 = arith.addf %111, %115 : vector<24x128xf32>
    %c2_121 = arith.constant 2 : index
    %c0_122 = arith.constant 0 : index
    %c0_123 = arith.constant 0 : index
    %117 = vector.load %arg6[%c2_121, %c0_122, %c0_123] : memref<4x1x128xf32, #tpu.memory_space<vmem>>, vector<1x1x128xf32>
    %118 = vector.shape_cast %117 : vector<1x1x128xf32> to vector<1x128xf32>
    %119 = vector.broadcast %118 : vector<1x128xf32> to vector<24x128xf32>
    %120 = arith.mulf %116, %119 : vector<24x128xf32>
    %c2_124 = arith.constant 2 : index
    %c0_125 = arith.constant 0 : index
    %c0_126 = arith.constant 0 : index
    %121 = vector.load %arg7[%c2_124, %c0_125, %c0_126] : memref<4x1x128xf32, #tpu.memory_space<vmem>>, vector<1x1x128xf32>
    %122 = vector.shape_cast %121 : vector<1x1x128xf32> to vector<1x128xf32>
    %123 = vector.broadcast %122 : vector<1x128xf32> to vector<24x128xf32>
    %124 = arith.addf %120, %123 : vector<24x128xf32>
    %125 = math.tanh %124 : vector<24x128xf32>
    %126 = vector.extract_strided_slice %11 {offsets = [6, 0], sizes = [24, 1], strides = [1, 1]} : vector<36x1xf32> to vector<24x1xf32>
    %127 = vector.broadcast %126 : vector<24x1xf32> to vector<24x128xf32>
    %128 = arith.mulf %125, %127 : vector<24x128xf32>
    %129 = arith.truncf %128 : vector<24x128xf32> to vector<24x128xbf16>
    %c0_127 = arith.constant 0 : index
    %c0_128 = arith.constant 0 : index
    %130 = vector.load %arg11[%c0_127, %c0_128] : memref<36x128xbf16, #tpu.memory_space<vmem>>, vector<24x128xbf16>
    tpu.vector_store %arg11[%c0_127, %c0_128], %129 {strides = array<i32>} : memref<36x128xbf16, #tpu.memory_space<vmem>>, vector<24x128xbf16>,
    %c0_129 = arith.constant 0 : index
    %c0_130 = arith.constant 0 : index
    %131 = vector.load %arg11[%c0_129, %c0_130] : memref<36x128xbf16, #tpu.memory_space<vmem>>, vector<20x128xbf16>
    %c2_131 = arith.constant 2 : index
    %c0_132 = arith.constant 0 : index
    %c0_133 = arith.constant 0 : index
    %c0_134 = arith.constant 0 : index
    %132 = vector.load %arg4[%c2_131, %c0_132, %c0_133, %c0_134] : memref<3x5x128x128xbf16, #tpu.memory_space<vmem>>, vector<1x1x128x128xbf16>
    %133 = vector.shape_cast %132 : vector<1x1x128x128xbf16> to vector<128x128xbf16>
    %cst_135 = arith.constant dense<0.000000e+00> : vector<20x128xf32>
    %134 = tpu.matmul %131, %133, %cst_135 {dimension_numbers = #tpu.dot_dimension_numbers<[1], [0], [0], [1], [0, 0, 1, 1], [], []>} : vector<20x128xbf16>, vector<128x128xbf16>, vector<20x128xf32> -> vector<20x128xf32>
    %c1_136 = arith.constant 1 : index
    %c0_137 = arith.constant 0 : index
    %135 = vector.load %arg11[%c1_136, %c0_137] : memref<36x128xbf16, #tpu.memory_space<vmem>>, vector<20x128xbf16>
    %c2_138 = arith.constant 2 : index
    %c1_139 = arith.constant 1 : index
    %c0_140 = arith.constant 0 : index
    %c0_141 = arith.constant 0 : index
    %136 = vector.load %arg4[%c2_138, %c1_139, %c0_140, %c0_141] : memref<3x5x128x128xbf16, #tpu.memory_space<vmem>>, vector<1x1x128x128xbf16>
    %137 = vector.shape_cast %136 : vector<1x1x128x128xbf16> to vector<128x128xbf16>
    %cst_142 = arith.constant dense<0.000000e+00> : vector<20x128xf32>
    %138 = tpu.matmul %135, %137, %cst_142 {dimension_numbers = #tpu.dot_dimension_numbers<[1], [0], [0], [1], [0, 0, 1, 1], [], []>} : vector<20x128xbf16>, vector<128x128xbf16>, vector<20x128xf32> -> vector<20x128xf32>
    %139 = arith.addf %134, %138 : vector<20x128xf32>
    %c2_143 = arith.constant 2 : index
    %c0_144 = arith.constant 0 : index
    %140 = vector.load %arg11[%c2_143, %c0_144] : memref<36x128xbf16, #tpu.memory_space<vmem>>, vector<20x128xbf16>
    %c2_145 = arith.constant 2 : index
    %c2_146 = arith.constant 2 : index
    %c0_147 = arith.constant 0 : index
    %c0_148 = arith.constant 0 : index
    %141 = vector.load %arg4[%c2_145, %c2_146, %c0_147, %c0_148] : memref<3x5x128x128xbf16, #tpu.memory_space<vmem>>, vector<1x1x128x128xbf16>
    %142 = vector.shape_cast %141 : vector<1x1x128x128xbf16> to vector<128x128xbf16>
    %cst_149 = arith.constant dense<0.000000e+00> : vector<20x128xf32>
    %143 = tpu.matmul %140, %142, %cst_149 {dimension_numbers = #tpu.dot_dimension_numbers<[1], [0], [0], [1], [0, 0, 1, 1], [], []>} : vector<20x128xbf16>, vector<128x128xbf16>, vector<20x128xf32> -> vector<20x128xf32>
    %144 = arith.addf %139, %143 : vector<20x128xf32>
    %c3_150 = arith.constant 3 : index
    %c0_151 = arith.constant 0 : index
    %145 = vector.load %arg11[%c3_150, %c0_151] : memref<36x128xbf16, #tpu.memory_space<vmem>>, vector<20x128xbf16>
    %c2_152 = arith.constant 2 : index
    %c3_153 = arith.constant 3 : index
    %c0_154 = arith.constant 0 : index
    %c0_155 = arith.constant 0 : index
    %146 = vector.load %arg4[%c2_152, %c3_153, %c0_154, %c0_155] : memref<3x5x128x128xbf16, #tpu.memory_space<vmem>>, vector<1x1x128x128xbf16>
    %147 = vector.shape_cast %146 : vector<1x1x128x128xbf16> to vector<128x128xbf16>
    %cst_156 = arith.constant dense<0.000000e+00> : vector<20x128xf32>
    %148 = tpu.matmul %145, %147, %cst_156 {dimension_numbers = #tpu.dot_dimension_numbers<[1], [0], [0], [1], [0, 0, 1, 1], [], []>} : vector<20x128xbf16>, vector<128x128xbf16>, vector<20x128xf32> -> vector<20x128xf32>
    %149 = arith.addf %144, %148 : vector<20x128xf32>
    %c4_157 = arith.constant 4 : index
    %c0_158 = arith.constant 0 : index
    %150 = vector.load %arg11[%c4_157, %c0_158] : memref<36x128xbf16, #tpu.memory_space<vmem>>, vector<20x128xbf16>
    %c2_159 = arith.constant 2 : index
    %c4_160 = arith.constant 4 : index
    %c0_161 = arith.constant 0 : index
    %c0_162 = arith.constant 0 : index
    %151 = vector.load %arg4[%c2_159, %c4_160, %c0_161, %c0_162] : memref<3x5x128x128xbf16, #tpu.memory_space<vmem>>, vector<1x1x128x128xbf16>
    %152 = vector.shape_cast %151 : vector<1x1x128x128xbf16> to vector<128x128xbf16>
    %cst_163 = arith.constant dense<0.000000e+00> : vector<20x128xf32>
    %153 = tpu.matmul %150, %152, %cst_163 {dimension_numbers = #tpu.dot_dimension_numbers<[1], [0], [0], [1], [0, 0, 1, 1], [], []>} : vector<20x128xbf16>, vector<128x128xbf16>, vector<20x128xf32> -> vector<20x128xf32>
    %154 = arith.addf %149, %153 : vector<20x128xf32>
    %c3_164 = arith.constant 3 : index
    %c0_165 = arith.constant 0 : index
    %c0_166 = arith.constant 0 : index
    %155 = vector.load %arg6[%c3_164, %c0_165, %c0_166] : memref<4x1x128xf32, #tpu.memory_space<vmem>>, vector<1x1x128xf32>
    %156 = vector.shape_cast %155 : vector<1x1x128xf32> to vector<1x128xf32>
    %157 = vector.broadcast %156 : vector<1x128xf32> to vector<20x128xf32>
    %158 = arith.mulf %154, %157 : vector<20x128xf32>
    %c3_167 = arith.constant 3 : index
    %c0_168 = arith.constant 0 : index
    %c0_169 = arith.constant 0 : index
    %159 = vector.load %arg7[%c3_167, %c0_168, %c0_169] : memref<4x1x128xf32, #tpu.memory_space<vmem>>, vector<1x1x128xf32>
    %160 = vector.shape_cast %159 : vector<1x1x128xf32> to vector<1x128xf32>
    %161 = vector.broadcast %160 : vector<1x128xf32> to vector<20x128xf32>
    %162 = arith.addf %158, %161 : vector<20x128xf32>
    %163 = math.tanh %162 : vector<20x128xf32>
    %164 = vector.extract_strided_slice %11 {offsets = [8, 0], sizes = [20, 1], strides = [1, 1]} : vector<36x1xf32> to vector<20x1xf32>
    %165 = vector.broadcast %164 : vector<20x1xf32> to vector<20x128xf32>
    %166 = arith.mulf %163, %165 : vector<20x128xf32>
    %167 = arith.truncf %166 : vector<20x128xf32> to vector<20x128xbf16>
    %c0_170 = arith.constant 0 : index
    %c0_171 = arith.constant 0 : index
    %168 = vector.load %arg12[%c0_170, %c0_171] : memref<36x128xbf16, #tpu.memory_space<vmem>>, vector<20x128xbf16>
    tpu.vector_store %arg12[%c0_170, %c0_171], %167 {strides = array<i32>} : memref<36x128xbf16, #tpu.memory_space<vmem>>, vector<20x128xbf16>,
    %c0_172 = arith.constant 0 : index
    %c0_173 = arith.constant 0 : index
    %169 = vector.load %arg12[%c0_172, %c0_173] : memref<36x128xbf16, #tpu.memory_space<vmem>>, vector<16x128xbf16>
    %c0_174 = arith.constant 0 : index
    %c0_175 = arith.constant 0 : index
    %c0_176 = arith.constant 0 : index
    %170 = vector.load %arg5[%c0_174, %c0_175, %c0_176] : memref<5x128x128xbf16, #tpu.memory_space<vmem>>, vector<1x128x128xbf16>
    %171 = vector.shape_cast %170 : vector<1x128x128xbf16> to vector<128x128xbf16>
    %cst_177 = arith.constant dense<0.000000e+00> : vector<16x128xf32>
    %172 = tpu.matmul %169, %171, %cst_177 {dimension_numbers = #tpu.dot_dimension_numbers<[1], [0], [0], [1], [0, 0, 1, 1], [], []>} : vector<16x128xbf16>, vector<128x128xbf16>, vector<16x128xf32> -> vector<16x128xf32>
    %c1_178 = arith.constant 1 : index
    %c0_179 = arith.constant 0 : index
    %173 = vector.load %arg12[%c1_178, %c0_179] : memref<36x128xbf16, #tpu.memory_space<vmem>>, vector<16x128xbf16>
    %c1_180 = arith.constant 1 : index
    %c0_181 = arith.constant 0 : index
    %c0_182 = arith.constant 0 : index
    %174 = vector.load %arg5[%c1_180, %c0_181, %c0_182] : memref<5x128x128xbf16, #tpu.memory_space<vmem>>, vector<1x128x128xbf16>
    %175 = vector.shape_cast %174 : vector<1x128x128xbf16> to vector<128x128xbf16>
    %cst_183 = arith.constant dense<0.000000e+00> : vector<16x128xf32>
    %176 = tpu.matmul %173, %175, %cst_183 {dimension_numbers = #tpu.dot_dimension_numbers<[1], [0], [0], [1], [0, 0, 1, 1], [], []>} : vector<16x128xbf16>, vector<128x128xbf16>, vector<16x128xf32> -> vector<16x128xf32>
    %177 = arith.addf %172, %176 : vector<16x128xf32>
    %c2_184 = arith.constant 2 : index
    %c0_185 = arith.constant 0 : index
    %178 = vector.load %arg12[%c2_184, %c0_185] : memref<36x128xbf16, #tpu.memory_space<vmem>>, vector<16x128xbf16>
    %c2_186 = arith.constant 2 : index
    %c0_187 = arith.constant 0 : index
    %c0_188 = arith.constant 0 : index
    %179 = vector.load %arg5[%c2_186, %c0_187, %c0_188] : memref<5x128x128xbf16, #tpu.memory_space<vmem>>, vector<1x128x128xbf16>
    %180 = vector.shape_cast %179 : vector<1x128x128xbf16> to vector<128x128xbf16>
    %cst_189 = arith.constant dense<0.000000e+00> : vector<16x128xf32>
    %181 = tpu.matmul %178, %180, %cst_189 {dimension_numbers = #tpu.dot_dimension_numbers<[1], [0], [0], [1], [0, 0, 1, 1], [], []>} : vector<16x128xbf16>, vector<128x128xbf16>, vector<16x128xf32> -> vector<16x128xf32>
    %182 = arith.addf %177, %181 : vector<16x128xf32>
    %c3_190 = arith.constant 3 : index
    %c0_191 = arith.constant 0 : index
    %183 = vector.load %arg12[%c3_190, %c0_191] : memref<36x128xbf16, #tpu.memory_space<vmem>>, vector<16x128xbf16>
    %c3_192 = arith.constant 3 : index
    %c0_193 = arith.constant 0 : index
    %c0_194 = arith.constant 0 : index
    %184 = vector.load %arg5[%c3_192, %c0_193, %c0_194] : memref<5x128x128xbf16, #tpu.memory_space<vmem>>, vector<1x128x128xbf16>
    %185 = vector.shape_cast %184 : vector<1x128x128xbf16> to vector<128x128xbf16>
    %cst_195 = arith.constant dense<0.000000e+00> : vector<16x128xf32>
    %186 = tpu.matmul %183, %185, %cst_195 {dimension_numbers = #tpu.dot_dimension_numbers<[1], [0], [0], [1], [0, 0, 1, 1], [], []>} : vector<16x128xbf16>, vector<128x128xbf16>, vector<16x128xf32> -> vector<16x128xf32>
    %187 = arith.addf %182, %186 : vector<16x128xf32>
    %c4_196 = arith.constant 4 : index
    %c0_197 = arith.constant 0 : index
    %188 = vector.load %arg12[%c4_196, %c0_197] : memref<36x128xbf16, #tpu.memory_space<vmem>>, vector<16x128xbf16>
    %c4_198 = arith.constant 4 : index
    %c0_199 = arith.constant 0 : index
    %c0_200 = arith.constant 0 : index
    %189 = vector.load %arg5[%c4_198, %c0_199, %c0_200] : memref<5x128x128xbf16, #tpu.memory_space<vmem>>, vector<1x128x128xbf16>
    %190 = vector.shape_cast %189 : vector<1x128x128xbf16> to vector<128x128xbf16>
    %cst_201 = arith.constant dense<0.000000e+00> : vector<16x128xf32>
    %191 = tpu.matmul %188, %190, %cst_201 {dimension_numbers = #tpu.dot_dimension_numbers<[1], [0], [0], [1], [0, 0, 1, 1], [], []>} : vector<16x128xbf16>, vector<128x128xbf16>, vector<16x128xf32> -> vector<16x128xf32>
    %192 = arith.addf %187, %191 : vector<16x128xf32>
    %c0_202 = arith.constant 0 : index
    %c0_203 = arith.constant 0 : index
    %193 = vector.load %arg8[%c0_202, %c0_203] : memref<1x128xf32, #tpu.memory_space<vmem>>, vector<1x128xf32>
    %194 = vector.broadcast %193 : vector<1x128xf32> to vector<16x128xf32>
    %195 = arith.mulf %192, %194 : vector<16x128xf32>
    %c0_204 = arith.constant 0 : index
    %c0_205 = arith.constant 0 : index
    %196 = vector.load %arg9[%c0_204, %c0_205] : memref<1x128xf32, #tpu.memory_space<vmem>>, vector<1x128xf32>
    %197 = vector.broadcast %196 : vector<1x128xf32> to vector<16x128xf32>
    %198 = arith.addf %195, %197 : vector<16x128xf32>
    %c0_206 = arith.constant 0 : index
    %c0_207 = arith.constant 0 : index
    %c0_208 = arith.constant 0 : index
    %199 = vector.load %arg10[%c0_206, %c0_207, %c0_208] : memref<1x16x128xf32, #tpu.memory_space<vmem>>, vector<1x16x128xf32>
    %200 = vector.shape_cast %199 : vector<1x16x128xf32> to vector<16x128xf32>
    %201 = vector.shape_cast %198 : vector<16x128xf32> to vector<1x16x128xf32>
    tpu.vector_store %arg10[%c0_206, %c0_207, %c0_208], %201 {strides = array<i32>} : memref<1x16x128xf32, #tpu.memory_space<vmem>>, vector<1x16x128xf32>,
    return
  }
  func.func @transform_0(%arg0: i32, %arg1: i32) -> (i32, i32, i32, i32) {
    %c0_i32 = arith.constant 0 : i32
    %c0_i32_0 = arith.constant 0 : i32
    %c0_i32_1 = arith.constant 0 : i32
    return %arg0, %arg1, %c0_i32, %c0_i32_0 : i32, i32, i32, i32
  }
  func.func @transform_1(%arg0: i32, %arg1: i32) -> (i32, i32, i32) {
    %c0_i32 = arith.constant 0 : i32
    %c0_i32_0 = arith.constant 0 : i32
    %c0_i32_1 = arith.constant 0 : i32
    %c0_i32_2 = arith.constant 0 : i32
    return %c0_i32, %c0_i32_0, %c0_i32_1 : i32, i32, i32
  }
  func.func @transform_2(%arg0: i32, %arg1: i32) -> (i32, i32, i32, i32) {
    %c0_i32 = arith.constant 0 : i32
    %c0_i32_0 = arith.constant 0 : i32
    %c0_i32_1 = arith.constant 0 : i32
    %c0_i32_2 = arith.constant 0 : i32
    %c0_i32_3 = arith.constant 0 : i32
    return %c0_i32, %c0_i32_0, %c0_i32_1, %c0_i32_2 : i32, i32, i32, i32
  }
  func.func @transform_3(%arg0: i32, %arg1: i32) -> (i32, i32, i32) {
    %c0_i32 = arith.constant 0 : i32
    %c0_i32_0 = arith.constant 0 : i32
    %c0_i32_1 = arith.constant 0 : i32
    %c0_i32_2 = arith.constant 0 : i32
    return %c0_i32, %c0_i32_0, %c0_i32_1 : i32, i32, i32
  }
  func.func @transform_4(%arg0: i32, %arg1: i32) -> (i32, i32, i32) {
    %c0_i32 = arith.constant 0 : i32
    %c0_i32_0 = arith.constant 0 : i32
    %c0_i32_1 = arith.constant 0 : i32
    %c0_i32_2 = arith.constant 0 : i32
    return %c0_i32, %c0_i32_0, %c0_i32_1 : i32, i32, i32
  }
  func.func @transform_5(%arg0: i32, %arg1: i32) -> (i32, i32, i32) {
    %c0_i32 = arith.constant 0 : i32
    %c0_i32_0 = arith.constant 0 : i32
    %c0_i32_1 = arith.constant 0 : i32
    %c0_i32_2 = arith.constant 0 : i32
    return %c0_i32, %c0_i32_0, %c0_i32_1 : i32, i32, i32
  }
  func.func @transform_6(%arg0: i32, %arg1: i32) -> (i32, i32) {
    %c0_i32 = arith.constant 0 : i32
    %c0_i32_0 = arith.constant 0 : i32
    %c0_i32_1 = arith.constant 0 : i32
    return %c0_i32, %c0_i32_0 : i32, i32
  }
  func.func @transform_7(%arg0: i32, %arg1: i32) -> (i32, i32) {
    %c0_i32 = arith.constant 0 : i32
    %c0_i32_0 = arith.constant 0 : i32
    %c0_i32_1 = arith.constant 0 : i32
    return %c0_i32, %c0_i32_0 : i32, i32
  }
  func.func @transform_8(%arg0: i32, %arg1: i32) -> (i32, i32, i32) {
    %c0_i32 = arith.constant 0 : i32
    %c0_i32_0 = arith.constant 0 : i32
    return %arg0, %arg1, %c0_i32 : i32, i32, i32
  }
}

module attributes {stable_mosaic.version = 11 : i64} {
  func.func @_postnet_fused_kernel(%arg0: i32, %arg1: i32, %arg2: memref<1x1x36x128xbf16, #tpu.memory_space<vmem>>, %arg3: memref<5x128x128xbf16, #tpu.memory_space<vmem>>, %arg4: memref<3x5x128x128xbf16, #tpu.memory_space<vmem>>, %arg5: memref<5x128x128xbf16, #tpu.memory_space<vmem>>, %arg6: memref<4x1x128xf32, #tpu.memory_space<vmem>>, %arg7: memref<4x1x128xf32, #tpu.memory_space<vmem>>, %arg8: memref<1x128xf32, #tpu.memory_space<vmem>>, %arg9: memref<1x128xf32, #tpu.memory_space<vmem>>, %arg10: memref<1x16x128xf32, #tpu.memory_space<vmem>>, %arg11: memref<36x128xbf16, #tpu.memory_space<vmem>>, %arg12: memref<36x128xbf16, #tpu.memory_space<vmem>>) attributes {dimension_semantics = [#tpu.dimension_semantics<parallel>, #tpu.dimension_semantics<parallel>], iteration_bounds = array<i64: 2, 1>, scalar_prefetch = 0 : i64, scratch_operands = 2 : i64, tpu.core_type = #tpu.core_type<tc>, window_params = [{transform_indices = @transform_0, window_bounds = array<i64: 1, 1, 36, 128>}, {pipeline_mode = #tpu.pipeline_mode<synchronous>, transform_indices = @transform_1, window_bounds = array<i64: 5, 128, 128>}, {pipeline_mode = #tpu.pipeline_mode<synchronous>, transform_indices = @transform_2, window_bounds = array<i64: 3, 5, 128, 128>}, {pipeline_mode = #tpu.pipeline_mode<synchronous>, transform_indices = @transform_3, window_bounds = array<i64: 5, 128, 128>}, {pipeline_mode = #tpu.pipeline_mode<synchronous>, transform_indices = @transform_4, window_bounds = array<i64: 4, 1, 128>}, {pipeline_mode = #tpu.pipeline_mode<synchronous>, transform_indices = @transform_5, window_bounds = array<i64: 4, 1, 128>}, {pipeline_mode = #tpu.pipeline_mode<synchronous>, transform_indices = @transform_6, window_bounds = array<i64: 1, 128>}, {pipeline_mode = #tpu.pipeline_mode<synchronous>, transform_indices = @transform_7, window_bounds = array<i64: 1, 128>}, {transform_indices = @transform_8, window_bounds = array<i64: 1, 16, 128>}]} {
    %c16_i32 = arith.constant 16 : i32
    %0 = arith.muli %arg1, %c16_i32 : i32
    %1 = tpu.iota {dimensions = array<i32: 0>} : vector<36x1xi32>
    %c10_i32 = arith.constant 10 : i32
    %2 = arith.subi %0, %c10_i32 : i32
    %3 = vector.broadcast %2 : i32 to vector<36x1xi32>
    %4 = arith.addi %1, %3 : vector<36x1xi32>
    %c0_i32 = arith.constant 0 : i32
    %5 = vector.broadcast %c0_i32 : i32 to vector<36x1xi32>
    %6 = arith.cmpi sge, %4, %5 : vector<36x1xi32>
    %c16_i32_0 = arith.constant 16 : i32
    %7 = vector.broadcast %c16_i32_0 : i32 to vector<36x1xi32>
    %8 = arith.cmpi slt, %4, %7 : vector<36x1xi32>
    %9 = arith.andi %6, %8 : vector<36x1xi1>
    %10 = arith.extui %9 : vector<36x1xi1> to vector<36x1xi32>
    %11 = arith.sitofp %10 : vector<36x1xi32> to vector<36x1xf32>
    %c0 = arith.constant 0 : index
    %c0_1 = arith.constant 0 : index
    %c0_2 = arith.constant 0 : index
    %c0_3 = arith.constant 0 : index
    %12 = vector.load %arg2[%c0, %c0_1, %c0_2, %c0_3] : memref<1x1x36x128xbf16, #tpu.memory_space<vmem>>, vector<1x1x32x128xbf16>
    %13 = vector.shape_cast %12 : vector<1x1x32x128xbf16> to vector<32x128xbf16>
    %c0_4 = arith.constant 0 : index
    %c0_5 = arith.constant 0 : index
    %c0_6 = arith.constant 0 : index
    %14 = vector.load %arg3[%c0_4, %c0_5, %c0_6] : memref<5x128x128xbf16, #tpu.memory_space<vmem>>, vector<1x128x128xbf16>
    %15 = vector.shape_cast %14 : vector<1x128x128xbf16> to vector<128x128xbf16>
    %cst = arith.constant dense<0.000000e+00> : vector<32x128xf32>
    %16 = tpu.matmul %13, %15, %cst {dimension_numbers = #tpu.dot_dimension_numbers<[1], [0], [0], [1], [0, 0, 1, 1], [], []>} : vector<32x128xbf16>, vector<128x128xbf16>, vector<32x128xf32> -> vector<32x128xf32>
    %c0_7 = arith.constant 0 : index
    %c0_8 = arith.constant 0 : index
    %c1 = arith.constant 1 : index
    %c0_9 = arith.constant 0 : index
    %17 = vector.load %arg2[%c0_7, %c0_8, %c1, %c0_9] : memref<1x1x36x128xbf16, #tpu.memory_space<vmem>>, vector<1x1x32x128xbf16>
    %18 = vector.shape_cast %17 : vector<1x1x32x128xbf16> to vector<32x128xbf16>
    %c1_10 = arith.constant 1 : index
    %c0_11 = arith.constant 0 : index
    %c0_12 = arith.constant 0 : index
    %19 = vector.load %arg3[%c1_10, %c0_11, %c0_12] : memref<5x128x128xbf16, #tpu.memory_space<vmem>>, vector<1x128x128xbf16>
    %20 = vector.shape_cast %19 : vector<1x128x128xbf16> to vector<128x128xbf16>
    %cst_13 = arith.constant dense<0.000000e+00> : vector<32x128xf32>
    %21 = tpu.matmul %18, %20, %cst_13 {dimension_numbers = #tpu.dot_dimension_numbers<[1], [0], [0], [1], [0, 0, 1, 1], [], []>} : vector<32x128xbf16>, vector<128x128xbf16>, vector<32x128xf32> -> vector<32x128xf32>
    %22 = arith.addf %16, %21 : vector<32x128xf32>
    %c0_14 = arith.constant 0 : index
    %c0_15 = arith.constant 0 : index
    %c2 = arith.constant 2 : index
    %c0_16 = arith.constant 0 : index
    %23 = vector.load %arg2[%c0_14, %c0_15, %c2, %c0_16] : memref<1x1x36x128xbf16, #tpu.memory_space<vmem>>, vector<1x1x32x128xbf16>
    %24 = vector.shape_cast %23 : vector<1x1x32x128xbf16> to vector<32x128xbf16>
    %c2_17 = arith.constant 2 : index
    %c0_18 = arith.constant 0 : index
    %c0_19 = arith.constant 0 : index
    %25 = vector.load %arg3[%c2_17, %c0_18, %c0_19] : memref<5x128x128xbf16, #tpu.memory_space<vmem>>, vector<1x128x128xbf16>
    %26 = vector.shape_cast %25 : vector<1x128x128xbf16> to vector<128x128xbf16>
    %cst_20 = arith.constant dense<0.000000e+00> : vector<32x128xf32>
    %27 = tpu.matmul %24, %26, %cst_20 {dimension_numbers = #tpu.dot_dimension_numbers<[1], [0], [0], [1], [0, 0, 1, 1], [], []>} : vector<32x128xbf16>, vector<128x128xbf16>, vector<32x128xf32> -> vector<32x128xf32>
    %28 = arith.addf %22, %27 : vector<32x128xf32>
    %c0_21 = arith.constant 0 : index
    %c0_22 = arith.constant 0 : index
    %c3 = arith.constant 3 : index
    %c0_23 = arith.constant 0 : index
    %29 = vector.load %arg2[%c0_21, %c0_22, %c3, %c0_23] : memref<1x1x36x128xbf16, #tpu.memory_space<vmem>>, vector<1x1x32x128xbf16>
    %30 = vector.shape_cast %29 : vector<1x1x32x128xbf16> to vector<32x128xbf16>
    %c3_24 = arith.constant 3 : index
    %c0_25 = arith.constant 0 : index
    %c0_26 = arith.constant 0 : index
    %31 = vector.load %arg3[%c3_24, %c0_25, %c0_26] : memref<5x128x128xbf16, #tpu.memory_space<vmem>>, vector<1x128x128xbf16>
    %32 = vector.shape_cast %31 : vector<1x128x128xbf16> to vector<128x128xbf16>
    %cst_27 = arith.constant dense<0.000000e+00> : vector<32x128xf32>
    %33 = tpu.matmul %30, %32, %cst_27 {dimension_numbers = #tpu.dot_dimension_numbers<[1], [0], [0], [1], [0, 0, 1, 1], [], []>} : vector<32x128xbf16>, vector<128x128xbf16>, vector<32x128xf32> -> vector<32x128xf32>
    %34 = arith.addf %28, %33 : vector<32x128xf32>
    %c0_28 = arith.constant 0 : index
    %c0_29 = arith.constant 0 : index
    %c4 = arith.constant 4 : index
    %c0_30 = arith.constant 0 : index
    %35 = vector.load %arg2[%c0_28, %c0_29, %c4, %c0_30] : memref<1x1x36x128xbf16, #tpu.memory_space<vmem>>, vector<1x1x32x128xbf16>
    %36 = vector.shape_cast %35 : vector<1x1x32x128xbf16> to vector<32x128xbf16>
    %c4_31 = arith.constant 4 : index
    %c0_32 = arith.constant 0 : index
    %c0_33 = arith.constant 0 : index
    %37 = vector.load %arg3[%c4_31, %c0_32, %c0_33] : memref<5x128x128xbf16, #tpu.memory_space<vmem>>, vector<1x128x128xbf16>
    %38 = vector.shape_cast %37 : vector<1x128x128xbf16> to vector<128x128xbf16>
    %cst_34 = arith.constant dense<0.000000e+00> : vector<32x128xf32>
    %39 = tpu.matmul %36, %38, %cst_34 {dimension_numbers = #tpu.dot_dimension_numbers<[1], [0], [0], [1], [0, 0, 1, 1], [], []>} : vector<32x128xbf16>, vector<128x128xbf16>, vector<32x128xf32> -> vector<32x128xf32>
    %40 = arith.addf %34, %39 : vector<32x128xf32>
    %c0_35 = arith.constant 0 : index
    %c0_36 = arith.constant 0 : index
    %c0_37 = arith.constant 0 : index
    %41 = vector.load %arg6[%c0_35, %c0_36, %c0_37] : memref<4x1x128xf32, #tpu.memory_space<vmem>>, vector<1x1x128xf32>
    %42 = vector.shape_cast %41 : vector<1x1x128xf32> to vector<1x128xf32>
    %43 = vector.broadcast %42 : vector<1x128xf32> to vector<32x128xf32>
    %44 = arith.mulf %40, %43 : vector<32x128xf32>
    %c0_38 = arith.constant 0 : index
    %c0_39 = arith.constant 0 : index
    %c0_40 = arith.constant 0 : index
    %45 = vector.load %arg7[%c0_38, %c0_39, %c0_40] : memref<4x1x128xf32, #tpu.memory_space<vmem>>, vector<1x1x128xf32>
    %46 = vector.shape_cast %45 : vector<1x1x128xf32> to vector<1x128xf32>
    %47 = vector.broadcast %46 : vector<1x128xf32> to vector<32x128xf32>
    %48 = arith.addf %44, %47 : vector<32x128xf32>
    %49 = math.tanh %48 : vector<32x128xf32>
    %50 = vector.extract_strided_slice %11 {offsets = [2, 0], sizes = [32, 1], strides = [1, 1]} : vector<36x1xf32> to vector<32x1xf32>
    %51 = vector.broadcast %50 : vector<32x1xf32> to vector<32x128xf32>
    %52 = arith.mulf %49, %51 : vector<32x128xf32>
    %53 = arith.truncf %52 : vector<32x128xf32> to vector<32x128xbf16>
    %c0_41 = arith.constant 0 : index
    %c0_42 = arith.constant 0 : index
    %54 = vector.load %arg11[%c0_41, %c0_42] : memref<36x128xbf16, #tpu.memory_space<vmem>>, vector<32x128xbf16>
    tpu.vector_store %arg11[%c0_41, %c0_42], %53 {strides = array<i32>} : memref<36x128xbf16, #tpu.memory_space<vmem>>, vector<32x128xbf16>,
    %c0_43 = arith.constant 0 : index
    %c0_44 = arith.constant 0 : index
    %55 = vector.load %arg11[%c0_43, %c0_44] : memref<36x128xbf16, #tpu.memory_space<vmem>>, vector<28x128xbf16>
    %c0_45 = arith.constant 0 : index
    %c0_46 = arith.constant 0 : index
    %c0_47 = arith.constant 0 : index
    %c0_48 = arith.constant 0 : index
    %56 = vector.load %arg4[%c0_45, %c0_46, %c0_47, %c0_48] : memref<3x5x128x128xbf16, #tpu.memory_space<vmem>>, vector<1x1x128x128xbf16>
    %57 = vector.shape_cast %56 : vector<1x1x128x128xbf16> to vector<128x128xbf16>
    %cst_49 = arith.constant dense<0.000000e+00> : vector<28x128xf32>
    %58 = tpu.matmul %55, %57, %cst_49 {dimension_numbers = #tpu.dot_dimension_numbers<[1], [0], [0], [1], [0, 0, 1, 1], [], []>} : vector<28x128xbf16>, vector<128x128xbf16>, vector<28x128xf32> -> vector<28x128xf32>
    %c1_50 = arith.constant 1 : index
    %c0_51 = arith.constant 0 : index
    %59 = vector.load %arg11[%c1_50, %c0_51] : memref<36x128xbf16, #tpu.memory_space<vmem>>, vector<28x128xbf16>
    %c0_52 = arith.constant 0 : index
    %c1_53 = arith.constant 1 : index
    %c0_54 = arith.constant 0 : index
    %c0_55 = arith.constant 0 : index
    %60 = vector.load %arg4[%c0_52, %c1_53, %c0_54, %c0_55] : memref<3x5x128x128xbf16, #tpu.memory_space<vmem>>, vector<1x1x128x128xbf16>
    %61 = vector.shape_cast %60 : vector<1x1x128x128xbf16> to vector<128x128xbf16>
    %cst_56 = arith.constant dense<0.000000e+00> : vector<28x128xf32>
    %62 = tpu.matmul %59, %61, %cst_56 {dimension_numbers = #tpu.dot_dimension_numbers<[1], [0], [0], [1], [0, 0, 1, 1], [], []>} : vector<28x128xbf16>, vector<128x128xbf16>, vector<28x128xf32> -> vector<28x128xf32>
    %63 = arith.addf %58, %62 : vector<28x128xf32>
    %c2_57 = arith.constant 2 : index
    %c0_58 = arith.constant 0 : index
    %64 = vector.load %arg11[%c2_57, %c0_58] : memref<36x128xbf16, #tpu.memory_space<vmem>>, vector<28x128xbf16>
    %c0_59 = arith.constant 0 : index
    %c2_60 = arith.constant 2 : index
    %c0_61 = arith.constant 0 : index
    %c0_62 = arith.constant 0 : index
    %65 = vector.load %arg4[%c0_59, %c2_60, %c0_61, %c0_62] : memref<3x5x128x128xbf16, #tpu.memory_space<vmem>>, vector<1x1x128x128xbf16>
    %66 = vector.shape_cast %65 : vector<1x1x128x128xbf16> to vector<128x128xbf16>
    %cst_63 = arith.constant dense<0.000000e+00> : vector<28x128xf32>
    %67 = tpu.matmul %64, %66, %cst_63 {dimension_numbers = #tpu.dot_dimension_numbers<[1], [0], [0], [1], [0, 0, 1, 1], [], []>} : vector<28x128xbf16>, vector<128x128xbf16>, vector<28x128xf32> -> vector<28x128xf32>
    %68 = arith.addf %63, %67 : vector<28x128xf32>
    %c3_64 = arith.constant 3 : index
    %c0_65 = arith.constant 0 : index
    %69 = vector.load %arg11[%c3_64, %c0_65] : memref<36x128xbf16, #tpu.memory_space<vmem>>, vector<28x128xbf16>
    %c0_66 = arith.constant 0 : index
    %c3_67 = arith.constant 3 : index
    %c0_68 = arith.constant 0 : index
    %c0_69 = arith.constant 0 : index
    %70 = vector.load %arg4[%c0_66, %c3_67, %c0_68, %c0_69] : memref<3x5x128x128xbf16, #tpu.memory_space<vmem>>, vector<1x1x128x128xbf16>
    %71 = vector.shape_cast %70 : vector<1x1x128x128xbf16> to vector<128x128xbf16>
    %cst_70 = arith.constant dense<0.000000e+00> : vector<28x128xf32>
    %72 = tpu.matmul %69, %71, %cst_70 {dimension_numbers = #tpu.dot_dimension_numbers<[1], [0], [0], [1], [0, 0, 1, 1], [], []>} : vector<28x128xbf16>, vector<128x128xbf16>, vector<28x128xf32> -> vector<28x128xf32>
    %73 = arith.addf %68, %72 : vector<28x128xf32>
    %c4_71 = arith.constant 4 : index
    %c0_72 = arith.constant 0 : index
    %74 = vector.load %arg11[%c4_71, %c0_72] : memref<36x128xbf16, #tpu.memory_space<vmem>>, vector<28x128xbf16>
    %c0_73 = arith.constant 0 : index
    %c4_74 = arith.constant 4 : index
    %c0_75 = arith.constant 0 : index
    %c0_76 = arith.constant 0 : index
    %75 = vector.load %arg4[%c0_73, %c4_74, %c0_75, %c0_76] : memref<3x5x128x128xbf16, #tpu.memory_space<vmem>>, vector<1x1x128x128xbf16>
    %76 = vector.shape_cast %75 : vector<1x1x128x128xbf16> to vector<128x128xbf16>
    %cst_77 = arith.constant dense<0.000000e+00> : vector<28x128xf32>
    %77 = tpu.matmul %74, %76, %cst_77 {dimension_numbers = #tpu.dot_dimension_numbers<[1], [0], [0], [1], [0, 0, 1, 1], [], []>} : vector<28x128xbf16>, vector<128x128xbf16>, vector<28x128xf32> -> vector<28x128xf32>
    %78 = arith.addf %73, %77 : vector<28x128xf32>
    %c1_78 = arith.constant 1 : index
    %c0_79 = arith.constant 0 : index
    %c0_80 = arith.constant 0 : index
    %79 = vector.load %arg6[%c1_78, %c0_79, %c0_80] : memref<4x1x128xf32, #tpu.memory_space<vmem>>, vector<1x1x128xf32>
    %80 = vector.shape_cast %79 : vector<1x1x128xf32> to vector<1x128xf32>
    %81 = vector.broadcast %80 : vector<1x128xf32> to vector<28x128xf32>
    %82 = arith.mulf %78, %81 : vector<28x128xf32>
    %c1_81 = arith.constant 1 : index
    %c0_82 = arith.constant 0 : index
    %c0_83 = arith.constant 0 : index
    %83 = vector.load %arg7[%c1_81, %c0_82, %c0_83] : memref<4x1x128xf32, #tpu.memory_space<vmem>>, vector<1x1x128xf32>
    %84 = vector.shape_cast %83 : vector<1x1x128xf32> to vector<1x128xf32>
    %85 = vector.broadcast %84 : vector<1x128xf32> to vector<28x128xf32>
    %86 = arith.addf %82, %85 : vector<28x128xf32>
    %87 = math.tanh %86 : vector<28x128xf32>
    %88 = vector.extract_strided_slice %11 {offsets = [4, 0], sizes = [28, 1], strides = [1, 1]} : vector<36x1xf32> to vector<28x1xf32>
    %89 = vector.broadcast %88 : vector<28x1xf32> to vector<28x128xf32>
    %90 = arith.mulf %87, %89 : vector<28x128xf32>
    %91 = arith.truncf %90 : vector<28x128xf32> to vector<28x128xbf16>
    %c0_84 = arith.constant 0 : index
    %c0_85 = arith.constant 0 : index
    %92 = vector.load %arg12[%c0_84, %c0_85] : memref<36x128xbf16, #tpu.memory_space<vmem>>, vector<28x128xbf16>
    tpu.vector_store %arg12[%c0_84, %c0_85], %91 {strides = array<i32>} : memref<36x128xbf16, #tpu.memory_space<vmem>>, vector<28x128xbf16>,
    %c0_86 = arith.constant 0 : index
    %c0_87 = arith.constant 0 : index
    %93 = vector.load %arg12[%c0_86, %c0_87] : memref<36x128xbf16, #tpu.memory_space<vmem>>, vector<24x128xbf16>
    %c1_88 = arith.constant 1 : index
    %c0_89 = arith.constant 0 : index
    %c0_90 = arith.constant 0 : index
    %c0_91 = arith.constant 0 : index
    %94 = vector.load %arg4[%c1_88, %c0_89, %c0_90, %c0_91] : memref<3x5x128x128xbf16, #tpu.memory_space<vmem>>, vector<1x1x128x128xbf16>
    %95 = vector.shape_cast %94 : vector<1x1x128x128xbf16> to vector<128x128xbf16>
    %cst_92 = arith.constant dense<0.000000e+00> : vector<24x128xf32>
    %96 = tpu.matmul %93, %95, %cst_92 {dimension_numbers = #tpu.dot_dimension_numbers<[1], [0], [0], [1], [0, 0, 1, 1], [], []>} : vector<24x128xbf16>, vector<128x128xbf16>, vector<24x128xf32> -> vector<24x128xf32>
    %c1_93 = arith.constant 1 : index
    %c0_94 = arith.constant 0 : index
    %97 = vector.load %arg12[%c1_93, %c0_94] : memref<36x128xbf16, #tpu.memory_space<vmem>>, vector<24x128xbf16>
    %c1_95 = arith.constant 1 : index
    %c1_96 = arith.constant 1 : index
    %c0_97 = arith.constant 0 : index
    %c0_98 = arith.constant 0 : index
    %98 = vector.load %arg4[%c1_95, %c1_96, %c0_97, %c0_98] : memref<3x5x128x128xbf16, #tpu.memory_space<vmem>>, vector<1x1x128x128xbf16>
    %99 = vector.shape_cast %98 : vector<1x1x128x128xbf16> to vector<128x128xbf16>
    %cst_99 = arith.constant dense<0.000000e+00> : vector<24x128xf32>
    %100 = tpu.matmul %97, %99, %cst_99 {dimension_numbers = #tpu.dot_dimension_numbers<[1], [0], [0], [1], [0, 0, 1, 1], [], []>} : vector<24x128xbf16>, vector<128x128xbf16>, vector<24x128xf32> -> vector<24x128xf32>
    %101 = arith.addf %96, %100 : vector<24x128xf32>
    %c2_100 = arith.constant 2 : index
    %c0_101 = arith.constant 0 : index
    %102 = vector.load %arg12[%c2_100, %c0_101] : memref<36x128xbf16, #tpu.memory_space<vmem>>, vector<24x128xbf16>
    %c1_102 = arith.constant 1 : index
    %c2_103 = arith.constant 2 : index
    %c0_104 = arith.constant 0 : index
    %c0_105 = arith.constant 0 : index
    %103 = vector.load %arg4[%c1_102, %c2_103, %c0_104, %c0_105] : memref<3x5x128x128xbf16, #tpu.memory_space<vmem>>, vector<1x1x128x128xbf16>
    %104 = vector.shape_cast %103 : vector<1x1x128x128xbf16> to vector<128x128xbf16>
    %cst_106 = arith.constant dense<0.000000e+00> : vector<24x128xf32>
    %105 = tpu.matmul %102, %104, %cst_106 {dimension_numbers = #tpu.dot_dimension_numbers<[1], [0], [0], [1], [0, 0, 1, 1], [], []>} : vector<24x128xbf16>, vector<128x128xbf16>, vector<24x128xf32> -> vector<24x128xf32>
    %106 = arith.addf %101, %105 : vector<24x128xf32>
    %c3_107 = arith.constant 3 : index
    %c0_108 = arith.constant 0 : index
    %107 = vector.load %arg12[%c3_107, %c0_108] : memref<36x128xbf16, #tpu.memory_space<vmem>>, vector<24x128xbf16>
    %c1_109 = arith.constant 1 : index
    %c3_110 = arith.constant 3 : index
    %c0_111 = arith.constant 0 : index
    %c0_112 = arith.constant 0 : index
    %108 = vector.load %arg4[%c1_109, %c3_110, %c0_111, %c0_112] : memref<3x5x128x128xbf16, #tpu.memory_space<vmem>>, vector<1x1x128x128xbf16>
    %109 = vector.shape_cast %108 : vector<1x1x128x128xbf16> to vector<128x128xbf16>
    %cst_113 = arith.constant dense<0.000000e+00> : vector<24x128xf32>
    %110 = tpu.matmul %107, %109, %cst_113 {dimension_numbers = #tpu.dot_dimension_numbers<[1], [0], [0], [1], [0, 0, 1, 1], [], []>} : vector<24x128xbf16>, vector<128x128xbf16>, vector<24x128xf32> -> vector<24x128xf32>
    %111 = arith.addf %106, %110 : vector<24x128xf32>
    %c4_114 = arith.constant 4 : index
    %c0_115 = arith.constant 0 : index
    %112 = vector.load %arg12[%c4_114, %c0_115] : memref<36x128xbf16, #tpu.memory_space<vmem>>, vector<24x128xbf16>
    %c1_116 = arith.constant 1 : index
    %c4_117 = arith.constant 4 : index
    %c0_118 = arith.constant 0 : index
    %c0_119 = arith.constant 0 : index
    %113 = vector.load %arg4[%c1_116, %c4_117, %c0_118, %c0_119] : memref<3x5x128x128xbf16, #tpu.memory_space<vmem>>, vector<1x1x128x128xbf16>
    %114 = vector.shape_cast %113 : vector<1x1x128x128xbf16> to vector<128x128xbf16>
    %cst_120 = arith.constant dense<0.000000e+00> : vector<24x128xf32>
    %115 = tpu.matmul %112, %114, %cst_120 {dimension_numbers = #tpu.dot_dimension_numbers<[1], [0], [0], [1], [0, 0, 1, 1], [], []>} : vector<24x128xbf16>, vector<128x128xbf16>, vector<24x128xf32> -> vector<24x128xf32>
    %116 = arith.addf %111, %115 : vector<24x128xf32>
    %c2_121 = arith.constant 2 : index
    %c0_122 = arith.constant 0 : index
    %c0_123 = arith.constant 0 : index
    %117 = vector.load %arg6[%c2_121, %c0_122, %c0_123] : memref<4x1x128xf32, #tpu.memory_space<vmem>>, vector<1x1x128xf32>
    %118 = vector.shape_cast %117 : vector<1x1x128xf32> to vector<1x128xf32>
    %119 = vector.broadcast %118 : vector<1x128xf32> to vector<24x128xf32>
    %120 = arith.mulf %116, %119 : vector<24x128xf32>
    %c2_124 = arith.constant 2 : index
    %c0_125 = arith.constant 0 : index
    %c0_126 = arith.constant 0 : index
    %121 = vector.load %arg7[%c2_124, %c0_125, %c0_126] : memref<4x1x128xf32, #tpu.memory_space<vmem>>, vector<1x1x128xf32>
    %122 = vector.shape_cast %121 : vector<1x1x128xf32> to vector<1x128xf32>
    %123 = vector.broadcast %122 : vector<1x128xf32> to vector<24x128xf32>
    %124 = arith.addf %120, %123 : vector<24x128xf32>
    %125 = math.tanh %124 : vector<24x128xf32>
    %126 = vector.extract_strided_slice %11 {offsets = [6, 0], sizes = [24, 1], strides = [1, 1]} : vector<36x1xf32> to vector<24x1xf32>
    %127 = vector.broadcast %126 : vector<24x1xf32> to vector<24x128xf32>
    %128 = arith.mulf %125, %127 : vector<24x128xf32>
    %129 = arith.truncf %128 : vector<24x128xf32> to vector<24x128xbf16>
    %c0_127 = arith.constant 0 : index
    %c0_128 = arith.constant 0 : index
    %130 = vector.load %arg11[%c0_127, %c0_128] : memref<36x128xbf16, #tpu.memory_space<vmem>>, vector<24x128xbf16>
    tpu.vector_store %arg11[%c0_127, %c0_128], %129 {strides = array<i32>} : memref<36x128xbf16, #tpu.memory_space<vmem>>, vector<24x128xbf16>,
    %c0_129 = arith.constant 0 : index
    %c0_130 = arith.constant 0 : index
    %131 = vector.load %arg11[%c0_129, %c0_130] : memref<36x128xbf16, #tpu.memory_space<vmem>>, vector<20x128xbf16>
    %c2_131 = arith.constant 2 : index
    %c0_132 = arith.constant 0 : index
    %c0_133 = arith.constant 0 : index
    %c0_134 = arith.constant 0 : index
    %132 = vector.load %arg4[%c2_131, %c0_132, %c0_133, %c0_134] : memref<3x5x128x128xbf16, #tpu.memory_space<vmem>>, vector<1x1x128x128xbf16>
    %133 = vector.shape_cast %132 : vector<1x1x128x128xbf16> to vector<128x128xbf16>
    %cst_135 = arith.constant dense<0.000000e+00> : vector<20x128xf32>
    %134 = tpu.matmul %131, %133, %cst_135 {dimension_numbers = #tpu.dot_dimension_numbers<[1], [0], [0], [1], [0, 0, 1, 1], [], []>} : vector<20x128xbf16>, vector<128x128xbf16>, vector<20x128xf32> -> vector<20x128xf32>
    %c1_136 = arith.constant 1 : index
    %c0_137 = arith.constant 0 : index
    %135 = vector.load %arg11[%c1_136, %c0_137] : memref<36x128xbf16, #tpu.memory_space<vmem>>, vector<20x128xbf16>
    %c2_138 = arith.constant 2 : index
    %c1_139 = arith.constant 1 : index
    %c0_140 = arith.constant 0 : index
    %c0_141 = arith.constant 0 : index
    %136 = vector.load %arg4[%c2_138, %c1_139, %c0_140, %c0_141] : memref<3x5x128x128xbf16, #tpu.memory_space<vmem>>, vector<1x1x128x128xbf16>
    %137 = vector.shape_cast %136 : vector<1x1x128x128xbf16> to vector<128x128xbf16>
    %cst_142 = arith.constant dense<0.000000e+00> : vector<20x128xf32>
    %138 = tpu.matmul %135, %137, %cst_142 {dimension_numbers = #tpu.dot_dimension_numbers<[1], [0], [0], [1], [0, 0, 1, 1], [], []>} : vector<20x128xbf16>, vector<128x128xbf16>, vector<20x128xf32> -> vector<20x128xf32>
    %139 = arith.addf %134, %138 : vector<20x128xf32>
    %c2_143 = arith.constant 2 : index
    %c0_144 = arith.constant 0 : index
    %140 = vector.load %arg11[%c2_143, %c0_144] : memref<36x128xbf16, #tpu.memory_space<vmem>>, vector<20x128xbf16>
    %c2_145 = arith.constant 2 : index
    %c2_146 = arith.constant 2 : index
    %c0_147 = arith.constant 0 : index
    %c0_148 = arith.constant 0 : index
    %141 = vector.load %arg4[%c2_145, %c2_146, %c0_147, %c0_148] : memref<3x5x128x128xbf16, #tpu.memory_space<vmem>>, vector<1x1x128x128xbf16>
    %142 = vector.shape_cast %141 : vector<1x1x128x128xbf16> to vector<128x128xbf16>
    %cst_149 = arith.constant dense<0.000000e+00> : vector<20x128xf32>
    %143 = tpu.matmul %140, %142, %cst_149 {dimension_numbers = #tpu.dot_dimension_numbers<[1], [0], [0], [1], [0, 0, 1, 1], [], []>} : vector<20x128xbf16>, vector<128x128xbf16>, vector<20x128xf32> -> vector<20x128xf32>
    %144 = arith.addf %139, %143 : vector<20x128xf32>
    %c3_150 = arith.constant 3 : index
    %c0_151 = arith.constant 0 : index
    %145 = vector.load %arg11[%c3_150, %c0_151] : memref<36x128xbf16, #tpu.memory_space<vmem>>, vector<20x128xbf16>
    %c2_152 = arith.constant 2 : index
    %c3_153 = arith.constant 3 : index
    %c0_154 = arith.constant 0 : index
    %c0_155 = arith.constant 0 : index
    %146 = vector.load %arg4[%c2_152, %c3_153, %c0_154, %c0_155] : memref<3x5x128x128xbf16, #tpu.memory_space<vmem>>, vector<1x1x128x128xbf16>
    %147 = vector.shape_cast %146 : vector<1x1x128x128xbf16> to vector<128x128xbf16>
    %cst_156 = arith.constant dense<0.000000e+00> : vector<20x128xf32>
    %148 = tpu.matmul %145, %147, %cst_156 {dimension_numbers = #tpu.dot_dimension_numbers<[1], [0], [0], [1], [0, 0, 1, 1], [], []>} : vector<20x128xbf16>, vector<128x128xbf16>, vector<20x128xf32> -> vector<20x128xf32>
    %149 = arith.addf %144, %148 : vector<20x128xf32>
    %c4_157 = arith.constant 4 : index
    %c0_158 = arith.constant 0 : index
    %150 = vector.load %arg11[%c4_157, %c0_158] : memref<36x128xbf16, #tpu.memory_space<vmem>>, vector<20x128xbf16>
    %c2_159 = arith.constant 2 : index
    %c4_160 = arith.constant 4 : index
    %c0_161 = arith.constant 0 : index
    %c0_162 = arith.constant 0 : index
    %151 = vector.load %arg4[%c2_159, %c4_160, %c0_161, %c0_162] : memref<3x5x128x128xbf16, #tpu.memory_space<vmem>>, vector<1x1x128x128xbf16>
    %152 = vector.shape_cast %151 : vector<1x1x128x128xbf16> to vector<128x128xbf16>
    %cst_163 = arith.constant dense<0.000000e+00> : vector<20x128xf32>
    %153 = tpu.matmul %150, %152, %cst_163 {dimension_numbers = #tpu.dot_dimension_numbers<[1], [0], [0], [1], [0, 0, 1, 1], [], []>} : vector<20x128xbf16>, vector<128x128xbf16>, vector<20x128xf32> -> vector<20x128xf32>
    %154 = arith.addf %149, %153 : vector<20x128xf32>
    %c3_164 = arith.constant 3 : index
    %c0_165 = arith.constant 0 : index
    %c0_166 = arith.constant 0 : index
    %155 = vector.load %arg6[%c3_164, %c0_165, %c0_166] : memref<4x1x128xf32, #tpu.memory_space<vmem>>, vector<1x1x128xf32>
    %156 = vector.shape_cast %155 : vector<1x1x128xf32> to vector<1x128xf32>
    %157 = vector.broadcast %156 : vector<1x128xf32> to vector<20x128xf32>
    %158 = arith.mulf %154, %157 : vector<20x128xf32>
    %c3_167 = arith.constant 3 : index
    %c0_168 = arith.constant 0 : index
    %c0_169 = arith.constant 0 : index
    %159 = vector.load %arg7[%c3_167, %c0_168, %c0_169] : memref<4x1x128xf32, #tpu.memory_space<vmem>>, vector<1x1x128xf32>
    %160 = vector.shape_cast %159 : vector<1x1x128xf32> to vector<1x128xf32>
    %161 = vector.broadcast %160 : vector<1x128xf32> to vector<20x128xf32>
    %162 = arith.addf %158, %161 : vector<20x128xf32>
    %163 = math.tanh %162 : vector<20x128xf32>
    %164 = vector.extract_strided_slice %11 {offsets = [8, 0], sizes = [20, 1], strides = [1, 1]} : vector<36x1xf32> to vector<20x1xf32>
    %165 = vector.broadcast %164 : vector<20x1xf32> to vector<20x128xf32>
    %166 = arith.mulf %163, %165 : vector<20x128xf32>
    %167 = arith.truncf %166 : vector<20x128xf32> to vector<20x128xbf16>
    %c0_170 = arith.constant 0 : index
    %c0_171 = arith.constant 0 : index
    %168 = vector.load %arg12[%c0_170, %c0_171] : memref<36x128xbf16, #tpu.memory_space<vmem>>, vector<20x128xbf16>
    tpu.vector_store %arg12[%c0_170, %c0_171], %167 {strides = array<i32>} : memref<36x128xbf16, #tpu.memory_space<vmem>>, vector<20x128xbf16>,
    %c0_172 = arith.constant 0 : index
    %c0_173 = arith.constant 0 : index
    %169 = vector.load %arg12[%c0_172, %c0_173] : memref<36x128xbf16, #tpu.memory_space<vmem>>, vector<16x128xbf16>
    %c0_174 = arith.constant 0 : index
    %c0_175 = arith.constant 0 : index
    %c0_176 = arith.constant 0 : index
    %170 = vector.load %arg5[%c0_174, %c0_175, %c0_176] : memref<5x128x128xbf16, #tpu.memory_space<vmem>>, vector<1x128x128xbf16>
    %171 = vector.shape_cast %170 : vector<1x128x128xbf16> to vector<128x128xbf16>
    %cst_177 = arith.constant dense<0.000000e+00> : vector<16x128xf32>
    %172 = tpu.matmul %169, %171, %cst_177 {dimension_numbers = #tpu.dot_dimension_numbers<[1], [0], [0], [1], [0, 0, 1, 1], [], []>} : vector<16x128xbf16>, vector<128x128xbf16>, vector<16x128xf32> -> vector<16x128xf32>
    %c1_178 = arith.constant 1 : index
    %c0_179 = arith.constant 0 : index
    %173 = vector.load %arg12[%c1_178, %c0_179] : memref<36x128xbf16, #tpu.memory_space<vmem>>, vector<16x128xbf16>
    %c1_180 = arith.constant 1 : index
    %c0_181 = arith.constant 0 : index
    %c0_182 = arith.constant 0 : index
    %174 = vector.load %arg5[%c1_180, %c0_181, %c0_182] : memref<5x128x128xbf16, #tpu.memory_space<vmem>>, vector<1x128x128xbf16>
    %175 = vector.shape_cast %174 : vector<1x128x128xbf16> to vector<128x128xbf16>
    %cst_183 = arith.constant dense<0.000000e+00> : vector<16x128xf32>
    %176 = tpu.matmul %173, %175, %cst_183 {dimension_numbers = #tpu.dot_dimension_numbers<[1], [0], [0], [1], [0, 0, 1, 1], [], []>} : vector<16x128xbf16>, vector<128x128xbf16>, vector<16x128xf32> -> vector<16x128xf32>
    %177 = arith.addf %172, %176 : vector<16x128xf32>
    %c2_184 = arith.constant 2 : index
    %c0_185 = arith.constant 0 : index
    %178 = vector.load %arg12[%c2_184, %c0_185] : memref<36x128xbf16, #tpu.memory_space<vmem>>, vector<16x128xbf16>
    %c2_186 = arith.constant 2 : index
    %c0_187 = arith.constant 0 : index
    %c0_188 = arith.constant 0 : index
    %179 = vector.load %arg5[%c2_186, %c0_187, %c0_188] : memref<5x128x128xbf16, #tpu.memory_space<vmem>>, vector<1x128x128xbf16>
    %180 = vector.shape_cast %179 : vector<1x128x128xbf16> to vector<128x128xbf16>
    %cst_189 = arith.constant dense<0.000000e+00> : vector<16x128xf32>
    %181 = tpu.matmul %178, %180, %cst_189 {dimension_numbers = #tpu.dot_dimension_numbers<[1], [0], [0], [1], [0, 0, 1, 1], [], []>} : vector<16x128xbf16>, vector<128x128xbf16>, vector<16x128xf32> -> vector<16x128xf32>
    %182 = arith.addf %177, %181 : vector<16x128xf32>
    %c3_190 = arith.constant 3 : index
    %c0_191 = arith.constant 0 : index
    %183 = vector.load %arg12[%c3_190, %c0_191] : memref<36x128xbf16, #tpu.memory_space<vmem>>, vector<16x128xbf16>
    %c3_192 = arith.constant 3 : index
    %c0_193 = arith.constant 0 : index
    %c0_194 = arith.constant 0 : index
    %184 = vector.load %arg5[%c3_192, %c0_193, %c0_194] : memref<5x128x128xbf16, #tpu.memory_space<vmem>>, vector<1x128x128xbf16>
    %185 = vector.shape_cast %184 : vector<1x128x128xbf16> to vector<128x128xbf16>
    %cst_195 = arith.constant dense<0.000000e+00> : vector<16x128xf32>
    %186 = tpu.matmul %183, %185, %cst_195 {dimension_numbers = #tpu.dot_dimension_numbers<[1], [0], [0], [1], [0, 0, 1, 1], [], []>} : vector<16x128xbf16>, vector<128x128xbf16>, vector<16x128xf32> -> vector<16x128xf32>
    %187 = arith.addf %182, %186 : vector<16x128xf32>
    %c4_196 = arith.constant 4 : index
    %c0_197 = arith.constant 0 : index
    %188 = vector.load %arg12[%c4_196, %c0_197] : memref<36x128xbf16, #tpu.memory_space<vmem>>, vector<16x128xbf16>
    %c4_198 = arith.constant 4 : index
    %c0_199 = arith.constant 0 : index
    %c0_200 = arith.constant 0 : index
    %189 = vector.load %arg5[%c4_198, %c0_199, %c0_200] : memref<5x128x128xbf16, #tpu.memory_space<vmem>>, vector<1x128x128xbf16>
    %190 = vector.shape_cast %189 : vector<1x128x128xbf16> to vector<128x128xbf16>
    %cst_201 = arith.constant dense<0.000000e+00> : vector<16x128xf32>
    %191 = tpu.matmul %188, %190, %cst_201 {dimension_numbers = #tpu.dot_dimension_numbers<[1], [0], [0], [1], [0, 0, 1, 1], [], []>} : vector<16x128xbf16>, vector<128x128xbf16>, vector<16x128xf32> -> vector<16x128xf32>
    %192 = arith.addf %187, %191 : vector<16x128xf32>
    %c0_202 = arith.constant 0 : index
    %c0_203 = arith.constant 0 : index
    %193 = vector.load %arg8[%c0_202, %c0_203] : memref<1x128xf32, #tpu.memory_space<vmem>>, vector<1x128xf32>
    %194 = vector.broadcast %193 : vector<1x128xf32> to vector<16x128xf32>
    %195 = arith.mulf %192, %194 : vector<16x128xf32>
    %c0_204 = arith.constant 0 : index
    %c0_205 = arith.constant 0 : index
    %196 = vector.load %arg9[%c0_204, %c0_205] : memref<1x128xf32, #tpu.memory_space<vmem>>, vector<1x128xf32>
    %197 = vector.broadcast %196 : vector<1x128xf32> to vector<16x128xf32>
    %198 = arith.addf %195, %197 : vector<16x128xf32>
    %c0_206 = arith.constant 0 : index
    %c0_207 = arith.constant 0 : index
    %c0_208 = arith.constant 0 : index
    %199 = vector.load %arg10[%c0_206, %c0_207, %c0_208] : memref<1x16x128xf32, #tpu.memory_space<vmem>>, vector<1x16x128xf32>
    %200 = vector.shape_cast %199 : vector<1x16x128xf32> to vector<16x128xf32>
    %201 = vector.shape_cast %198 : vector<16x128xf32> to vector<1x16x128xf32>
    tpu.vector_store %arg10[%c0_206, %c0_207, %c0_208], %201 {strides = array<i32>} : memref<1x16x128xf32, #tpu.memory_space<vmem>>, vector<1x16x128xf32>,
    return
  }
  func.func @transform_0(%arg0: i32, %arg1: i32) -> (i32, i32, i32, i32) {
    %c0_i32 = arith.constant 0 : i32
    %c0_i32_0 = arith.constant 0 : i32
    %c0_i32_1 = arith.constant 0 : i32
    return %arg0, %arg1, %c0_i32, %c0_i32_0 : i32, i32, i32, i32
  }
  func.func @transform_1(%arg0: i32, %arg1: i32) -> (i32, i32, i32) {
    %c0_i32 = arith.constant 0 : i32
    %c0_i32_0 = arith.constant 0 : i32
    %c0_i32_1 = arith.constant 0 : i32
    %c0_i32_2 = arith.constant 0 : i32
    return %c0_i32, %c0_i32_0, %c0_i32_1 : i32, i32, i32
  }
  func.func @transform_2(%arg0: i32, %arg1: i32) -> (i32, i32, i32, i32) {
    %c0_i32 = arith.constant 0 : i32
    %c0_i32_0 = arith.constant 0 : i32
    %c0_i32_1 = arith.constant 0 : i32
    %c0_i32_2 = arith.constant 0 : i32
    %c0_i32_3 = arith.constant 0 : i32
    return %c0_i32, %c0_i32_0, %c0_i32_1, %c0_i32_2 : i32, i32, i32, i32
  }
  func.func @transform_3(%arg0: i32, %arg1: i32) -> (i32, i32, i32) {
    %c0_i32 = arith.constant 0 : i32
    %c0_i32_0 = arith.constant 0 : i32
    %c0_i32_1 = arith.constant 0 : i32
    %c0_i32_2 = arith.constant 0 : i32
    return %c0_i32, %c0_i32_0, %c0_i32_1 : i32, i32, i32
  }
  func.func @transform_4(%arg0: i32, %arg1: i32) -> (i32, i32, i32) {
    %c0_i32 = arith.constant 0 : i32
    %c0_i32_0 = arith.constant 0 : i32
    %c0_i32_1 = arith.constant 0 : i32
    %c0_i32_2 = arith.constant 0 : i32
    return %c0_i32, %c0_i32_0, %c0_i32_1 : i32, i32, i32
  }
  func.func @transform_5(%arg0: i32, %arg1: i32) -> (i32, i32, i32) {
    %c0_i32 = arith.constant 0 : i32
    %c0_i32_0 = arith.constant 0 : i32
    %c0_i32_1 = arith.constant 0 : i32
    %c0_i32_2 = arith.constant 0 : i32
    return %c0_i32, %c0_i32_0, %c0_i32_1 : i32, i32, i32
  }
  func.func @transform_6(%arg0: i32, %arg1: i32) -> (i32, i32) {
    %c0_i32 = arith.constant 0 : i32
    %c0_i32_0 = arith.constant 0 : i32
    %c0_i32_1 = arith.constant 0 : i32
    return %c0_i32, %c0_i32_0 : i32, i32
  }
  func.func @transform_7(%arg0: i32, %arg1: i32) -> (i32, i32) {
    %c0_i32 = arith.constant 0 : i32
    %c0_i32_0 = arith.constant 0 : i32
    %c0_i32_1 = arith.constant 0 : i32
    return %c0_i32, %c0_i32_0 : i32, i32
  }
  func.func @transform_8(%arg0: i32, %arg1: i32) -> (i32, i32, i32) {
    %c0_i32 = arith.constant 0 : i32
    %c0_i32_0 = arith.constant 0 : i32
    return %arg0, %arg1, %c0_i32 : i32, i32, i32
  }
}

</mosaic_0001>

<bundles_post_ra>
// kernel: tpu_custom_call.1
= control target key start
LH: loop header
LB: loop body
LE: loop exit
PB: predicated region body
PF: predicated region fallthrough
CT: control target
= control target key end

     0   :  { %s6200_s0 = inlined_call_operand.vmem [shape: bf16[2,1,36,128], index: 0, kind: input, shape index: {}]   ;;  %s6201_s1 = inlined_call_operand.hbm [shape: bf16[5,128,128], index: 1, kind: input, shape index: {}]   ;;  %s6202_s2 = inlined_call_operand.hbm [shape: bf16[3,5,128,128], index: 2, kind: input, shape index: {}]   ;;  %s6203_s3 = inlined_call_operand.hbm [shape: bf16[5,128,128], index: 3, kind: input, shape index: {}]   ;;  %s6204_s4 = inlined_call_operand.vmem [shape: f32[4,1,128], index: 4, kind: input, shape index: {}]   ;;  %s6205_s5 = inlined_call_operand.vmem [shape: f32[4,1,128], index: 5, kind: input, shape index: {}]   ;;  %s6206_s6 = inlined_call_operand.vmem [shape: f32[1,128], index: 6, kind: input, shape index: {}]   ;;  %s6207_s7 = inlined_call_operand.vmem [shape: f32[1,128], index: 7, kind: input, shape index: {}]   ;;  %s6208_s8 = inlined_call_operand.hbm [shape: f32[2,16,128], index: 8, kind: output, shape index: {}]  }
   0x1   :  { %6217 = sst [smem:[#allocation19_spill]] %s6202_s2 }
   0x2   :  { %13 = vsyncpa [#allocation5], 0 }
   0x3   :  { %14 = vsyncpa [#allocation8], 0 }
   0x4   :  { %15 = vsyncpa [#allocation6], 0 }
   0x5   :  { %17 = vsyncpa [#allocation6 + $0x1], 0  ;;  %s5753_s27 = smov 0   ;;  %s5755_s28 = smov 0  }
   0x6   :  { %s5757_s29 = smov 0   ;;  %s5759_s30 = smov 0  }
   0x7   :  { %s5761_s9 = smov 0   ;;  %s5763_s10 = smov 0  }
   0x8 LB: > { %6218 = sst [smem:[#allocation14_spill]] %s5683_s29  ;;  %s4029_s11 = sadd.s32 4294967295, %s5695_s10   ;;  %s5695_s10 = sphi %s5763_s10, %s23_s10   ;;  %s5691_s9 = sphi %s5761_s9, %s6238_s9   ;;  %s5687_s30 = sphi %s5759_s30, %s6237_s30   ;;  %s5683_s29 = sphi %s5757_s29, %s6236_s29   ;;  %s5679_s28 = sphi %s5755_s28, %s6240_s28   ;;  %s5675_s27 = sphi %s5753_s27, %s6239_s27  }
   0x9   : > { %6219 = sst [smem:[#allocation15_spill]] %s5691_s9  ;;  %s4030_s12 = sadd.s32 4294967294, %s5695_s10  }
   0xa   : > { %s35_s13 = sadd.s32 1, %s5691_s9  ;;  %s219_s14 = sadd.s32 1, %s5683_s29 }
   0xb   : > { %p37_p0 = scmp.ge.s32.totalorder %s35_s13, 2  ;;  %p229_p1 = scmp.ne.s32.totalorder %s5683_s29, %s5679_s28 }
   0xc   : > { %p230_p2 = scmp.eq.s32.totalorder %s4029_s11, 1  ;;  %p235_p3 = scmp.ne.s32.totalorder %s5679_s28, %s5675_s27 }
   0xd   : > { %s6242_s13 = smov (%p37_p0, %s35_s13), 0  ;;  %p236_p5 = scmp.eq.s32.totalorder %s4030_s12, 1 }
   0xe   : > { %6220 = sst [smem:[#allocation16_spill]] %s6242_s13  ;;  %p5793_p4 = por %p230_p2, %p229_p1 }
   0xf   : > { %s214_s16 = ssub.s32 %s5691_s9, %s6242_s13  ;;  %p4031_p6 = scmp.ge.s32.totalorder %s5695_s10, 1 }
  0x10   : > { %s6221_s15 = scalar_select %p5793_p4, 1, 0 }
  0x11   : > { %p217_p7 = scmp.eq.s32.totalorder %s214_s16, 0  ;;  %p5800_p8 = por %p236_p5, %p235_p3 }
  0x12   : > { %p243_p9 = scmp.lt.s32.totalorder %s5695_s10, 3  ;;  %p5812_p11 = scmp.eq.s32.totalorder %s4029_s11, 0 }
  0x13   : > { %s6222_s17 = scalar_select %p5800_p8, 1, 0 }
  0x14   : > { %s5806_s18 = scalar_select %p217_p7, %s5683_s29, %s219_s14  }
  0x15   : > { %6223 = sst [smem:[#allocation17_spill]] %s6222_s17  ;;  %p5808_p10 = pnand %p4031_p6, %p243_p9 }
  0x16   : > { %6224 = sst [smem:[#allocation18_spill]] %s5806_s18  ;;  %s5697_s21 = smov [#allocation7]  }
  0x17   : > { %s6225_s19 = scalar_select %p5808_p10, 1, 0 }
  0x18   : > { %s6226_s20 = scalar_select %p5812_p11, 1, 0 }
  0x19   : > { %p5189_p12 = pneg %p5808_p10  ;;  %s268_s22 = sshll.u32 %s5697_s21, 4  ;;  %s269_s22 = int_to_ptr.vmem [resolvable:$true] %s268_s22 }
  0x1a   : > { %s5698_s24 = smov [#allocation4]   ;;  %s6228_s2 = sld [smem:[#allocation19_spill]] }
  0x1b   : > { %p5820_p13 = pnand %p5812_p11, %p5189_p12  ;;  %s255_s25 = sshll.u32 %s5698_s24, 4  ;;  %s256_s25 = int_to_ptr.vmem [resolvable:$true] %s255_s25 }
  0x1d   : > { %p5832_p1 = pneg %p5820_p13 }
  0x20   : > { %s5525_s11 = scalar_lea.hbm %s6228_s2, 15360 }
  0x21   : > { %p5526_p0 = scmp.ne.s32.totalorder %s6228_s2, %s5525_s11  ;;  %p5532_p5 = scmp.lt.u32.totalorder %s5525_s11, %s6228_s2 }
  0x23   : > { %p5528_p2 = pnand %p5832_p1, %p5526_p0 }
  0x25   : > { %p5529_p3 = pneg %p5528_p2 }
  0x27   : > { %p5534_p6 = pnand %p5532_p5, %p5529_p3 }
  0x29   : > { %5537 = shalt.err (!%p5534_p6)
}
  0x2a   : > { %s5538_s24 = scalar_lea.vmem %s269_s22, 15360  ;;  %p5546_p8 = scmp.lt.s32.totalorder %s269_s22, %s269_s22 }
  0x2b   : > { %p5539_p7 = scmp.ne.s32.totalorder %s269_s22, %s5538_s24  ;;  %p5547_p4 = scmp.lt.s32.totalorder %s5538_s24, %s5538_s24 }
  0x2d   : > { %p5541_p9 = pnand %p5539_p7, %p5832_p1  ;;  %p5548_p11 = por %p5547_p4, %p5546_p8 }
  0x2f   : > { %p5542_p12 = pneg %p5541_p9 }
  0x31   : > { %p5549_p10 = pnand %p5548_p11, %p5542_p12 }
  0x33   : > { %5552 = shalt.err (!%p5549_p10)
}
  0x34   : > { %s5699_s26 = smov 64   ;;  %s5700_s12 = smov 4  }
  0x35   : > { %5195 = dma.hbm_to_vmem [thread:$0]  (!%p5820_p13), %s6228_s2, 15360, %s269_s22, [#allocation8], %s5699_s26, %s5699_s26, %s5700_s12  }
  0x36   : > { %s5553_s16 = scalar_lea.hbm %s6201_s1, 5120 }
  0x37   : > { %p5554_p4 = scmp.ne.s32.totalorder %s6201_s1, %s5553_s16  ;;  %p5560_p11 = scmp.lt.u32.totalorder %s5553_s16, %s6201_s1 }
  0x39   : > { %p5556_p8 = pnand %p5554_p4, %p5832_p1 }
  0x3b   : > { %p5557_p10 = pneg %p5556_p8 }
  0x3d   : > { %p5562_p0 = pnand %p5560_p11, %p5557_p10 }
  0x3f   : > { %5565 = shalt.err (!%p5562_p0)
}
  0x40   : > { %s5566_s9 = scalar_lea.vmem %s256_s25, 5120  ;;  %p5574_p6 = scmp.lt.s32.totalorder %s256_s25, %s256_s25 }
  0x41   : > { %p5567_p2 = scmp.ne.s32.totalorder %s256_s25, %s5566_s9  ;;  %p5575_p7 = scmp.lt.s32.totalorder %s5566_s9, %s5566_s9 }
  0x43   : > { %p5569_p3 = pnand %p5567_p2, %p5832_p1  ;;  %p5576_p9 = por %p5575_p7, %p5574_p6 }
  0x45   : > { %p5570_p5 = pneg %p5569_p3 }
  0x47   : > { %p5577_p12 = pnand %p5576_p9, %p5570_p5 }
  0x49   : > { %5580 = shalt.err (!%p5577_p12)
}
  0x4a   : > { %5192 = dma.hbm_to_vmem [thread:$0]  (!%p5820_p13), %s6201_s1, 5120, %s256_s25, [#allocation5], %s5699_s26, %s5699_s26, %s5700_s12  }
  0x4b   : > { %s5701_s18 = smov [#allocation9]   ;;  %s5581_s14 = scalar_lea.hbm %s6203_s3, 5120 }
  0x4c   : > { %s281_s22 = sshll.u32 %s5701_s18, 4  ;;  %p5582_p4 = scmp.ne.s32.totalorder %s6203_s3, %s5581_s14  ;;  %s282_s22 = int_to_ptr.vmem [resolvable:$true] %s281_s22 }
  0x4d   : > { %p5588_p11 = scmp.lt.u32.totalorder %s5581_s14, %s6203_s3 }
  0x4e   : > { %p5584_p8 = pnand %p5582_p4, %p5832_p1 }
  0x50   : > { %p5585_p10 = pneg %p5584_p8 }
  0x52   : > { %p5590_p0 = pnand %p5588_p11, %p5585_p10 }
  0x54   : > { %5593 = shalt.err (!%p5590_p0)
}
  0x55   : > { %s5594_s25 = scalar_lea.vmem %s282_s22, 5120  ;;  %p5602_p6 = scmp.lt.s32.totalorder %s282_s22, %s282_s22 }
  0x56   : > { %p5595_p2 = scmp.ne.s32.totalorder %s282_s22, %s5594_s25  ;;  %p5603_p7 = scmp.lt.s32.totalorder %s5594_s25, %s5594_s25 }
  0x58   : > { %p5597_p3 = pnand %p5595_p2, %p5832_p1  ;;  %p5604_p9 = por %p5603_p7, %p5602_p6 }
  0x5a   : > { %p5598_p5 = pneg %p5597_p3 }
  0x5c   : > { %p5605_p12 = pnand %p5604_p9, %p5598_p5 }
  0x5e   : > { %5608 = shalt.err (!%p5605_p12)
}
  0x5f   : > { %5198 = dma.hbm_to_vmem [thread:$0]  (!%p5820_p13), %s6203_s3, 5120, %s282_s22, [#allocation8], %s5699_s26, %s5699_s26, %s5700_s12  }
  0x60   : > { %p6230_p4 = scmp.ne.s32.totalorder %s6225_s19, 0 }
  0x61   : > { %p6231_p1 = scmp.ne.s32.totalorder (!%p6230_p4), %s6226_s20, 0 }
  0x62   : > { %321 = sbr.rel (%p6230_p4) target bundleno = 1958 (0x7a6), region = 52 }
  0x69   : > { %5662 = dma.done.wait (%p6231_p1), [#allocation5], 5120  }
  0x6a   : > { %5664 = vsyncadd (%p6231_p1), [#allocation5], 4294962176 }
  0x6b   : > { %5666 = dma.done.wait (%p6231_p1), [#allocation8], 20480  }
  0x6c   : > { %5668 = vsyncadd (%p6231_p1), [#allocation8], 4294946816  ;;  %v5268_v0 = vld [vmem:[#allocation4 + $0x40] sm:$0xff]   ;;  %p367_p13 = scmp.lt.s32.totalorder %s5687_s30, 1  ;;  %v5270_v2 = vld [vmem:[#allocation4 + $0x48] sm:$0xff]   ;;  %vm708_vm1 = vcmask 1046528  }
  0x6d   : > { %v5269_v1 = vld [vmem:[#allocation4 + $0x80] sm:$0xff]   ;;  %4594 = vmatprep.subr.bf16.mxu1 %v5268_v0  ;;  %v5271_v3 = vld [vmem:[#allocation4 + $0x88] sm:$0xff]   ;;  %v5272_v4 = vld [vmem:[#allocation4 + $0x50] sm:$0xff]   ;;  %vm468_vm0 = vsmask.f32 7424  ;;  %vm984_vm3 = vcmask 1045504  }
  0x6e   : > { %4634 = vmatprep.subr.bf16.mxu0 %v5269_v1  ;;  %4595 = vmatpush3.bf16.msra.mxu1 %v5268_v0  ;;  %v5273_v5 = vld [vmem:[#allocation4 + $0x90] sm:$0xff]   ;;  %s368_s19 = scalar_select %p367_p13, %s5687_s30, 1  ;;  %v5274_v6 = vld [vmem:[#allocation4 + $0x58] sm:$0xff]   ;;  %v5276_v8 = vld [vmem:[#allocation4 + $0x60] sm:$0xff]   ;;  %vm838_vm2 = vsmask.f32 6400 }
  0x6f   : > { %4635 = vmatpush3.bf16.msra.mxu0 %v5269_v1  ;;  %4596 = vmatprep.subr.bf16.mxu1 %v5270_v2  ;;  %v5275_v7 = vld [vmem:[#allocation4 + $0x98] sm:$0xff]   ;;  %v5277_v9 = vld [vmem:[#allocation4 + $0xa0] sm:$0xff]   ;;  %v5278_v10 = vld [vmem:[#allocation4 + $0x68] sm:$0xff]   ;;  %vm1849_vm6 = vcmask 1043456   ;;  %vm2559_vm7 = vcmask 1041408   ;;  %vm5704_vm8 = vmmov 0  }
  0x70   : > { %4636 = vmatprep.subr.bf16.mxu0 %v5271_v3  ;;  %s5174_s20 = smul.u32 20, %s368_s19  ;;  %v5279_v11 = vld [vmem:[#allocation4 + $0xa8] sm:$0xff]   ;;  %v5280_v17 = vld [vmem:[#allocation4 + $0x70] sm:$0xff]   ;;  %v5282_v33 = vld [vmem:[#allocation4 + $0x78] sm:$0xff]   ;;  %s364_s21 = sand.u32 1, %s5679_s28  }
  0x71   : > { %v5281_v22 = vld [vmem:[#allocation4 + $0xb0] sm:$0xff]   ;;  %v5283_v34 = vld [vmem:[#allocation4 + $0xb8] sm:$0xff]   ;;  %v5286_v36 = vld [vmem:[#allocation4] sm:$0xff]   ;;  %s4322_s14 = sshll.u32 %s5687_s30, 8  ;;  %s6154_s25 = scalar_lea.sflag [#allocation6], %s364_s21 }
  0x72   : > { %4597 = vmatpush3.bf16.msra.mxu1 %v5270_v2  ;;  %s5908_s26 = scalar_lea.vmem %s6200_s0, %s5174_s20  ;;  %v5288_v43 = vld [vmem:[#allocation4 + $0xc0] sm:$0xff]   ;;  %v5290_v49 = vld [vmem:[#allocation4 + $0x8] sm:$0xff]   ;;  %v5292_v53 = vld [vmem:[#allocation4 + $0x10] sm:$0xff]   ;;  %s6152_s9 = scalar_lea.hbm %s6208_s8, %s4322_s14 }
  0x73   : > { %4637 = vmatpush3.bf16.msra.mxu0 %v5271_v3  ;;  %4598 = vmatprep.subr.bf16.mxu1 %v5272_v4  ;;  %v417_v12 = vld [vmem:[%s5908_s26] sm:$0xf]  ;;  %v5912_v13 = vld [vmem:[%s5908_s26 + $0x4] sm:$0xf]  ;;  %v5918_v15 = vld [vmem:[%s5908_s26 + $0x8] sm:$0xff]   ;;  %p6232_p10 = scmp.ne.s32.totalorder %s6221_s15, 0 }
  0x74   : > { %4638 = vmatprep.subr.bf16.mxu0 %v5273_v5  ;;  %v5915_v14 = vcombine.low %v417_v12, %v5912_v13  ;;  %v687_v16 = vld [vmem:[%s5908_s26] sm:$0xe]  ;;  %v477_v20 = vshll.u32 %v5918_v15, 16  ;;  %v710_v23 = vrot.slane %v5918_v15, 1  ;;  %v481_v28 = vshrl.u32 %v5918_v15, 16  ;;  %v5291_v51 = vld [vmem:[#allocation4 + $0xc8] sm:$0xff]  }
  0x75   : > { %v4063_v21 = vcombine.low %v687_v16, %v5912_v13  ;;  %v5289_v27 = vld [vmem:[%s5908_s26 + $0x10] ss:$0 sps:$4 sm:$0x11]   ;;  %v5293_v54 = vld [vmem:[#allocation4 + $0xd0] sm:$0xff]   ;;  %v5294_v56 = vld [vmem:[#allocation4 + $0x18] sm:$0xff]   ;;  %v986_v62 = vrot.slane %v5918_v15, 2 }
  0x76   : > { %4599 = vmatpush3.bf16.msra.mxu1 %v5272_v4  ;;  %v470_v18 = vshrl.u32 %v5915_v14, 16  ;;  %v472_v19 = vshll.u32 %v5915_v14, 16  ;;  %v479_v25 = vrot.slane %v477_v20, 1  ;;  %v485_v31 = vshll.u32 %v5289_v27, 16  ;;  %v5295_v59 = vld [vmem:[#allocation4 + $0xd8] sm:$0xff]   ;;  %v5296_v60 = vld [vmem:[#allocation4 + $0x20] sm:$0xff]  }
  0x77   : > { %4639 = vmatpush3.bf16.msra.mxu0 %v5273_v5  ;;  %4600 = vmatprep.subr.bf16.mxu1 %v5274_v6  ;;  %v709_v26 = vrot.slane %v4063_v21, 1  ;;  %v840_v32 = vshrl.u32 %v4063_v21, 16  ;;  %v843_v40 = vshll.u32 %v4063_v21, 16  ;;  %v712_v41 = vrot.slane %v5289_v27, 1  ;;  %v5297_v61 = vld [vmem:[#allocation4 + $0xe0] sm:$0xff]   ;;  %v5298_v3 = vld [vmem:[#allocation4 + $0x28] sm:$0xff]  }
  0x78   : > { %4640 = vmatprep.subr.bf16.mxu0 %v5275_v7  ;;  %v474_v24 = vrot.slane %v472_v19, 1  ;;  %v487_v37 = vrot.slane %v485_v31, 1  ;;  %v483_v38 = vor.u32 %v481_v28, %v479_v25  ;;  %v847_v42 = vrot.slane %v481_v28, 1  ;;  %v5938_v55 = vld [vmem:[%s5908_s26 + $0x10] ss:$0 sps:$4 sm:$0x33]  }
  0x79   : > { %v711_v30 = vsel %vm708_vm1, %v709_v26, %v710_v23  ;;  %v842_v39 = vrot.slane %v840_v32, 1  ;;  %v845_v44 = vrot.slane %v843_v40, 2  ;;  %v848_v45 = vrot.slane %v477_v20, 2  ;;  %v963_v1 = vld [vmem:[%s5908_s26] sm:$0xc]  ;;  %v5299_v4 = vld [vmem:[#allocation4 + $0xe8] sm:$0xff]  }
  0x7a   : > { %4601 = vmatpush3.bf16.msra.mxu1 %v5274_v6  ;;  %v475_v29 = vor.u32 %v474_v24, %v470_v18  ;;  %4650 = vmatprep.mubr.bf16.mxu0 %v711_v30  ;;  %v488_v46 = vsel %vm468_vm0, %v483_v38, %v487_v37  ;;  %v713_v48 = vsel %vm708_vm1, %v710_v23, %v712_v41  ;;  %v852_v57 = vshrl.u32 %v5938_v55, 16  ;;  %v5308_v18 = vld [vmem:[#allocation4 + $0x118] sm:$0xff]   ;;  %v5309_v19 = vld [vmem:[#allocation4 + $0x120] sm:$0xff]   ;;  %v5310_v20 = vld [vmem:[#allocation4 + $0x128] sm:$0xff]   ;;  %s4040_s26 = sshll.u32 %s364_s21, 4  ;;  %s5705_s30 = smov [#allocation10]  }
  0x7b   : > { %4641 = vmatpush3.bf16.msra.mxu0 %v5275_v7  ;;  %4602 = vmatprep.subr.bf16.mxu1 %v5276_v8  ;;  %v846_v47 = vor.u32 %v845_v44, %v842_v39  ;;  %v5932_v50 = vor.u32 %v848_v45, %v847_v42  ;;  %v855_v58 = vshll.u32 %v5938_v55, 16  ;;  %v4081_v2 = vcombine.low %v963_v1, %v5912_v13  ;;  %v5300_v7 = vld [vmem:[#allocation4 + $0x30] sm:$0xff]   ;;  %v5306_v13 = vld [vmem:[#allocation4 + $0x108] sm:$0xff]   ;;  %v5314_v24 = vld [vmem:[#allocation7 + $0x40] sm:$0xff]   ;;  %s366_s13 = scalar_lea.vmem [#allocation10], %s4040_s26  ;;  %s5613_s29 = sshll.u32 %s5705_s30, 4  ;;  %s5614_s29 = int_to_ptr.vmem [resolvable:$false] %s5613_s29 }
  0x7c   : > { %4642 = vmatprep.subr.bf16.mxu0 %v5277_v9  ;;  %v480_v35 = vsel %vm468_vm0, %v475_v29, %v479_v25  ;;  %v854_v63 = vrot.slane %v852_v57, 1  ;;  %v988_v6 = vrot.slane %v5938_v55, 2  ;;  %v5311_v21 = vld [vmem:[#allocation4 + $0x130] sm:$0xff]   ;;  %v5315_v25 = vld [vmem:[#allocation7 + $0x48] sm:$0xff]   ;;  %v5317_v27 = vld [vmem:[#allocation7 + $0x58] sm:$0xff]   ;;  %s3916_s11 = sshll.u32 %s366_s13, 4  ;;  %s6147_s11 = int_to_ptr.vmem [resolvable:$true] %s3916_s11 }
  0x7d   : > { %4610 = vmatprep.mubr.bf16.mxu1 %v480_v35  ;;  %v850_v52 = vsel %vm838_vm2, %v846_v47, %v5932_v50  ;;  %v857_v0 = vrot.slane %v855_v58, 2  ;;  %v985_v5 = vrot.slane %v4081_v2, 2  ;;  %v5316_v26 = vld [vmem:[#allocation7 + $0x50] sm:$0xff]   ;;  %v5318_v28 = vld [vmem:[#allocation7 + $0x60] sm:$0xff]   ;;  %v5319_v29 = vld [vmem:[#allocation7 + $0x68] sm:$0xff]   ;;  %s5609_s2 = scalar_lea.vmem %s6147_s11, 256  ;;  %p5616_p2 = scmp.lt.s32.totalorder %s6147_s11, %s5614_s29 }
  0x7e   : > { %4603 = vmatpush3.bf16.msra.mxu1 %v5276_v8  ;;  %v5301_v8 = vld [vmem:[#allocation4 + $0xf0] sm:$0xff]   ;;  %v989_v23 = vsel %vm984_vm3, %v986_v62, %v988_v6  ;;  %v5321_v30 = vld [vmem:[#allocation7 + $0x78] sm:$0xff]   ;;  %v5955_v31 = vld [vmem:[#allocation7] sm:$0xff]   ;;  %p5610_p8 = scmp.ne.s32.totalorder %s6147_s11, %s5609_s2  ;;  %s5615_s19 = scalar_lea.vmem %s5614_s29, 512 }
  0x7f   : > { %4643 = vmatpush3.bf16.msra.mxu0 %v5277_v9  ;;  %4604 = vmatprep.subr.bf16.mxu1 %v5278_v10  ;;  %v5302_v9 = vld [vmem:[#allocation4 + $0x38] sm:$0xff]   ;;  %v858_v12 = vor.u32 %v857_v0, %v854_v63  ;;  %v987_v16 = vsel %vm984_vm3, %v985_v5, %v986_v62  ;;  %v5703_v63 = vmov 1.0   ;;  %p5617_p3 = scmp.lt.s32.totalorder %s5615_s19, %s5609_s2 }
  0x80   : > { %4644 = vmatprep.subr.bf16.mxu0 %v5279_v11  ;;  %v4090_v40 = vld [vmem:[%s6204_s4] ss:$0 sm:$0xff]  ;;  %v1128_v0 = vrot.slane %v5703_v63, 2  ;;  %p5611_p11 = pnand %p5610_p8, %p6232_p10 }
  0x81   : > { %v4091_v44 = vld [vmem:[%s6205_s5] ss:$0 sm:$0xff]  ;;  %p5618_p5 = por %p5617_p3, %p5616_p2 }
  0x82   : > { %4605 = vmatpush3.bf16.msra.mxu1 %v5278_v10  ;;  %v5303_v10 = vld [vmem:[#allocation4 + $0xf8] sm:$0xff]   ;;  %p5612_p0 = pneg %p5611_p11 }
  0x83   : > { %4645 = vmatpush3.bf16.msra.mxu0 %v5279_v11  ;;  %4606 = vmatprep.subr.bf16.mxu1 %v5280_v17  ;;  %v5304_v11 = vld [vmem:[#allocation4 + $0x100] sm:$0xff]  }
  0x84   : > { %4646 = vmatprep.subr.bf16.mxu0 %v5281_v22  ;;  %p5619_p6 = pnand %p5618_p5, %p5612_p0 }
  0x86   : > { %4607 = vmatpush3.bf16.msra.mxu1 %v5280_v17  ;;  %v5307_v17 = vld [vmem:[#allocation4 + $0x110] sm:$0xff]  }
  0x87   : > { %4647 = vmatpush3.bf16.msra.mxu0 %v5281_v22  ;;  %4608 = vmatprep.subr.bf16.mxu1 %v5282_v33  ;;  %v5312_v22 = vld [vmem:[#allocation4 + $0x138] sm:$0xff]  }
  0x88   : > { %4648 = vmatprep.subr.bf16.mxu0 %v5283_v34 }
  0x8a   : > { %4609 = vmatpush3.bf16.msra.mxu1 %v5282_v33 }
  0x8b   : > { %4649 = vmatpush3.bf16.msra.mxu0 %v5283_v34  ;;  %4614 = vmatprep.subr.bf16.mxu1 %v5286_v36 }
  0x8c   : > { %4654 = vmatprep.subr.bf16.mxu0 %v5288_v43 }
  0x8d   : > { %4611 = vmatmul.mubr.bf16.vlgmr.msra.gmra.mrb[0].mxu1 %v488_v46 }
  0x8e   : > { %4615 = vmatpush3.bf16.msra.mxu1 %v5286_v36  ;;  %4651 = vmatmul.mubr.bf16.vlgmr.msra.gmra.mrb[0].mxu0 %v713_v48  ;;  %v379_v36 = vlaneseq }
  0x8f   : > { %4655 = vmatpush3.bf16.msra.mxu0 %v5288_v43  ;;  %4616 = vmatprep.subr.bf16.mxu1 %v5290_v49 }
  0x90   : > { %4656 = vmatprep.subr.bf16.mxu0 %v5291_v51  ;;  %4630 = vmatprep.mubr.bf16.mxu1 %v5915_v14  ;;  %v859_v14 = vsel %vm838_vm2, %v5932_v50, %v858_v12  ;;  %v380_v37 = vshrl.u32 %v379_v36, 7  ;;  %v5327_v36 = vld [vmem:[#allocation7 + $0x18] sm:$0xff]  }
  0x91   : > { %4670 = vmatprep.mubr.bf16.mxu0 %v850_v52 }
  0x92   : > { %4617 = vmatpush3.bf16.msra.mxu1 %v5290_v49  ;;  %v383_v38 = vadd.s32 24, %v380_v37  ;;  %v381_v41 = vadd.s32 8, %v380_v37  ;;  %v5328_v37 = vld [vmem:[#allocation7 + $0x20] sm:$0xff]  }
  0x93   : > { %4657 = vmatpush3.bf16.msra.mxu0 %v5291_v51  ;;  %4618 = vmatprep.subr.bf16.mxu1 %v5292_v53 }
  0x94   : > { %4658 = vmatprep.subr.bf16.mxu0 %v5293_v54  ;;  %v390_v47 = vadd.s32 4294967286, %v383_v38  ;;  %v388_v51 = vadd.s32 4294967286, %v381_v41  ;;  %v5329_v38 = vld [vmem:[#allocation7 + $0x28] sm:$0xff]   ;;  %v5331_v41 = vld [vmem:[#allocation7 + $0x38] sm:$0xff]  }
  0x96   : > { %4619 = vmatpush3.bf16.msra.mxu1 %v5292_v53  ;;  %vm400_vm4 = vcmp.lt.s32.totalorder %v390_v47, 16  ;;  %vm393_vm5 = vcmp.ge.s32.totalorder %v388_v51, 0  ;;  %v5335_v47 = vld [vmem:[#allocation7 + $0x88] sm:$0xff]   ;;  %v5338_v51 = vld [vmem:[#allocation7 + $0xa0] sm:$0xff]  }
  0x97   : > { %4659 = vmatpush3.bf16.msra.mxu0 %v5293_v54  ;;  %4620 = vmatprep.subr.bf16.mxu1 %v5294_v56 }
  0x98   : > { %4660 = vmatprep.subr.bf16.mxu0 %v5295_v59 }
  0x9a   : > { %4621 = vmatpush3.bf16.msra.mxu1 %v5294_v56 }
  0x9b   : > { %4661 = vmatpush3.bf16.msra.mxu0 %v5295_v59  ;;  %4622 = vmatprep.subr.bf16.mxu1 %v5296_v60 }
  0x9c   : > { %4662 = vmatprep.subr.bf16.mxu0 %v5297_v61 }
  0x9e   : > { %4623 = vmatpush3.bf16.msra.mxu1 %v5296_v60  ;;  %v5702_v60 = vmov 0.0  }
  0x9f   : > { %4663 = vmatpush3.bf16.msra.mxu0 %v5297_v61  ;;  %4624 = vmatprep.subr.bf16.mxu1 %v5298_v3  ;;  %v5965_v61 = vsel %vm400_vm4, 1.0, %v5702_v60  ;;  %v5968_v62 = vsel %vm393_vm5, 1.0, %v5702_v60  ;;  %v1125_v2 = vrot.slane %v5702_v60, 2 }
  0xa0   : > { %4664 = vmatprep.subr.bf16.mxu0 %v5299_v4  ;;  %v1130_v1 = vrot.slane %v5965_v61, 2 }
  0xa2   : > { %4625 = vmatpush3.bf16.msra.mxu1 %v5298_v3  ;;  %v1126_v3 = vrot.slane %v5968_v62, 2  ;;  %v1131_v5 = vsel %vm984_vm3, %v1128_v0, %v1130_v1  ;;  %v1133_v6 = vsel %vm984_vm3, %v1130_v1, %v1125_v2 }
  0xa3   : > { %4665 = vmatpush3.bf16.msra.mxu0 %v5299_v4  ;;  %4626 = vmatprep.subr.bf16.mxu1 %v5300_v7 }
  0xa4   : > { %4666 = vmatprep.subr.bf16.mxu0 %v5301_v8 }
  0xa6   : > { %4627 = vmatpush3.bf16.msra.mxu1 %v5300_v7 }
  0xa7   : > { %4667 = vmatpush3.bf16.msra.mxu0 %v5301_v8  ;;  %4628 = vmatprep.subr.bf16.mxu1 %v5302_v9  ;;  %v1127_v8 = vsel %vm984_vm3, %v1125_v2, %v1126_v3 }
  0xa8   : > { %4668 = vmatprep.subr.bf16.mxu0 %v5303_v10 }
  0xaa   : > { %4629 = vmatpush3.bf16.msra.mxu1 %v5302_v9  ;;  %v1129_v9 = vsel %vm984_vm3, %v1126_v3, %v1128_v0  ;;  %v5341_v0 = vld [vmem:[#allocation7 + $0xb8] sm:$0xff]  }
  0xab   : > { %4669 = vmatpush3.bf16.msra.mxu0 %v5303_v10  ;;  %4694 = vmatprep.subr.bf16.mxu1 %v5314_v24 }
  0xac   : > { %4674 = vmatprep.subr.bf16.mxu0 %v5304_v11 }
  0xad   : > { %4631 = vmatmul.mubr.bf16.vlgmr.msra.gmra.mrb[0].mxu1 %v5918_v15  ;;  %v5320_v15 = vld [vmem:[#allocation7 + $0x70] sm:$0xff]  }
  0xae   : > { %4671 = vmatmul.mubr.bf16.vlgmr.msra.gmra.mrb[0].mxu0 %v859_v14  ;;  %4695 = vmatpush3.bf16.msra.mxu1 %v5314_v24 }
  0xaf   : > { %4675 = vmatpush3.bf16.msra.mxu0 %v5304_v11  ;;  %4690 = vmatprep.mubr.bf16.mxu0 %v987_v16 }
  0xb0   : > { %4676 = vmatprep.subr.bf16.mxu0 %v5306_v13  ;;  %4696 = vmatprep.subr.bf16.mxu1 %v5315_v25 }
  0xb2   : > { %4697 = vmatpush3.bf16.msra.mxu1 %v5315_v25 }
  0xb3   : > { %4677 = vmatpush3.bf16.msra.mxu0 %v5306_v13  ;;  %4698 = vmatprep.subr.bf16.mxu1 %v5316_v26 }
  0xb4   : > { %4678 = vmatprep.subr.bf16.mxu0 %v5307_v17 }
  0xb6   : > { %4699 = vmatpush3.bf16.msra.mxu1 %v5316_v26 }
  0xb7   : > { %4679 = vmatpush3.bf16.msra.mxu0 %v5307_v17  ;;  %4700 = vmatprep.subr.bf16.mxu1 %v5317_v27 }
  0xb8   : > { %4680 = vmatprep.subr.bf16.mxu0 %v5308_v18 }
  0xba   : > { %4701 = vmatpush3.bf16.msra.mxu1 %v5317_v27 }
  0xbb   : > { %4681 = vmatpush3.bf16.msra.mxu0 %v5308_v18  ;;  %4702 = vmatprep.subr.bf16.mxu1 %v5318_v28 }
  0xbc   : > { %4682 = vmatprep.subr.bf16.mxu0 %v5309_v19 }
  0xbe   : > { %4703 = vmatpush3.bf16.msra.mxu1 %v5318_v28 }
  0xbf   : > { %4683 = vmatpush3.bf16.msra.mxu0 %v5309_v19  ;;  %4704 = vmatprep.subr.bf16.mxu1 %v5319_v29 }
  0xc0   : > { %4684 = vmatprep.subr.bf16.mxu0 %v5310_v20 }
  0xc2   : > { %4705 = vmatpush3.bf16.msra.mxu1 %v5319_v29 }
  0xc3   : > { %4685 = vmatpush3.bf16.msra.mxu0 %v5310_v20  ;;  %4706 = vmatprep.subr.bf16.mxu1 %v5320_v15 }
  0xc4   : > { %4686 = vmatprep.subr.bf16.mxu0 %v5311_v21 }
  0xc6   : > { %4707 = vmatpush3.bf16.msra.mxu1 %v5320_v15 }
  0xc7   : > { %4687 = vmatpush3.bf16.msra.mxu0 %v5311_v21  ;;  %4708 = vmatprep.subr.bf16.mxu1 %v5321_v30 }
  0xc8   : > { %4688 = vmatprep.subr.bf16.mxu0 %v5312_v22 }
  0xca   : > { %4709 = vmatpush3.bf16.msra.mxu1 %v5321_v30 }
  0xcb   : > { %4689 = vmatpush3.bf16.msra.mxu0 %v5312_v22  ;;  %4714 = vmatprep.subr.bf16.mxu1 %v5955_v31 }
  0xce   : > { %4691 = vmatmul.mubr.bf16.vlgmr.msra.gmra.mrb[0].mxu0 %v989_v23 }
 0x180   : > { %v4632_v32 = vpop.f32.mrb[0].mxu1 }
 0x181   : > { %v672_v33 = vpop.f32.mrb[1].mxu1 }
 0x182   : > { %v4633_v34 = vpop.f32.mrb[2].mxu1 }
 0x183   : > { %v675_v35 = vpop.f32.mrb[3].mxu1 }
 0x1a1   : > { %v4692_v39 = vpop.f32.mrb[0].mxu0 }
 0x1a2   : > { %v5094_v42 = vadd.f32 %v4692_v39, %v4632_v32  ;;  %v1074_v43 = vpop.f32.mrb[1].mxu0  ;;  %v5330_v39 = vld [vmem:[#allocation7 + $0x30] sm:$0xff]  }
 0x1a3   : > { %v5095_v45 = vadd.f32 %v1074_v43, %v672_v33  ;;  %v4693_v46 = vpop.f32.mrb[2].mxu0 }
 0x1a4   : > { %v1102_v48 = vmul.f32 %v5094_v42, %v4090_v40  ;;  %v5096_v49 = vadd.f32 %v4693_v46, %v4633_v34  ;;  %v1077_v50 = vpop.f32.mrb[3].mxu0  ;;  %v5325_v34 = vld [vmem:[#allocation7 + $0x8] sm:$0xff]   ;;  %v5333_v42 = vld [vmem:[#allocation7 + $0x80] sm:$0xff]  }
 0x1a5   : > { %v1100_v52 = vmul.f32 %v5095_v45, %v4090_v40  ;;  %v5097_v53 = vadd.f32 %v1077_v50, %v675_v35  ;;  %v5326_v35 = vld [vmem:[#allocation7 + $0x10] sm:$0xff]   ;;  %v5337_v50 = vld [vmem:[#allocation7 + $0x98] sm:$0xff]  }
 0x1a6   : > { %v1113_v54 = vadd.f32 %v4091_v44, %v1102_v48  ;;  %v1103_v55 = vmul.f32 %v5096_v49, %v4090_v40  ;;  %v5336_v49 = vld [vmem:[#allocation7 + $0x90] sm:$0xff]  }
 0x1a7   : > { %v1111_v56 = vadd.f32 %v4091_v44, %v1100_v52  ;;  %v1101_v57 = vmul.f32 %v5097_v53, %v4090_v40  ;;  %v5339_v53 = vld [vmem:[#allocation7 + $0xa8] sm:$0xff]  }
 0x1a8   : > { %5497 = vtanh.f32 %v1113_v54  ;;  %v1114_v58 = vadd.f32 %v4091_v44, %v1103_v55  ;;  %v5340_v55 = vld [vmem:[#allocation7 + $0xb0] sm:$0xff]  }
 0x1a9   : > { %5499 = vtanh.f32 %v1111_v56  ;;  %v1112_v59 = vadd.f32 %v4091_v44, %v1101_v57 }
 0x1aa   : > { %5501 = vtanh.f32 %v1114_v58 }
 0x1ab   : > { %5503 = vtanh.f32 %v1112_v59 }
 0x1b2   : > { %v5498_v4 = vpop.eup %5497 }
 0x1b3   : > { %v5500_v7 = vpop.eup %5499  ;;  %v1140_v12 = vmul.f32 %v5498_v4, %v1131_v5  ;;  %v5342_v5 = vld [vmem:[#allocation7 + $0xc0] sm:$0xff]  }
 0x1b4   : > { %v5502_v10 = vpop.eup %5501  ;;  %v1138_v14 = vmul.f32 %v5500_v7, %v1127_v8  ;;  %v5344_v8 = vld [vmem:[#allocation7 + $0xc8] sm:$0xff]  }
 0x1b5   : > { %v5504_v11 = vpop.eup %5503  ;;  %v1141_v13 = vmul.f32 %v5502_v10, %v1133_v6  ;;  %v5345_v10 = vld [vmem:[#allocation7 + $0xd0] sm:$0xff]  }
 0x1b6   : > { %v1139_v16 = vmul.f32 %v5504_v11, %v1129_v9  ;;  %v5346_v11 = vld [vmem:[#allocation7 + $0xd8] sm:$0xff]  }
 0x1b7   : > { %v4331_v17 = vpack.c.bf16 %v1141_v13, %v1140_v12  ;;  %v5347_v12 = vld [vmem:[#allocation7 + $0xe0] sm:$0xff]   ;;  %v5348_v13 = vld [vmem:[#allocation7 + $0xe8] sm:$0xff]  }
 0x1b8   : > { %v4326_v18 = vpack.c.bf16 %v1139_v16, %v1138_v14  ;;  %v5349_v14 = vld [vmem:[#allocation7 + $0xf0] sm:$0xff]  }
 0x1b9   : > { %4348 = vst [vmem:[#allocation2 + $0x8] sm:$0xff] %v4331_v17   ;;  %v5350_v17 = vld [vmem:[#allocation7 + $0xf8] sm:$0xff]  }
 0x1ba   : > { %4327 = vst [vmem:[#allocation2] sm:$0xff] %v4326_v18  }
 0x1c0   : > { %v5978_v19 = vld [vmem:[#allocation2 + $0x8] sm:$0xf]  ;;  %v1182_v20 = vld [vmem:[#allocation2 + $0xc] sm:$0x7] }
 0x1c1   : > { %v1162_v21 = vld [vmem:[#allocation2] sm:$0xf]  ;;  %v5980_v22 = vld [vmem:[#allocation2 + $0x4] sm:$0xf]  ;;  %v5983_v23 = vcombine.low %v5978_v19, %v1182_v20  ;;  %v1165_v43 = vld [vmem:[#allocation2 + $0xc] sm:$0x3] }
 0x1c2   : > { %v4096_v24 = vcombine.low %v1162_v21, %v5980_v22  ;;  %v1426_v40 = vld [vmem:[#allocation2] sm:$0xe]  ;;  %v4106_v46 = vcombine.low %v5978_v19, %v1165_v43  ;;  %v1553_v52 = vld [vmem:[#allocation2 + $0xc] sm:$0xf] }
 0x1c3   : > { %v1218_v25 = vshll.u32 %v5983_v23, 16  ;;  %v1222_v30 = vshrl.u32 %v5983_v23, 16  ;;  %v1448_v45 = vrot.slane %v5983_v23, 1  ;;  %v5995_v54 = vcombine.low %v5978_v19, %v1553_v52  ;;  %v1694_v16 = vld [vmem:[#allocation2] sm:$0xc]  ;;  %v5351_v19 = vld [vmem:[#allocation7 + $0x100] sm:$0xff]  }
 0x1c4   : > { %v1213_v26 = vshll.u32 %v4096_v24, 16  ;;  %v1211_v27 = vshrl.u32 %v4096_v24, 16  ;;  %v4133_v18 = vcombine.low %v1694_v16, %v5980_v22  ;;  %v5353_v23 = vld [vmem:[#allocation7 + $0x108] sm:$0xff]   ;;  %v1853_v52 = vrot.slane %v5703_v63, 4 }
 0x1c5   : > { %v1220_v29 = vrot.slane %v1218_v25, 1  ;;  %v1583_v58 = vshrl.u32 %v5995_v54, 16  ;;  %v1586_v59 = vshll.u32 %v5995_v54, 16  ;;  %v1716_v21 = vrot.slane %v5995_v54, 2  ;;  %v5354_v25 = vld [vmem:[#allocation7 + $0x110] sm:$0xff]  }
 0x1c6   : > { %v1215_v28 = vrot.slane %v1213_v26, 1  ;;  %v1715_v20 = vrot.slane %v4133_v18, 2  ;;  %v5355_v26 = vld [vmem:[#allocation7 + $0x118] sm:$0xff]   ;;  %v1850_v54 = vrot.slane %v5702_v60, 4 }
 0x1c7   : > { %v1224_v33 = vor.u32 %v1222_v30, %v1220_v29  ;;  %v1585_v3 = vrot.slane %v1583_v58, 1  ;;  %v1588_v4 = vrot.slane %v1586_v59, 2  ;;  %v5361_v30 = vld [vmem:[#allocation7 + $0x188] sm:$0xff]  }
 0x1c8   : > { %v1216_v15 = vor.u32 %v1215_v28, %v1211_v27  ;;  %v5357_v27 = vld [vmem:[#allocation7 + $0x128] sm:$0xff]   ;;  %v5358_v28 = vld [vmem:[#allocation7 + $0x130] sm:$0xff]  }
 0x1c9   : > { %v1589_v7 = vor.u32 %v1588_v4, %v1585_v3 }
 0x1ca   : > { %v1221_v32 = vsel %vm468_vm0, %v1216_v15, %v1220_v29  ;;  %v5359_v29 = vld [vmem:[#allocation7 + $0x138] sm:$0xff]   ;;  %v5360_v15 = vld [vmem:[#allocation7 + $0x180] sm:$0xff]  }
 0x1cb   : > { %4710 = vmatprep.mubr.bf16.mxu1 %v1221_v32  ;;  %4794 = vmatprep.subr.bf16.mxu0 %v5360_v15  ;;  %v5362_v32 = vld [vmem:[#allocation7 + $0x190] sm:$0xff]  }
 0x1cc   : > { %4711 = vmatmul.mubr.bf16.vlgmr.msra.gmra.mrb[4].mxu1 %v1224_v33  ;;  %4795 = vmatpush3.bf16.msra.mxu0 %v5360_v15  ;;  %v5363_v33 = vld [vmem:[#allocation7 + $0x198] sm:$0xff]   ;;  %v5375_v15 = vld [vmem:[#allocation7 + $0x168] sm:$0xff]  }
 0x1cd   : > { %4715 = vmatpush3.bf16.msra.mxu1 %v5955_v31  ;;  %4730 = vmatprep.mubr.bf16.mxu1 %v4096_v24  ;;  %v4115_v31 = vcombine.low %v1426_v40, %v5980_v22  ;;  %v1717_v24 = vsel %vm984_vm3, %v1715_v20, %v1716_v21  ;;  %v5356_v22 = vld [vmem:[#allocation7 + $0x120] sm:$0xff]  }
 0x1ce   : > { %4716 = vmatprep.subr.bf16.mxu1 %v5325_v34  ;;  %4796 = vmatprep.subr.bf16.mxu0 %v5361_v30 }
 0x1cf   : > { %v1447_v44 = vrot.slane %v4115_v31, 1  ;;  %v1575_v56 = vshrl.u32 %v4115_v31, 16  ;;  %v1578_v57 = vshll.u32 %v4115_v31, 16 }
 0x1d0   : > { %4797 = vmatpush3.bf16.msra.mxu0 %v5361_v30  ;;  %v5376_v30 = vld [vmem:[#allocation7 + $0x170] sm:$0xff]  }
 0x1d1   : > { %4717 = vmatpush3.bf16.msra.mxu1 %v5325_v34  ;;  %v1449_v48 = vsel %vm708_vm1, %v1447_v44, %v1448_v45  ;;  %v1577_v1 = vrot.slane %v1575_v56, 1  ;;  %v1580_v2 = vrot.slane %v1578_v57, 2  ;;  %4798 = vmatprep.subr.bf16.mxu0 %v5362_v32  ;;  %v5364_v34 = vld [vmem:[#allocation7 + $0x1a0] sm:$0xff]  }
 0x1d2   : > { %4718 = vmatprep.subr.bf16.mxu1 %v5326_v35 }
 0x1d3   : > { %v1581_v6 = vor.u32 %v1580_v2, %v1577_v1 }
 0x1d4   : > { %4799 = vmatpush3.bf16.msra.mxu0 %v5362_v32 }
 0x1d5   : > { %4719 = vmatpush3.bf16.msra.mxu1 %v5326_v35  ;;  %v1590_v9 = vsel %vm838_vm2, %v1581_v6, %v1589_v7  ;;  %4800 = vmatprep.subr.bf16.mxu0 %v5363_v33  ;;  %v5365_v35 = vld [vmem:[#allocation7 + $0x1a8] sm:$0xff]  }
 0x1d6   : > { %4720 = vmatprep.subr.bf16.mxu1 %v5327_v36 }
 0x1d8   : > { %4801 = vmatpush3.bf16.msra.mxu0 %v5363_v33  ;;  %v5377_v33 = vld [vmem:[#allocation7 + $0x178] sm:$0xff]  }
 0x1d9   : > { %4721 = vmatpush3.bf16.msra.mxu1 %v5327_v36  ;;  %4802 = vmatprep.subr.bf16.mxu0 %v5364_v34  ;;  %v5366_v36 = vld [vmem:[#allocation7 + $0x1b0] sm:$0xff]  }
 0x1da   : > { %4722 = vmatprep.subr.bf16.mxu1 %v5328_v37 }
 0x1dc   : > { %4803 = vmatpush3.bf16.msra.mxu0 %v5364_v34 }
 0x1dd   : > { %4723 = vmatpush3.bf16.msra.mxu1 %v5328_v37  ;;  %4804 = vmatprep.subr.bf16.mxu0 %v5365_v35  ;;  %v5367_v37 = vld [vmem:[#allocation7 + $0x1b8] sm:$0xff]  }
 0x1de   : > { %4724 = vmatprep.subr.bf16.mxu1 %v5329_v38 }
 0x1e0   : > { %4805 = vmatpush3.bf16.msra.mxu0 %v5365_v35  ;;  %v5379_v35 = vld [vmem:[#allocation7 + $0x1c0] sm:$0xff]  }
 0x1e1   : > { %4725 = vmatpush3.bf16.msra.mxu1 %v5329_v38  ;;  %4806 = vmatprep.subr.bf16.mxu0 %v5366_v36  ;;  %v5370_v38 = vld [vmem:[#allocation7 + $0x140] sm:$0xff]  }
 0x1e2   : > { %4726 = vmatprep.subr.bf16.mxu1 %v5330_v39 }
 0x1e4   : > { %4807 = vmatpush3.bf16.msra.mxu0 %v5366_v36 }
 0x1e5   : > { %4727 = vmatpush3.bf16.msra.mxu1 %v5330_v39  ;;  %4808 = vmatprep.subr.bf16.mxu0 %v5367_v37  ;;  %v4143_v39 = vld [vmem:[%s6204_s4 + $0x1] ss:$0 sm:$0xff] }
 0x1e6   : > { %4728 = vmatprep.subr.bf16.mxu1 %v5331_v41 }
 0x1e8   : > { %4809 = vmatpush3.bf16.msra.mxu0 %v5367_v37 }
 0x1e9   : > { %4729 = vmatpush3.bf16.msra.mxu1 %v5331_v41  ;;  %4814 = vmatprep.subr.bf16.mxu0 %v5370_v38  ;;  %v4145_v41 = vld [vmem:[%s6205_s5 + $0x1] ss:$0 sm:$0xff] }
 0x1ea   : > { %4734 = vmatprep.subr.bf16.mxu1 %v5333_v42 }
 0x1ec   : > { %4731 = vmatmul.mubr.bf16.vlgmr.msra.gmra.mrb[4].mxu1 %v4106_v46 }
 0x1ed   : > { %4735 = vmatpush3.bf16.msra.mxu1 %v5333_v42  ;;  %4750 = vmatprep.mubr.bf16.mxu1 %v1449_v48 }
 0x1ee   : > { %4736 = vmatprep.subr.bf16.mxu1 %v5335_v47 }
 0x1f1   : > { %4737 = vmatpush3.bf16.msra.mxu1 %v5335_v47 }
 0x1f2   : > { %4738 = vmatprep.subr.bf16.mxu1 %v5336_v49 }
 0x1f5   : > { %4739 = vmatpush3.bf16.msra.mxu1 %v5336_v49 }
 0x1f6   : > { %4740 = vmatprep.subr.bf16.mxu1 %v5337_v50 }
 0x1f9   : > { %4741 = vmatpush3.bf16.msra.mxu1 %v5337_v50 }
 0x1fa   : > { %4742 = vmatprep.subr.bf16.mxu1 %v5338_v51 }
 0x1fd   : > { %4743 = vmatpush3.bf16.msra.mxu1 %v5338_v51 }
 0x1fe   : > { %4744 = vmatprep.subr.bf16.mxu1 %v5339_v53 }
 0x201   : > { %4745 = vmatpush3.bf16.msra.mxu1 %v5339_v53  ;;  %v1855_v53 = vrot.slane %v5965_v61, 4 }
 0x202   : > { %4746 = vmatprep.subr.bf16.mxu1 %v5340_v55 }
 0x203   : > { %v1856_v56 = vsel %vm1849_vm6, %v1853_v52, %v1855_v53 }
 0x205   : > { %4747 = vmatpush3.bf16.msra.mxu1 %v5340_v55  ;;  %v1851_v55 = vrot.slane %v5968_v62, 4 }
 0x206   : > { %4748 = vmatprep.subr.bf16.mxu1 %v5341_v0 }
 0x207   : > { %v1854_v1 = vsel %vm1849_vm6, %v1851_v55, %v1853_v52 }
 0x209   : > { %4749 = vmatpush3.bf16.msra.mxu1 %v5341_v0  ;;  %v1852_v0 = vsel %vm1849_vm6, %v1850_v54, %v1851_v55 }
 0x20a   : > { %4754 = vmatprep.subr.bf16.mxu1 %v5342_v5 }
 0x20c   : > { %4751 = vmatmul.mubr.bf16.vlgmr.msra.gmra.mrb[4].mxu1 %v1448_v45 }
 0x20d   : > { %4755 = vmatpush3.bf16.msra.mxu1 %v5342_v5  ;;  %4770 = vmatprep.mubr.bf16.mxu1 %v1590_v9 }
 0x20e   : > { %4756 = vmatprep.subr.bf16.mxu1 %v5344_v8 }
 0x211   : > { %4757 = vmatpush3.bf16.msra.mxu1 %v5344_v8 }
 0x212   : > { %4758 = vmatprep.subr.bf16.mxu1 %v5345_v10 }
 0x215   : > { %4759 = vmatpush3.bf16.msra.mxu1 %v5345_v10 }
 0x216   : > { %4760 = vmatprep.subr.bf16.mxu1 %v5346_v11 }
 0x219   : > { %4761 = vmatpush3.bf16.msra.mxu1 %v5346_v11 }
 0x21a   : > { %4762 = vmatprep.subr.bf16.mxu1 %v5347_v12 }
 0x21d   : > { %4763 = vmatpush3.bf16.msra.mxu1 %v5347_v12 }
 0x21e   : > { %4764 = vmatprep.subr.bf16.mxu1 %v5348_v13 }
 0x221   : > { %4765 = vmatpush3.bf16.msra.mxu1 %v5348_v13 }
 0x222   : > { %4766 = vmatprep.subr.bf16.mxu1 %v5349_v14 }
 0x225   : > { %4767 = vmatpush3.bf16.msra.mxu1 %v5349_v14 }
 0x226   : > { %4768 = vmatprep.subr.bf16.mxu1 %v5350_v17 }
 0x229   : > { %4769 = vmatpush3.bf16.msra.mxu1 %v5350_v17 }
 0x22a   : > { %4774 = vmatprep.subr.bf16.mxu1 %v5351_v19 }
 0x22c   : > { %4771 = vmatmul.mubr.bf16.vlgmr.msra.gmra.mrb[4].mxu1 %v1589_v7 }
 0x22d   : > { %4775 = vmatpush3.bf16.msra.mxu1 %v5351_v19  ;;  %4790 = vmatprep.mubr.bf16.mxu1 %v1717_v24 }
 0x22e   : > { %4776 = vmatprep.subr.bf16.mxu1 %v5353_v23 }
 0x231   : > { %4777 = vmatpush3.bf16.msra.mxu1 %v5353_v23 }
 0x232   : > { %4778 = vmatprep.subr.bf16.mxu1 %v5354_v25 }
 0x235   : > { %4779 = vmatpush3.bf16.msra.mxu1 %v5354_v25 }
 0x236   : > { %4780 = vmatprep.subr.bf16.mxu1 %v5355_v26 }
 0x239   : > { %4781 = vmatpush3.bf16.msra.mxu1 %v5355_v26 }
 0x23a   : > { %4782 = vmatprep.subr.bf16.mxu1 %v5356_v22 }
 0x23d   : > { %4783 = vmatpush3.bf16.msra.mxu1 %v5356_v22  ;;  %v5371_v22 = vld [vmem:[#allocation7 + $0x148] sm:$0xff]  }
 0x23e   : > { %4784 = vmatprep.subr.bf16.mxu1 %v5357_v27 }
 0x241   : > { %4785 = vmatpush3.bf16.msra.mxu1 %v5357_v27  ;;  %v5372_v27 = vld [vmem:[#allocation7 + $0x150] sm:$0xff]  }
 0x242   : > { %4786 = vmatprep.subr.bf16.mxu1 %v5358_v28 }
 0x245   : > { %4787 = vmatpush3.bf16.msra.mxu1 %v5358_v28  ;;  %v5373_v28 = vld [vmem:[#allocation7 + $0x158] sm:$0xff]  }
 0x246   : > { %4788 = vmatprep.subr.bf16.mxu1 %v5359_v29 }
 0x249   : > { %4789 = vmatpush3.bf16.msra.mxu1 %v5359_v29  ;;  %v5374_v29 = vld [vmem:[#allocation7 + $0x160] sm:$0xff]  }
 0x24c   : > { %4791 = vmatmul.mubr.bf16.vlgmr.msra.gmra.mrb[4].mxu1 %v1716_v21 }
 0x31f   : > { %v4792_v40 = vpop.f32.mrb[4].mxu1 }
 0x320   : > { %v1831_v31 = vmul.f32 %v4792_v40, %v4143_v39  ;;  %v1802_v42 = vpop.f32.mrb[5].mxu1 }
 0x321   : > { %v1829_v43 = vmul.f32 %v4143_v39, %v1802_v42  ;;  %v4793_v44 = vpop.f32.mrb[6].mxu1  ;;  %v5384_v42 = vld [vmem:[#allocation7 + $0x1e0] sm:$0xff]  }
 0x322   : > { %v1843_v45 = vadd.f32 %v4145_v41, %v1831_v31  ;;  %v1832_v46 = vmul.f32 %v4793_v44, %v4143_v39  ;;  %v1805_v47 = vpop.f32.mrb[7].mxu1  ;;  %v5383_v31 = vld [vmem:[#allocation7 + $0x1d8] sm:$0xff]   ;;  %v5385_v44 = vld [vmem:[#allocation7 + $0x1e8] sm:$0xff]  }
 0x323   : > { %v1841_v48 = vadd.f32 %v4145_v41, %v1829_v43  ;;  %v1830_v49 = vmul.f32 %v4143_v39, %v1805_v47  ;;  %v5381_v39 = vld [vmem:[#allocation7 + $0x1c8] sm:$0xff]  }
 0x324   : > { %5505 = vtanh.f32 %v1843_v45  ;;  %v1844_v50 = vadd.f32 %v4145_v41, %v1832_v46  ;;  %v5386_v46 = vld [vmem:[#allocation7 + $0x1f0] sm:$0xff]  }
 0x325   : > { %5507 = vtanh.f32 %v1841_v48  ;;  %v1842_v51 = vadd.f32 %v4145_v41, %v1830_v49  ;;  %v5382_v41 = vld [vmem:[#allocation7 + $0x1d0] sm:$0xff]  }
 0x326   : > { %5509 = vtanh.f32 %v1844_v50 }
 0x327   : > { %5511 = vtanh.f32 %v1842_v51  ;;  %v5387_v51 = vld [vmem:[#allocation7 + $0x1f8] sm:$0xff]  }
 0x32e   : > { %v5506_v57 = vpop.eup %5505 }
 0x32f   : > { %v5508_v58 = vpop.eup %5507  ;;  %v1863_v59 = vmul.f32 %v5506_v57, %v1856_v56  ;;  %v5388_v56 = vld [vmem:[#allocation7 + $0x200] sm:$0xff]  }
 0x330   : > { %v5510_v2 = vpop.eup %5509  ;;  %v1861_v6 = vmul.f32 %v5508_v58, %v1852_v0 }
 0x331   : > { %v5512_v3 = vpop.eup %5511  ;;  %v4314_v4 = vpack.c.bf16 %v1863_v59, %v1863_v59  ;;  %v1864_v5 = vmul.f32 %v5510_v2, %v1855_v53  ;;  %v5390_v59 = vld [vmem:[#allocation7 + $0x208] sm:$0xff]   ;;  %v5392_v2 = vld [vmem:[#allocation7 + $0x218] sm:$0xff]  }
 0x332   : > { %v1862_v7 = vmul.f32 %v5512_v3, %v1854_v1  ;;  %v5391_v1 = vld [vmem:[#allocation7 + $0x210] sm:$0xff]   ;;  %v5393_v3 = vld [vmem:[#allocation7 + $0x220] sm:$0xff]  }
 0x333   : > { %1883 = vst [vmem:[#allocation3 + $0x8] sm:$0xf] %v4314_v4  ;;  %v4315_v8 = vpack.c.bf16 %v1864_v5, %v1864_v5  ;;  %v5394_v4 = vld [vmem:[#allocation7 + $0x228] sm:$0xff]   ;;  %v5395_v5 = vld [vmem:[#allocation7 + $0x230] sm:$0xff]  }
 0x334   : > { %v4336_v9 = vpack.c.bf16 %v1862_v7, %v1861_v6  ;;  %v5396_v7 = vld [vmem:[#allocation7 + $0x238] sm:$0xff]  }
 0x335   : > { %1884 = vst [vmem:[#allocation3 + $0xc] sm:$0x3] %v4315_v8 }
 0x336   : > { %4337 = vst [vmem:[#allocation3] sm:$0xff] %v4336_v9   ;;  %v5397_v9 = vld [vmem:[#allocation7 + $0x240] sm:$0xff]  }
 0x33a   : > { %v6013_v10 = vld [vmem:[#allocation3 + $0x8] sm:$0xf] }
 0x33c   : > { %v1905_v11 = vld [vmem:[#allocation3 + $0xc] sm:$0x1] }
 0x33d   : > { %v1885_v12 = vld [vmem:[#allocation3] sm:$0xf]  ;;  %v6015_v13 = vld [vmem:[#allocation3 + $0x4] sm:$0xf]  ;;  %v6018_v14 = vcombine.low %v6013_v10, %v1905_v11  ;;  %v2270_v43 = vld [vmem:[#allocation3 + $0xc] sm:$0x3] }
 0x33e   : > { %v4150_v16 = vcombine.low %v1885_v12, %v6015_v13  ;;  %v2145_v32 = vld [vmem:[#allocation3] sm:$0xe]  ;;  %v6030_v45 = vcombine.low %v6013_v10, %v2270_v43  ;;  %v2560_v43 = vrot.slane %v5702_v60, 6 }
 0x33f   : > { %v1941_v17 = vshll.u32 %v6018_v14, 16  ;;  %v1945_v24 = vshrl.u32 %v6018_v14, 16  ;;  %v4169_v34 = vcombine.low %v2145_v32, %v6015_v13  ;;  %v2167_v37 = vrot.slane %v6018_v14, 1  ;;  %v2409_v6 = vld [vmem:[#allocation3] sm:$0xc] }
 0x340   : > { %v1936_v18 = vshll.u32 %v4150_v16, 16  ;;  %v1934_v19 = vshrl.u32 %v4150_v16, 16  ;;  %v2300_v49 = vshrl.u32 %v6030_v45, 16  ;;  %v2303_v50 = vshll.u32 %v6030_v45, 16  ;;  %v5399_v12 = vld [vmem:[#allocation7 + $0x248] sm:$0xff]  }
 0x341   : > { %v1943_v21 = vrot.slane %v1941_v17, 1  ;;  %v2166_v36 = vrot.slane %v4169_v34, 1  ;;  %v2292_v47 = vshrl.u32 %v4169_v34, 16  ;;  %v2295_v48 = vshll.u32 %v4169_v34, 16  ;;  %v5401_v17 = vld [vmem:[#allocation7 + $0x258] sm:$0xff]  }
 0x342   : > { %v1938_v20 = vrot.slane %v1936_v18, 1  ;;  %v2302_v54 = vrot.slane %v2300_v49, 1  ;;  %v2305_v55 = vrot.slane %v2303_v50, 2  ;;  %v4187_v8 = vcombine.low %v2409_v6, %v6015_v13  ;;  %v5402_v13 = vld [vmem:[#allocation7 + $0x260] sm:$0xff]   ;;  %v5403_v18 = vld [vmem:[#allocation7 + $0x268] sm:$0xff]  }
 0x343   : > { %v1947_v26 = vor.u32 %v1945_v24, %v1943_v21  ;;  %v2168_v40 = vsel %vm708_vm1, %v2166_v36, %v2167_v37  ;;  %v2294_v52 = vrot.slane %v2292_v47, 1  ;;  %v2297_v53 = vrot.slane %v2295_v48, 2  ;;  %v5408_v24 = vld [vmem:[#allocation7 + $0x2d0] sm:$0xff]   ;;  %v4199_v32 = vld [vmem:[%s6205_s5 + $0x2] ss:$0 sm:$0xff] }
 0x344   : > { %v1939_v23 = vor.u32 %v1938_v20, %v1934_v19  ;;  %v2306_v58 = vor.u32 %v2305_v55, %v2302_v54  ;;  %v2431_v11 = vrot.slane %v6030_v45, 2  ;;  %v5404_v19 = vld [vmem:[#allocation7 + $0x270] sm:$0xff]   ;;  %v5405_v20 = vld [vmem:[#allocation7 + $0x278] sm:$0xff]  }
 0x345   : > { %v2298_v57 = vor.u32 %v2297_v53, %v2294_v52 }
 0x346   : > { %v1944_v25 = vsel %vm468_vm0, %v1939_v23, %v1943_v21  ;;  %v5406_v21 = vld [vmem:[#allocation7 + $0x2c0] sm:$0xff]   ;;  %v5407_v23 = vld [vmem:[#allocation7 + $0x2c8] sm:$0xff]  }
 0x347   : > { %4810 = vmatprep.mubr.bf16.mxu0 %v1944_v25  ;;  %v2307_v0 = vsel %vm838_vm2, %v2298_v57, %v2306_v58  ;;  %4894 = vmatprep.subr.bf16.mxu1 %v5406_v21  ;;  %v5409_v25 = vld [vmem:[#allocation7 + $0x2d8] sm:$0xff]  }
 0x348   : > { %4811 = vmatmul.mubr.bf16.vlgmr.msra.gmra.mrb[4].mxu0 %v1947_v26  ;;  %4895 = vmatpush3.bf16.msra.mxu1 %v5406_v21  ;;  %v5410_v26 = vld [vmem:[#allocation7 + $0x2e0] sm:$0xff]  }
 0x349   : > { %4815 = vmatpush3.bf16.msra.mxu0 %v5370_v38  ;;  %4830 = vmatprep.mubr.bf16.mxu0 %v4150_v16  ;;  %v4160_v38 = vcombine.low %v6013_v10, %v6013_v10  ;;  %v2430_v10 = vrot.slane %v4187_v8, 2  ;;  %v5400_v16 = vld [vmem:[#allocation7 + $0x250] sm:$0xff]   ;;  %v5417_v8 = vld [vmem:[#allocation7 + $0x288] sm:$0xff]  }
 0x34a   : > { %4816 = vmatprep.subr.bf16.mxu0 %v5371_v22  ;;  %4896 = vmatprep.subr.bf16.mxu1 %v5407_v23 }
 0x34b   : > { %v2432_v14 = vsel %vm984_vm3, %v2430_v10, %v2431_v11  ;;  %v5419_v10 = vld [vmem:[#allocation7 + $0x298] sm:$0xff]  }
 0x34c   : > { %4897 = vmatpush3.bf16.msra.mxu1 %v5407_v23  ;;  %v5427_v23 = vld [vmem:[#allocation7 + $0x308] sm:$0xff]  }
 0x34d   : > { %4817 = vmatpush3.bf16.msra.mxu0 %v5371_v22  ;;  %4898 = vmatprep.subr.bf16.mxu1 %v5408_v24  ;;  %v5411_v22 = vld [vmem:[#allocation7 + $0x2e8] sm:$0xff]  }
 0x34e   : > { %4818 = vmatprep.subr.bf16.mxu0 %v5372_v27 }
 0x350   : > { %4899 = vmatpush3.bf16.msra.mxu1 %v5408_v24 }
 0x351   : > { %4819 = vmatpush3.bf16.msra.mxu0 %v5372_v27  ;;  %4900 = vmatprep.subr.bf16.mxu1 %v5409_v25  ;;  %v5412_v27 = vld [vmem:[#allocation7 + $0x2f0] sm:$0xff]  }
 0x352   : > { %4820 = vmatprep.subr.bf16.mxu0 %v5373_v28 }
 0x354   : > { %4901 = vmatpush3.bf16.msra.mxu1 %v5409_v25  ;;  %v5428_v25 = vld [vmem:[#allocation7 + $0x310] sm:$0xff]  }
 0x355   : > { %4821 = vmatpush3.bf16.msra.mxu0 %v5373_v28  ;;  %4902 = vmatprep.subr.bf16.mxu1 %v5410_v26  ;;  %v5413_v28 = vld [vmem:[#allocation7 + $0x2f8] sm:$0xff]  }
 0x356   : > { %4822 = vmatprep.subr.bf16.mxu0 %v5374_v29 }
 0x358   : > { %4903 = vmatpush3.bf16.msra.mxu1 %v5410_v26  ;;  %v5429_v26 = vld [vmem:[#allocation7 + $0x318] sm:$0xff]  }
 0x359   : > { %4823 = vmatpush3.bf16.msra.mxu0 %v5374_v29  ;;  %4904 = vmatprep.subr.bf16.mxu1 %v5411_v22  ;;  %v5416_v29 = vld [vmem:[#allocation7 + $0x280] sm:$0xff]  }
 0x35a   : > { %4824 = vmatprep.subr.bf16.mxu0 %v5375_v15 }
 0x35c   : > { %4905 = vmatpush3.bf16.msra.mxu1 %v5411_v22  ;;  %v5430_v22 = vld [vmem:[#allocation7 + $0x320] sm:$0xff]  }
 0x35d   : > { %4825 = vmatpush3.bf16.msra.mxu0 %v5375_v15  ;;  %4906 = vmatprep.subr.bf16.mxu1 %v5412_v27  ;;  %v4197_v15 = vld [vmem:[%s6204_s4 + $0x2] ss:$0 sm:$0xff] }
 0x35e   : > { %4826 = vmatprep.subr.bf16.mxu0 %v5376_v30 }
 0x360   : > { %4907 = vmatpush3.bf16.msra.mxu1 %v5412_v27  ;;  %v5431_v27 = vld [vmem:[#allocation7 + $0x328] sm:$0xff]  }
 0x361   : > { %4827 = vmatpush3.bf16.msra.mxu0 %v5376_v30  ;;  %4908 = vmatprep.subr.bf16.mxu1 %v5413_v28 }
 0x362   : > { %4828 = vmatprep.subr.bf16.mxu0 %v5377_v33 }
 0x364   : > { %4909 = vmatpush3.bf16.msra.mxu1 %v5413_v28  ;;  %v5432_v28 = vld [vmem:[#allocation7 + $0x330] sm:$0xff]  }
 0x365   : > { %4829 = vmatpush3.bf16.msra.mxu0 %v5377_v33  ;;  %4914 = vmatprep.subr.bf16.mxu1 %v5416_v29 }
 0x366   : > { %4834 = vmatprep.subr.bf16.mxu0 %v5379_v35 }
 0x368   : > { %4831 = vmatmul.mubr.bf16.vlgmr.msra.gmra.mrb[4].mxu0 %v4160_v38 }
 0x369   : > { %4835 = vmatpush3.bf16.msra.mxu0 %v5379_v35  ;;  %4850 = vmatprep.mubr.bf16.mxu0 %v2168_v40 }
 0x36a   : > { %4836 = vmatprep.subr.bf16.mxu0 %v5381_v39 }
 0x36d   : > { %4837 = vmatpush3.bf16.msra.mxu0 %v5381_v39 }
 0x36e   : > { %4838 = vmatprep.subr.bf16.mxu0 %v5382_v41 }
 0x371   : > { %4839 = vmatpush3.bf16.msra.mxu0 %v5382_v41 }
 0x372   : > { %4840 = vmatprep.subr.bf16.mxu0 %v5383_v31 }
 0x375   : > { %4841 = vmatpush3.bf16.msra.mxu0 %v5383_v31  ;;  %v2563_v31 = vrot.slane %v5703_v63, 6 }
 0x376   : > { %4842 = vmatprep.subr.bf16.mxu0 %v5384_v42 }
 0x379   : > { %4843 = vmatpush3.bf16.msra.mxu0 %v5384_v42  ;;  %v2565_v42 = vrot.slane %v5965_v61, 6 }
 0x37a   : > { %4844 = vmatprep.subr.bf16.mxu0 %v5385_v44 }
 0x37b   : > { %v2566_v45 = vsel %vm2559_vm7, %v2563_v31, %v2565_v42 }
 0x37d   : > { %4845 = vmatpush3.bf16.msra.mxu0 %v5385_v44  ;;  %v2561_v44 = vrot.slane %v5968_v62, 6 }
 0x37e   : > { %4846 = vmatprep.subr.bf16.mxu0 %v5386_v46 }
 0x37f   : > { %v2562_v49 = vsel %vm2559_vm7, %v2560_v43, %v2561_v44  ;;  %v2564_v50 = vsel %vm2559_vm7, %v2561_v44, %v2563_v31  ;;  %v5436_v31 = vld [vmem:[#allocation7 + $0x348] sm:$0xff]   ;;  %v5437_v43 = vld [vmem:[#allocation7 + $0x350] sm:$0xff]   ;;  %v5438_v44 = vld [vmem:[#allocation7 + $0x358] sm:$0xff]  }
 0x381   : > { %4847 = vmatpush3.bf16.msra.mxu0 %v5386_v46 }
 0x382   : > { %4848 = vmatprep.subr.bf16.mxu0 %v5387_v51 }
 0x385   : > { %4849 = vmatpush3.bf16.msra.mxu0 %v5387_v51 }
 0x386   : > { %4854 = vmatprep.subr.bf16.mxu0 %v5388_v56 }
 0x388   : > { %4851 = vmatmul.mubr.bf16.vlgmr.msra.gmra.mrb[4].mxu0 %v2167_v37 }
 0x389   : > { %4855 = vmatpush3.bf16.msra.mxu0 %v5388_v56  ;;  %4870 = vmatprep.mubr.bf16.mxu0 %v2307_v0 }
 0x38a   : > { %4856 = vmatprep.subr.bf16.mxu0 %v5390_v59 }
 0x38d   : > { %4857 = vmatpush3.bf16.msra.mxu0 %v5390_v59 }
 0x38e   : > { %4858 = vmatprep.subr.bf16.mxu0 %v5391_v1 }
 0x391   : > { %4859 = vmatpush3.bf16.msra.mxu0 %v5391_v1 }
 0x392   : > { %4860 = vmatprep.subr.bf16.mxu0 %v5392_v2 }
 0x395   : > { %4861 = vmatpush3.bf16.msra.mxu0 %v5392_v2 }
 0x396   : > { %4862 = vmatprep.subr.bf16.mxu0 %v5393_v3 }
 0x399   : > { %4863 = vmatpush3.bf16.msra.mxu0 %v5393_v3 }
 0x39a   : > { %4864 = vmatprep.subr.bf16.mxu0 %v5394_v4 }
 0x39d   : > { %4865 = vmatpush3.bf16.msra.mxu0 %v5394_v4 }
 0x39e   : > { %4866 = vmatprep.subr.bf16.mxu0 %v5395_v5 }
 0x3a1   : > { %4867 = vmatpush3.bf16.msra.mxu0 %v5395_v5 }
 0x3a2   : > { %4868 = vmatprep.subr.bf16.mxu0 %v5396_v7 }
 0x3a5   : > { %4869 = vmatpush3.bf16.msra.mxu0 %v5396_v7 }
 0x3a6   : > { %4874 = vmatprep.subr.bf16.mxu0 %v5397_v9 }
 0x3a8   : > { %4871 = vmatmul.mubr.bf16.vlgmr.msra.gmra.mrb[4].mxu0 %v2306_v58 }
 0x3a9   : > { %4875 = vmatpush3.bf16.msra.mxu0 %v5397_v9  ;;  %4890 = vmatprep.mubr.bf16.mxu0 %v2432_v14  ;;  %v5418_v9 = vld [vmem:[#allocation7 + $0x290] sm:$0xff]  }
 0x3aa   : > { %4876 = vmatprep.subr.bf16.mxu0 %v5399_v12  ;;  %v5422_v14 = vld [vmem:[#allocation7 + $0x2b0] sm:$0xff]  }
 0x3ad   : > { %4877 = vmatpush3.bf16.msra.mxu0 %v5399_v12  ;;  %v5421_v12 = vld [vmem:[#allocation7 + $0x2a8] sm:$0xff]  }
 0x3ae   : > { %4878 = vmatprep.subr.bf16.mxu0 %v5400_v16 }
 0x3b1   : > { %4879 = vmatpush3.bf16.msra.mxu0 %v5400_v16 }
 0x3b2   : > { %4880 = vmatprep.subr.bf16.mxu0 %v5401_v17 }
 0x3b5   : > { %4881 = vmatpush3.bf16.msra.mxu0 %v5401_v17  ;;  %v5423_v17 = vld [vmem:[#allocation7 + $0x2b8] sm:$0xff]  }
 0x3b6   : > { %4882 = vmatprep.subr.bf16.mxu0 %v5402_v13 }
 0x3b9   : > { %4883 = vmatpush3.bf16.msra.mxu0 %v5402_v13 }
 0x3ba   : > { %4884 = vmatprep.subr.bf16.mxu0 %v5403_v18 }
 0x3bd   : > { %4885 = vmatpush3.bf16.msra.mxu0 %v5403_v18  ;;  %v5425_v18 = vld [vmem:[#allocation7 + $0x300] sm:$0xff]  }
 0x3be   : > { %4886 = vmatprep.subr.bf16.mxu0 %v5404_v19 }
 0x3c1   : > { %4887 = vmatpush3.bf16.msra.mxu0 %v5404_v19 }
 0x3c2   : > { %4888 = vmatprep.subr.bf16.mxu0 %v5405_v20 }
 0x3c5   : > { %4889 = vmatpush3.bf16.msra.mxu0 %v5405_v20 }
 0x3c6   : > { %4994 = vmatprep.subr.bf16.mxu0 %v5702_v60 }
 0x3c8   : > { %4891 = vmatmul.mubr.bf16.vlgmr.msra.gmra.mrb[4].mxu0 %v2431_v11  ;;  %v5420_v11 = vld [vmem:[#allocation7 + $0x2a0] sm:$0xff]  }
 0x3c9   : > { %5010 = vmatprep.mubr.msk.bf16.mxu0 %vm5704_vm8, %v5702_v60 }
 0x49b   : > { %v4892_v30 = vpop.f32.mrb[4].mxu0 }
 0x49c   : > { %v2544_v33 = vmul.f32 %v4892_v30, %v4197_v15  ;;  %v2517_v34 = vpop.f32.mrb[5].mxu0 }
 0x49d   : > { %v2542_v35 = vmul.f32 %v4197_v15, %v2517_v34  ;;  %v4893_v36 = vpop.f32.mrb[6].mxu0 }
 0x49e   : > { %v2555_v37 = vadd.f32 %v4199_v32, %v2544_v33  ;;  %v2520_v38 = vpop.f32.mrb[7].mxu0 }
 0x49f   : > { %v2553_v39 = vadd.f32 %v4199_v32, %v2542_v35  ;;  %v2543_v40 = vmul.f32 %v4197_v15, %v2520_v38 }
 0x4a0   : > { %5513 = vtanh.f32 %v2555_v37  ;;  %v5434_v37 = vld [vmem:[#allocation7 + $0x340] sm:$0xff]  }
 0x4a1   : > { %5515 = vtanh.f32 %v2553_v39  ;;  %v2554_v41 = vadd.f32 %v4199_v32, %v2543_v40  ;;  %v5433_v32 = vld [vmem:[#allocation7 + $0x338] sm:$0xff]  }
 0x4a3   : > { %5517 = vtanh.f32 %v2554_v41 }
 0x4aa   : > { %v5514_v46 = vpop.eup %5513 }
 0x4ab   : > { %v5516_v47 = vpop.eup %5515  ;;  %v2572_v48 = vmul.f32 %v5514_v46, %v2566_v45  ;;  %v5439_v45 = vld [vmem:[#allocation7 + $0x360] sm:$0xff]   ;;  %v5440_v46 = vld [vmem:[#allocation7 + $0x368] sm:$0xff]  }
 0x4ac   : > { %v2570_v53 = vmul.f32 %v5516_v47, %v2562_v49  ;;  %v5441_v47 = vld [vmem:[#allocation7 + $0x370] sm:$0xff]   ;;  %v5442_v49 = vld [vmem:[#allocation7 + $0x378] sm:$0xff]  }
 0x4ad   : > { %v5518_v51 = vpop.eup %5517  ;;  %v4318_v52 = vpack.c.bf16 %v2572_v48, %v2572_v48 }
 0x4ae   : > { %v2571_v54 = vmul.f32 %v5518_v51, %v2564_v50  ;;  %v5443_v51 = vld [vmem:[#allocation7 + $0x380] sm:$0xff]  }
 0x4af   : > { %2588 = vst [vmem:[#allocation2 + $0x8] sm:$0xf] %v4318_v52 }
 0x4b0   : > { %v4341_v55 = vpack.c.bf16 %v2571_v54, %v2570_v53  ;;  %v5445_v54 = vld [vmem:[#allocation7 + $0x388] sm:$0xff]  }
 0x4b2   : > { %4342 = vst [vmem:[#allocation2] sm:$0xff] %v4341_v55  }
 0x4b6   : > { %v6049_v63 = vld [vmem:[#allocation2 + $0x8] ss:$0 sps:$4 sm:$0x77]  }
 0x4b7   : > { %v2643_v59 = vshll.u32 %v6049_v63, 16  ;;  %v2647_v5 = vshrl.u32 %v6049_v63, 16  ;;  %v5424_v20 = vld [vmem:[#allocation2 + $0x8] ss:$0 sps:$4 sm:$0x33]   ;;  %v2871_v21 = vrot.slane %v6049_v63, 1 }
 0x4b8   : > { %v5446_v63 = vld [vmem:[#allocation7 + $0x390] sm:$0xff]  }
 0x4b9   : > { %v2589_v56 = vld [vmem:[#allocation2] sm:$0xf]  ;;  %v6051_v57 = vld [vmem:[#allocation2 + $0x4] sm:$0xf]  ;;  %v2645_v3 = vrot.slane %v2643_v59, 1  ;;  %v5450_v59 = vld [vmem:[#allocation7 + $0x3b0] sm:$0xff]  }
 0x4ba   : > { %v4203_v58 = vcombine.low %v2589_v56, %v6051_v57  ;;  %v2849_v16 = vld [vmem:[#allocation2] sm:$0xe] }
 0x4bb   : > { %v2649_v7 = vor.u32 %v2647_v5, %v2645_v3  ;;  %v4222_v13 = vcombine.low %v2849_v16, %v6051_v57  ;;  %v3113_v48 = vld [vmem:[#allocation2] sm:$0xc]  ;;  %v5456_v5 = vld [vmem:[#allocation9 + $0x60] sm:$0xff]  }
 0x4bc   : > { %v2638_v0 = vshll.u32 %v4203_v58, 16  ;;  %v2636_v1 = vshrl.u32 %v4203_v58, 16  ;;  %v4240_v50 = vcombine.low %v3113_v48, %v6051_v57  ;;  %v5447_v56 = vld [vmem:[#allocation7 + $0x398] sm:$0xff]   ;;  %v5448_v57 = vld [vmem:[#allocation7 + $0x3a0] sm:$0xff]   ;;  %v5468_v48 = vld [vmem:[#allocation9 + $0x30] sm:$0xff]  }
 0x4bd   : > { %v2870_v19 = vrot.slane %v4222_v13, 1  ;;  %v2996_v15 = vshrl.u32 %v4222_v13, 16  ;;  %v2999_v30 = vshll.u32 %v4222_v13, 16 }
 0x4be   : > { %v2640_v2 = vrot.slane %v2638_v0, 1  ;;  %v3134_v52 = vrot.slane %v4240_v50, 2  ;;  %v5451_v0 = vld [vmem:[#allocation7 + $0x3b8] sm:$0xff]   ;;  %v5470_v50 = vld [vmem:[#allocation9 + $0x80] sm:$0xff]  }
 0x4bf   : > { %v2872_v24 = vsel %vm708_vm1, %v2870_v19, %v2871_v21  ;;  %v2998_v35 = vrot.slane %v2996_v15, 1  ;;  %v3001_v36 = vrot.slane %v2999_v30, 2 }
 0x4c0   : > { %v2641_v4 = vor.u32 %v2640_v2, %v2636_v1  ;;  %v5452_v1 = vld [vmem:[#allocation9 + $0x40] sm:$0xff]   ;;  %v5453_v2 = vld [vmem:[#allocation9 + $0x48] sm:$0xff]  }
 0x4c1   : > { %v3002_v40 = vor.u32 %v3001_v36, %v2998_v35  ;;  %4995 = vmatpush3.bf16.msra.mxu0 %v5452_v1  ;;  %v5483_v1 = vld [vmem:[#allocation9 + $0xe0] sm:$0xff]  }
 0x4c2   : > { %v2646_v6 = vsel %vm468_vm0, %v2641_v4, %v2645_v3  ;;  %4996 = vmatprep.subr.bf16.mxu0 %v5702_v60  ;;  %v5454_v3 = vld [vmem:[#allocation9 + $0x50] sm:$0xff]   ;;  %v5455_v4 = vld [vmem:[#allocation9 + $0x58] sm:$0xff]  }
 0x4c3   : > { %4910 = vmatprep.mubr.bf16.mxu1 %v2646_v6  ;;  %v5457_v6 = vld [vmem:[#allocation9 + $0x68] sm:$0xff]  }
 0x4c4   : > { %4911 = vmatmul.mubr.bf16.vlgmr.msra.gmra.mrb[8].mxu1 %v2649_v7  ;;  %v5458_v7 = vld [vmem:[#allocation9 + $0x70] sm:$0xff]  }
 0x4c5   : > { %4915 = vmatpush3.bf16.msra.mxu1 %v5416_v29  ;;  %4930 = vmatprep.mubr.bf16.mxu1 %v4203_v58  ;;  %v6060_v29 = vld [vmem:[#allocation2 + $0x8] ss:$0 sps:$4 sm:$0xff]   ;;  %v5449_v58 = vld [vmem:[#allocation7 + $0x3a8] sm:$0xff]  }
 0x4c6   : > { %4916 = vmatprep.subr.bf16.mxu1 %v5417_v8  ;;  %v3004_v33 = vshrl.u32 %v6060_v29, 16  ;;  %v3007_v34 = vshll.u32 %v6060_v29, 16  ;;  %v3135_v53 = vrot.slane %v6060_v29, 2  ;;  %4997 = vmatpush3.bf16.msra.mxu0 %v5453_v2  ;;  %v5484_v2 = vld [vmem:[#allocation9 + $0xe8] sm:$0xff]  }
 0x4c7   : > { %4998 = vmatprep.subr.bf16.mxu0 %v5702_v60 }
 0x4c8   : > { %v3006_v38 = vrot.slane %v3004_v33, 1  ;;  %v3009_v39 = vrot.slane %v3007_v34, 2  ;;  %v3136_v55 = vsel %vm984_vm3, %v3134_v52, %v3135_v53  ;;  %v5472_v52 = vld [vmem:[#allocation9 + $0x90] sm:$0xff]  }
 0x4c9   : > { %4917 = vmatpush3.bf16.msra.mxu1 %v5417_v8  ;;  %v5459_v8 = vld [vmem:[#allocation9 + $0x78] sm:$0xff]  }
 0x4ca   : > { %4918 = vmatprep.subr.bf16.mxu1 %v5418_v9  ;;  %v3010_v41 = vor.u32 %v3009_v39, %v3006_v38  ;;  %4999 = vmatpush3.bf16.msra.mxu0 %v5454_v3 }
 0x4cb   : > { %5000 = vmatprep.subr.bf16.mxu0 %v5702_v60 }
 0x4cc   : > { %v3011_v42 = vsel %vm838_vm2, %v3002_v40, %v3010_v41 }
 0x4cd   : > { %4919 = vmatpush3.bf16.msra.mxu1 %v5418_v9  ;;  %v4250_v9 = vld [vmem:[%s6204_s4 + $0x3] ss:$0 sm:$0xff] }
 0x4ce   : > { %4920 = vmatprep.subr.bf16.mxu1 %v5419_v10  ;;  %5001 = vmatpush3.bf16.msra.mxu0 %v5455_v4 }
 0x4cf   : > { %5002 = vmatprep.subr.bf16.mxu0 %v5702_v60 }
 0x4d1   : > { %4921 = vmatpush3.bf16.msra.mxu1 %v5419_v10 }
 0x4d2   : > { %4922 = vmatprep.subr.bf16.mxu1 %v5420_v11  ;;  %5003 = vmatpush3.bf16.msra.mxu0 %v5456_v5 }
 0x4d3   : > { %5004 = vmatprep.subr.bf16.mxu0 %v5702_v60 }
 0x4d5   : > { %4923 = vmatpush3.bf16.msra.mxu1 %v5420_v11  ;;  %v4252_v11 = vld [vmem:[%s6205_s5 + $0x3] ss:$0 sm:$0xff] }
 0x4d6   : > { %4924 = vmatprep.subr.bf16.mxu1 %v5421_v12  ;;  %5005 = vmatpush3.bf16.msra.mxu0 %v5457_v6  ;;  %v5485_v6 = vld [vmem:[#allocation9 + $0xf0] sm:$0xff]  }
 0x4d7   : > { %5006 = vmatprep.subr.bf16.mxu0 %v5702_v60 }
 0x4d9   : > { %4925 = vmatpush3.bf16.msra.mxu1 %v5421_v12 }
 0x4da   : > { %4926 = vmatprep.subr.bf16.mxu1 %v5422_v14  ;;  %5007 = vmatpush3.bf16.msra.mxu0 %v5458_v7 }
 0x4db   : > { %5008 = vmatprep.subr.bf16.mxu0 %v5702_v60 }
 0x4dd   : > { %4927 = vmatpush3.bf16.msra.mxu1 %v5422_v14 }
 0x4de   : > { %4928 = vmatprep.subr.bf16.mxu1 %v5423_v17  ;;  %5009 = vmatpush3.bf16.msra.mxu0 %v5459_v8 }
 0x4df   : > { %5014 = vmatprep.subr.bf16.mxu0 %v5702_v60 }
 0x4e1   : > { %4929 = vmatpush3.bf16.msra.mxu1 %v5423_v17 }
 0x4e2   : > { %4934 = vmatprep.subr.bf16.mxu1 %v5425_v18 }
 0x4e4   : > { %4931 = vmatmul.mubr.bf16.vlgmr.msra.gmra.mrb[8].mxu1 %v5424_v20 }
 0x4e5   : > { %4935 = vmatpush3.bf16.msra.mxu1 %v5425_v18  ;;  %4950 = vmatprep.mubr.bf16.mxu1 %v2872_v24 }
 0x4e6   : > { %4936 = vmatprep.subr.bf16.mxu1 %v5427_v23 }
 0x4e9   : > { %4937 = vmatpush3.bf16.msra.mxu1 %v5427_v23 }
 0x4ea   : > { %4938 = vmatprep.subr.bf16.mxu1 %v5428_v25 }
 0x4ed   : > { %4939 = vmatpush3.bf16.msra.mxu1 %v5428_v25 }
 0x4ee   : > { %4940 = vmatprep.subr.bf16.mxu1 %v5429_v26 }
 0x4f1   : > { %4941 = vmatpush3.bf16.msra.mxu1 %v5429_v26 }
 0x4f2   : > { %4942 = vmatprep.subr.bf16.mxu1 %v5430_v22 }
 0x4f5   : > { %4943 = vmatpush3.bf16.msra.mxu1 %v5430_v22 }
 0x4f6   : > { %4944 = vmatprep.subr.bf16.mxu1 %v5431_v27 }
 0x4f9   : > { %4945 = vmatpush3.bf16.msra.mxu1 %v5431_v27 }
 0x4fa   : > { %4946 = vmatprep.subr.bf16.mxu1 %v5432_v28 }
 0x4fd   : > { %4947 = vmatpush3.bf16.msra.mxu1 %v5432_v28 }
 0x4fe   : > { %4948 = vmatprep.subr.bf16.mxu1 %v5433_v32 }
 0x501   : > { %4949 = vmatpush3.bf16.msra.mxu1 %v5433_v32 }
 0x502   : > { %4954 = vmatprep.subr.bf16.mxu1 %v5434_v37 }
 0x504   : > { %4951 = vmatmul.mubr.bf16.vlgmr.msra.gmra.mrb[8].mxu1 %v2871_v21 }
 0x505   : > { %4955 = vmatpush3.bf16.msra.mxu1 %v5434_v37  ;;  %4970 = vmatprep.mubr.bf16.mxu1 %v3011_v42 }
 0x506   : > { %4956 = vmatprep.subr.bf16.mxu1 %v5436_v31 }
 0x509   : > { %4957 = vmatpush3.bf16.msra.mxu1 %v5436_v31  ;;  %v5462_v31 = vld [vmem:[#allocation9] sm:$0xff]  }
 0x50a   : > { %4958 = vmatprep.subr.bf16.mxu1 %v5437_v43 }
 0x50d   : > { %4959 = vmatpush3.bf16.msra.mxu1 %v5437_v43  ;;  %v5463_v43 = vld [vmem:[#allocation9 + $0x8] sm:$0xff]  }
 0x50e   : > { %4960 = vmatprep.subr.bf16.mxu1 %v5438_v44 }
 0x511   : > { %4961 = vmatpush3.bf16.msra.mxu1 %v5438_v44  ;;  %v5464_v44 = vld [vmem:[#allocation9 + $0x10] sm:$0xff]  }
 0x512   : > { %4962 = vmatprep.subr.bf16.mxu1 %v5439_v45 }
 0x515   : > { %4963 = vmatpush3.bf16.msra.mxu1 %v5439_v45  ;;  %v5465_v45 = vld [vmem:[#allocation9 + $0x18] sm:$0xff]  }
 0x516   : > { %4964 = vmatprep.subr.bf16.mxu1 %v5440_v46 }
 0x519   : > { %4965 = vmatpush3.bf16.msra.mxu1 %v5440_v46  ;;  %v5466_v46 = vld [vmem:[#allocation9 + $0x20] sm:$0xff]  }
 0x51a   : > { %4966 = vmatprep.subr.bf16.mxu1 %v5441_v47 }
 0x51d   : > { %4967 = vmatpush3.bf16.msra.mxu1 %v5441_v47  ;;  %v5467_v47 = vld [vmem:[#allocation9 + $0x28] sm:$0xff]  }
 0x51e   : > { %4968 = vmatprep.subr.bf16.mxu1 %v5442_v49 }
 0x521   : > { %4969 = vmatpush3.bf16.msra.mxu1 %v5442_v49  ;;  %v5469_v49 = vld [vmem:[#allocation9 + $0x38] sm:$0xff]  }
 0x522   : > { %4974 = vmatprep.subr.bf16.mxu1 %v5443_v51 }
 0x524   : > { %4971 = vmatmul.mubr.bf16.vlgmr.msra.gmra.mrb[8].mxu1 %v3010_v41 }
 0x525   : > { %4975 = vmatpush3.bf16.msra.mxu1 %v5443_v51  ;;  %4990 = vmatprep.mubr.bf16.mxu1 %v3136_v55  ;;  %v5471_v51 = vld [vmem:[#allocation9 + $0x88] sm:$0xff]  }
 0x526   : > { %4976 = vmatprep.subr.bf16.mxu1 %v5445_v54  ;;  %v5475_v55 = vld [vmem:[#allocation9 + $0xa8] sm:$0xff]  }
 0x529   : > { %4977 = vmatpush3.bf16.msra.mxu1 %v5445_v54  ;;  %v5474_v54 = vld [vmem:[#allocation9 + $0xa0] sm:$0xff]  }
 0x52a   : > { %4978 = vmatprep.subr.bf16.mxu1 %v5446_v63 }
 0x52d   : > { %4979 = vmatpush3.bf16.msra.mxu1 %v5446_v63  ;;  %v5476_v63 = vld [vmem:[#allocation9 + $0xb0] sm:$0xff]  }
 0x52e   : > { %4980 = vmatprep.subr.bf16.mxu1 %v5447_v56 }
 0x531   : > { %4981 = vmatpush3.bf16.msra.mxu1 %v5447_v56  ;;  %v5477_v56 = vld [vmem:[#allocation9 + $0xb8] sm:$0xff]  }
 0x532   : > { %4982 = vmatprep.subr.bf16.mxu1 %v5448_v57 }
 0x535   : > { %4983 = vmatpush3.bf16.msra.mxu1 %v5448_v57  ;;  %v5479_v57 = vld [vmem:[#allocation9 + $0xc0] sm:$0xff]  }
 0x536   : > { %4984 = vmatprep.subr.bf16.mxu1 %v5449_v58 }
 0x539   : > { %4985 = vmatpush3.bf16.msra.mxu1 %v5449_v58  ;;  %v5480_v58 = vld [vmem:[#allocation9 + $0xc8] sm:$0xff]  }
 0x53a   : > { %4986 = vmatprep.subr.bf16.mxu1 %v5450_v59 }
 0x53d   : > { %4987 = vmatpush3.bf16.msra.mxu1 %v5450_v59  ;;  %v5481_v59 = vld [vmem:[#allocation9 + $0xd0] sm:$0xff]  }
 0x53e   : > { %4988 = vmatprep.subr.bf16.mxu1 %v5451_v0 }
 0x541   : > { %4989 = vmatpush3.bf16.msra.mxu1 %v5451_v0  ;;  %v5482_v0 = vld [vmem:[#allocation9 + $0xd8] sm:$0xff]  }
 0x544   : > { %4991 = vmatmul.mubr.bf16.vlgmr.msra.gmra.mrb[8].mxu1 %v3135_v53  ;;  %v5473_v53 = vld [vmem:[#allocation9 + $0x98] sm:$0xff]  }
 0x617   : > { %v4992_v10 = vpop.f32.mrb[8].mxu1 }
 0x618   : > { %v3248_v12 = vmul.f32 %v4992_v10, %v4250_v9  ;;  %v3221_v14 = vpop.f32.mrb[9].mxu1 }
 0x619   : > { %v3246_v16 = vmul.f32 %v4250_v9, %v3221_v14  ;;  %v4993_v17 = vpop.f32.mrb[10].mxu1 }
 0x61a   : > { %v3259_v13 = vadd.f32 %v4252_v11, %v3248_v12  ;;  %v3224_v18 = vpop.f32.mrb[11].mxu1 }
 0x61b   : > { %v3257_v19 = vadd.f32 %v4252_v11, %v3246_v16  ;;  %v3247_v20 = vmul.f32 %v4250_v9, %v3224_v18 }
 0x61c   : > { %5519 = vtanh.f32 %v3259_v13  ;;  %v5488_v13 = vld [vmem:[#allocation9 + $0x100] sm:$0xff]  }
 0x61d   : > { %5521 = vtanh.f32 %v3257_v19  ;;  %v3258_v21 = vadd.f32 %v4252_v11, %v3247_v20  ;;  %v5486_v11 = vld [vmem:[#allocation9 + $0xf8] sm:$0xff]   ;;  %v5489_v19 = vld [vmem:[#allocation9 + $0x108] sm:$0xff]   ;;  %v5490_v20 = vld [vmem:[#allocation9 + $0x110] sm:$0xff]  }
 0x61f   : > { %5523 = vtanh.f32 %v3258_v21  ;;  %v5491_v21 = vld [vmem:[#allocation9 + $0x118] sm:$0xff]  }
 0x626   : > { %v5520_v23 = vpop.eup %5519 }
 0x627   : > { %v5522_v24 = vpop.eup %5521  ;;  %v3265_v25 = vmul.f32 %v5520_v23, %v5965_v61  ;;  %v5492_v23 = vld [vmem:[#allocation9 + $0x120] sm:$0xff]  }
 0x628   : > { %v3263_v26 = vmul.f32 %v5522_v24, %v5968_v62  ;;  %v5493_v24 = vld [vmem:[#allocation9 + $0x128] sm:$0xff]  }
 0x629   : > { %v5524_v22 = vpop.eup %5523  ;;  %v4321_v27 = vpack.c.bf16 %v3265_v25, %v3265_v25 }
 0x62a   : > { %v4346_v28 = vpack.c.bf16 %v5524_v22, %v3263_v26  ;;  %v5494_v26 = vld [vmem:[#allocation9 + $0x130] sm:$0xff]  }
 0x62b   : > { %3281 = vst [vmem:[#allocation3 + $0x8] sm:$0x3] %v4321_v27  ;;  %v5495_v27 = vld [vmem:[#allocation9 + $0x138] sm:$0xff]  }
 0x62c   : > { %4347 = vst [vmem:[#allocation3] sm:$0xff] %v4346_v28  }
 0x632   : > { %v5461_v29 = vld [vmem:[#allocation3 + $0x8] ss:$0 sps:$4 sm:$0x11]  }
 0x633   : > { %v3282_v15 = vld [vmem:[#allocation3] sm:$0xf]  ;;  %v6086_v30 = vld [vmem:[#allocation3 + $0x4] sm:$0xf]  ;;  %v3334_v36 = vshll.u32 %v5461_v29, 16  ;;  %v3540_v62 = vrot.slane %v5461_v29, 1 }
 0x634   : > { %v3518_v32 = vld [vmem:[#allocation3] sm:$0xe]  ;;  %v4256_v33 = vcombine.low %v3282_v15, %v6086_v30  ;;  %v5487_v3 = vld [vmem:[#allocation3 + $0x8] ss:$0 sps:$4 sm:$0x33]  }
 0x635   : > { %v6090_v34 = vcombine.low %v3518_v32, %v6086_v30  ;;  %v3336_v41 = vrot.slane %v3334_v36, 1  ;;  %v3664_v7 = vshrl.u32 %v5487_v3, 16  ;;  %v3667_v8 = vshll.u32 %v5487_v3, 16  ;;  %v3764_v25 = vld [vmem:[#allocation3] sm:$0xc] }
 0x636   : > { %v3329_v35 = vshll.u32 %v4256_v33, 16  ;;  %v3327_v37 = vshrl.u32 %v4256_v33, 16  ;;  %v4292_v22 = vcombine.low %v3764_v25, %v6086_v30  ;;  %v3786_v29 = vrot.slane %v5487_v3, 2  ;;  %v4301_v32 = vld [vmem:[%s6206_s6] ss:$0 sm:$0xff] }
 0x637   : > { %v3539_v61 = vrot.slane %v6090_v34, 1  ;;  %v3656_v4 = vshrl.u32 %v6090_v34, 16  ;;  %v3659_v5 = vshll.u32 %v6090_v34, 16  ;;  %v3666_v12 = vrot.slane %v3664_v7, 1  ;;  %v4302_v30 = vld [vmem:[%s6207_s7] ss:$0 sm:$0xff] }
 0x638   : > { %v3331_v38 = vrot.slane %v3329_v35, 1  ;;  %v3669_v14 = vrot.slane %v3667_v8, 2  ;;  %v3785_v28 = vrot.slane %v4292_v22, 2 }
 0x639   : > { %v3541_v39 = vsel %vm708_vm1, %v3539_v61, %v3540_v62  ;;  %v3658_v9 = vrot.slane %v3656_v4, 1  ;;  %v3661_v10 = vrot.slane %v3659_v5, 2 }
 0x63a   : > { %v3332_v40 = vor.u32 %v3331_v38, %v3327_v37  ;;  %v3670_v17 = vor.u32 %v3669_v14, %v3666_v12  ;;  %v3787_v15 = vsel %vm984_vm3, %v3785_v28, %v3786_v29 }
 0x63b   : > { %v3662_v16 = vor.u32 %v3661_v10, %v3658_v9 }
 0x63c   : > { %v3337_v42 = vsel %vm468_vm0, %v3332_v40, %v3336_v41 }
 0x63d   : > { %5011 = vmatmul.mubr.bf16.vlgmr.msra.gmra.mrb[8].mxu0 %v3337_v42  ;;  %v3671_v18 = vsel %vm838_vm2, %v3662_v16, %v3670_v17 }
 0x63e   : > { %5015 = vmatpush3.bf16.msra.mxu0 %v5462_v31  ;;  %5030 = vmatprep.mubr.msk.bf16.mxu0 %vm5704_vm8, %v5702_v60 }
 0x63f   : > { %5016 = vmatprep.subr.bf16.mxu0 %v5702_v60 }
 0x642   : > { %5017 = vmatpush3.bf16.msra.mxu0 %v5463_v43 }
 0x643   : > { %5018 = vmatprep.subr.bf16.mxu0 %v5702_v60 }
 0x646   : > { %5019 = vmatpush3.bf16.msra.mxu0 %v5464_v44 }
 0x647   : > { %5020 = vmatprep.subr.bf16.mxu0 %v5702_v60 }
 0x64a   : > { %5021 = vmatpush3.bf16.msra.mxu0 %v5465_v45 }
 0x64b   : > { %5022 = vmatprep.subr.bf16.mxu0 %v5702_v60 }
 0x64e   : > { %5023 = vmatpush3.bf16.msra.mxu0 %v5466_v46 }
 0x64f   : > { %5024 = vmatprep.subr.bf16.mxu0 %v5702_v60 }
 0x652   : > { %5025 = vmatpush3.bf16.msra.mxu0 %v5467_v47 }
 0x653   : > { %5026 = vmatprep.subr.bf16.mxu0 %v5702_v60 }
 0x656   : > { %5027 = vmatpush3.bf16.msra.mxu0 %v5468_v48 }
 0x657   : > { %5028 = vmatprep.subr.bf16.mxu0 %v5702_v60 }
 0x65a   : > { %5029 = vmatpush3.bf16.msra.mxu0 %v5469_v49 }
 0x65b   : > { %5034 = vmatprep.subr.bf16.mxu0 %v5702_v60 }
 0x65d   : > { %5031 = vmatmul.mubr.bf16.vlgmr.msra.gmra.mrb[8].mxu0 %v4256_v33 }
 0x65e   : > { %5035 = vmatpush3.bf16.msra.mxu0 %v5470_v50  ;;  %5050 = vmatprep.mubr.msk.bf16.mxu0 %vm5704_vm8, %v5702_v60 }
 0x65f   : > { %5036 = vmatprep.subr.bf16.mxu0 %v5702_v60 }
 0x662   : > { %5037 = vmatpush3.bf16.msra.mxu0 %v5471_v51 }
 0x663   : > { %5038 = vmatprep.subr.bf16.mxu0 %v5702_v60 }
 0x666   : > { %5039 = vmatpush3.bf16.msra.mxu0 %v5472_v52 }
 0x667   : > { %5040 = vmatprep.subr.bf16.mxu0 %v5702_v60 }
 0x66a   : > { %5041 = vmatpush3.bf16.msra.mxu0 %v5473_v53 }
 0x66b   : > { %5042 = vmatprep.subr.bf16.mxu0 %v5702_v60 }
 0x66e   : > { %5043 = vmatpush3.bf16.msra.mxu0 %v5474_v54 }
 0x66f   : > { %5044 = vmatprep.subr.bf16.mxu0 %v5702_v60 }
 0x672   : > { %5045 = vmatpush3.bf16.msra.mxu0 %v5475_v55 }
 0x673   : > { %5046 = vmatprep.subr.bf16.mxu0 %v5702_v60 }
 0x676   : > { %5047 = vmatpush3.bf16.msra.mxu0 %v5476_v63 }
 0x677   : > { %5048 = vmatprep.subr.bf16.mxu0 %v5702_v60 }
 0x67a   : > { %5049 = vmatpush3.bf16.msra.mxu0 %v5477_v56 }
 0x67b   : > { %5054 = vmatprep.subr.bf16.mxu0 %v5702_v60 }
 0x67d   : > { %5051 = vmatmul.mubr.bf16.vlgmr.msra.gmra.mrb[8].mxu0 %v3541_v39 }
 0x67e   : > { %5055 = vmatpush3.bf16.msra.mxu0 %v5479_v57  ;;  %5070 = vmatprep.mubr.msk.bf16.mxu0 %vm5704_vm8, %v5702_v60 }
 0x67f   : > { %5056 = vmatprep.subr.bf16.mxu0 %v5702_v60 }
 0x682   : > { %5057 = vmatpush3.bf16.msra.mxu0 %v5480_v58 }
 0x683   : > { %5058 = vmatprep.subr.bf16.mxu0 %v5702_v60 }
 0x686   : > { %5059 = vmatpush3.bf16.msra.mxu0 %v5481_v59 }
 0x687   : > { %5060 = vmatprep.subr.bf16.mxu0 %v5702_v60 }
 0x68a   : > { %5061 = vmatpush3.bf16.msra.mxu0 %v5482_v0 }
 0x68b   : > { %5062 = vmatprep.subr.bf16.mxu0 %v5702_v60 }
 0x68e   : > { %5063 = vmatpush3.bf16.msra.mxu0 %v5483_v1 }
 0x68f   : > { %5064 = vmatprep.subr.bf16.mxu0 %v5702_v60 }
 0x692   : > { %5065 = vmatpush3.bf16.msra.mxu0 %v5484_v2 }
 0x693   : > { %5066 = vmatprep.subr.bf16.mxu0 %v5702_v60 }
 0x696   : > { %5067 = vmatpush3.bf16.msra.mxu0 %v5485_v6 }
 0x697   : > { %5068 = vmatprep.subr.bf16.mxu0 %v5702_v60 }
 0x69a   : > { %5069 = vmatpush3.bf16.msra.mxu0 %v5486_v11 }
 0x69b   : > { %5074 = vmatprep.subr.bf16.mxu0 %v5702_v60 }
 0x69d   : > { %5071 = vmatmul.mubr.bf16.vlgmr.msra.gmra.mrb[8].mxu0 %v3671_v18 }
 0x69e   : > { %5075 = vmatpush3.bf16.msra.mxu0 %v5488_v13  ;;  %5090 = vmatprep.mubr.msk.bf16.mxu0 %vm5704_vm8, %v5702_v60 }
 0x69f   : > { %5076 = vmatprep.subr.bf16.mxu0 %v5702_v60 }
 0x6a2   : > { %5077 = vmatpush3.bf16.msra.mxu0 %v5489_v19 }
 0x6a3   : > { %5078 = vmatprep.subr.bf16.mxu0 %v5702_v60 }
 0x6a6   : > { %5079 = vmatpush3.bf16.msra.mxu0 %v5490_v20 }
 0x6a7   : > { %5080 = vmatprep.subr.bf16.mxu0 %v5702_v60 }
 0x6aa   : > { %5081 = vmatpush3.bf16.msra.mxu0 %v5491_v21 }
 0x6ab   : > { %5082 = vmatprep.subr.bf16.mxu0 %v5702_v60 }
 0x6ae   : > { %5083 = vmatpush3.bf16.msra.mxu0 %v5492_v23 }
 0x6af   : > { %5084 = vmatprep.subr.bf16.mxu0 %v5702_v60 }
 0x6b2   : > { %5085 = vmatpush3.bf16.msra.mxu0 %v5493_v24 }
 0x6b3   : > { %5086 = vmatprep.subr.bf16.mxu0 %v5702_v60 }
 0x6b6   : > { %5087 = vmatpush3.bf16.msra.mxu0 %v5494_v26 }
 0x6b7   : > { %5088 = vmatprep.subr.bf16.mxu0 %v5702_v60 }
 0x6ba   : > { %5089 = vmatpush3.bf16.msra.mxu0 %v5495_v27 }
 0x6bd   : > { %5091 = vmatmul.mubr.bf16.vlgmr.msra.gmra.mrb[8].mxu0 %v3787_v15 }
 0x790   : > { %v3871_v33 = vpop.f32.mrb[8].mxu0 }
 0x791   : > { %v3887_v34 = vmul.f32 %v4301_v32, %v3871_v33  ;;  %v5092_v60 = vpop.f32.mrb[9].mxu0 }
 0x792   : > { %v3874_v35 = vpop.f32.mrb[10].mxu0 }
 0x793   : > { %v3896_v36 = vadd.f32 %v4302_v30, %v3887_v34  ;;  %v3888_v61 = vmul.f32 %v4301_v32, %v3874_v35  ;;  %v5093_v62 = vpop.f32.mrb[11].mxu0 }
 0x795   : > { %3898 = vst [vmem:[%s366_s13] sm:$0xff] %v3896_v36  ;;  %v3897_v37 = vadd.f32 %v4302_v30, %v3888_v61 }
 0x797   : > { %3899 = vst [vmem:[%s366_s13 + $0x8] sm:$0xff] %v3897_v37 }
 0x798   : > { %5622 = shalt.err (!%p5619_p6)
}
 0x799   : > { %s5623_s20 = scalar_lea.hbm %s6152_s9, 256  ;;  %s5627_s26 = scalar_lea.hbm %s6208_s8, 512 }
 0x79a   : > { %p5624_p7 = scmp.ne.s32.totalorder %s6152_s9, %s5623_s20  ;;  %p5628_p4 = scmp.lt.u32.totalorder %s6152_s9, %s6208_s8 }
 0x79b   : > { %p5629_p1 = scmp.lt.u32.totalorder %s5627_s26, %s5623_s20  ;;  %p5631_p8 = scmp.lt.u32.totalorder %s5623_s20, %s6152_s9 }
 0x79c   : > { %p5625_p9 = pnand %p5624_p7, %p6232_p10 }
 0x79d   : > { %p5630_p13 = por %p5629_p1, %p5628_p4 }
 0x79e   : > { %p5626_p12 = pneg %p5625_p9 }
 0x79f   : > { %p5632_p11 = por %p5631_p8, %p5630_p13 }
 0x7a1   : > { %p5633_p0 = pnand %p5632_p11, %p5626_p12 }
 0x7a3   : > { %5636 = shalt.err (!%p5633_p0)
}
 0x7a4   : > { %s5706_s18 = smov 128   ;;  %s5707_s22 = smov 8  }
 0x7a5   : > { %5187 = dma.vmem_to_hbm [thread:$0]  (%p6232_p10), %s6147_s11, 256, %s6152_s9, %s6154_s25, %s5706_s18, %s5706_s18, %s5707_s22  }
 0x7a6 PF: > { %s6233_s13 = sld [smem:[#allocation17_spill]]  ;;  %p5209_p2 = scmp.ge.s32.totalorder %s5695_s10, 2 }
 0x7a7   : > { %s3931_s14 = sand.u32 1, %s5675_s27  }
 0x7a8   : > { %s3932_s16 = scalar_lea.sflag [#allocation6], %s3931_s14 }
 0x7ac   : > { %p6234_p3 = scmp.ne.s32.totalorder %s6233_s13, 0 }
 0x7ae   : > { %p5200_p5 = pnand %p5209_p2, %p6234_p3 }
 0x7b0   : > { %5670 = dma.done.wait (!%p5200_p5), %s3932_s16, 256  }
 0x7b1   : > { %5672 = vsyncadd (!%p5200_p5), %s3932_s16, 4294967040  ;;  %s23_s10 = sadd.s32 1, %s5695_s10   ;;  %s6235_s24 = sld [smem:[#allocation14_spill]] }
 0x7b2   : > { %p20_p6 = scmp.ge.s32.totalorder %s23_s10, 4   ;;  %s6236_s29 = sld [smem:[#allocation18_spill]] }
 0x7b3   : > { %s6237_s30 = sld [smem:[#allocation15_spill]]  ;;  %s6238_s9 = sld [smem:[#allocation16_spill]] }
 0x7b4   : > { %s6239_s27 = smov %s5679_s28  ;;  %22 = sbr.rel (!%p20_p6) target bundleno = 8 (0x8), region = 128 }
 0x7b7   : > { %s6240_s28 = smov %s6235_s24 }
 0x7bb   :  { %3937 = vsyncpa [#allocation5], 1 }
 0x7bc   :  { %3939 = vsyncpa [#allocation5 + $0x1], 1 }
 0x7bd   :  { %3940 = vsyncpa [#allocation8], 1 }
 0x7be   :  { %3941 = vsyncpa [#allocation6], 1 }
 0x7bf   :  { %3943 = vsyncpa [#allocation6 + $0x1], 1 }

// kernel: tpu_custom_call.1
= control target key start
LH: loop header
LB: loop body
LE: loop exit
PB: predicated region body
PF: predicated region fallthrough
CT: control target
= control target key end

     0   :  { %s6200_s0 = inlined_call_operand.vmem [shape: bf16[2,1,36,128], index: 0, kind: input, shape index: {}]   ;;  %s6201_s1 = inlined_call_operand.hbm [shape: bf16[5,128,128], index: 1, kind: input, shape index: {}]   ;;  %s6202_s2 = inlined_call_operand.hbm [shape: bf16[3,5,128,128], index: 2, kind: input, shape index: {}]   ;;  %s6203_s3 = inlined_call_operand.hbm [shape: bf16[5,128,128], index: 3, kind: input, shape index: {}]   ;;  %s6204_s4 = inlined_call_operand.vmem [shape: f32[4,1,128], index: 4, kind: input, shape index: {}]   ;;  %s6205_s5 = inlined_call_operand.vmem [shape: f32[4,1,128], index: 5, kind: input, shape index: {}]   ;;  %s6206_s6 = inlined_call_operand.vmem [shape: f32[1,128], index: 6, kind: input, shape index: {}]   ;;  %s6207_s7 = inlined_call_operand.vmem [shape: f32[1,128], index: 7, kind: input, shape index: {}]   ;;  %s6208_s8 = inlined_call_operand.hbm [shape: f32[2,16,128], index: 8, kind: output, shape index: {}]  }
   0x1   :  { %6217 = sst [smem:[#allocation19_spill]] %s6202_s2 }
   0x2   :  { %13 = vsyncpa [#allocation5], 0 }
   0x3   :  { %14 = vsyncpa [#allocation8], 0 }
   0x4   :  { %15 = vsyncpa [#allocation6], 0 }
   0x5   :  { %17 = vsyncpa [#allocation6 + $0x1], 0  ;;  %s5753_s27 = smov 0   ;;  %s5755_s28 = smov 0  }
   0x6   :  { %s5757_s29 = smov 0   ;;  %s5759_s30 = smov 0  }
   0x7   :  { %s5761_s9 = smov 0   ;;  %s5763_s10 = smov 0  }
   0x8 LB: > { %6218 = sst [smem:[#allocation14_spill]] %s5683_s29  ;;  %s4029_s11 = sadd.s32 4294967295, %s5695_s10   ;;  %s5695_s10 = sphi %s5763_s10, %s23_s10   ;;  %s5691_s9 = sphi %s5761_s9, %s6238_s9   ;;  %s5687_s30 = sphi %s5759_s30, %s6237_s30   ;;  %s5683_s29 = sphi %s5757_s29, %s6236_s29   ;;  %s5679_s28 = sphi %s5755_s28, %s6240_s28   ;;  %s5675_s27 = sphi %s5753_s27, %s6239_s27  }
   0x9   : > { %6219 = sst [smem:[#allocation15_spill]] %s5691_s9  ;;  %s4030_s12 = sadd.s32 4294967294, %s5695_s10  }
   0xa   : > { %s35_s13 = sadd.s32 1, %s5691_s9  ;;  %s219_s14 = sadd.s32 1, %s5683_s29 }
   0xb   : > { %p37_p0 = scmp.ge.s32.totalorder %s35_s13, 2  ;;  %p229_p1 = scmp.ne.s32.totalorder %s5683_s29, %s5679_s28 }
   0xc   : > { %p230_p2 = scmp.eq.s32.totalorder %s4029_s11, 1  ;;  %p235_p3 = scmp.ne.s32.totalorder %s5679_s28, %s5675_s27 }
   0xd   : > { %s6242_s13 = smov (%p37_p0, %s35_s13), 0  ;;  %p236_p5 = scmp.eq.s32.totalorder %s4030_s12, 1 }
   0xe   : > { %6220 = sst [smem:[#allocation16_spill]] %s6242_s13  ;;  %p5793_p4 = por %p230_p2, %p229_p1 }
   0xf   : > { %s214_s16 = ssub.s32 %s5691_s9, %s6242_s13  ;;  %p4031_p6 = scmp.ge.s32.totalorder %s5695_s10, 1 }
  0x10   : > { %s6221_s15 = scalar_select %p5793_p4, 1, 0 }
  0x11   : > { %p217_p7 = scmp.eq.s32.totalorder %s214_s16, 0  ;;  %p5800_p8 = por %p236_p5, %p235_p3 }
  0x12   : > { %p243_p9 = scmp.lt.s32.totalorder %s5695_s10, 3  ;;  %p5812_p11 = scmp.eq.s32.totalorder %s4029_s11, 0 }
  0x13   : > { %s6222_s17 = scalar_select %p5800_p8, 1, 0 }
  0x14   : > { %s5806_s18 = scalar_select %p217_p7, %s5683_s29, %s219_s14  }
  0x15   : > { %6223 = sst [smem:[#allocation17_spill]] %s6222_s17  ;;  %p5808_p10 = pnand %p4031_p6, %p243_p9 }
  0x16   : > { %6224 = sst [smem:[#allocation18_spill]] %s5806_s18  ;;  %s5697_s21 = smov [#allocation7]  }
  0x17   : > { %s6225_s19 = scalar_select %p5808_p10, 1, 0 }
  0x18   : > { %s6226_s20 = scalar_select %p5812_p11, 1, 0 }
  0x19   : > { %p5189_p12 = pneg %p5808_p10  ;;  %s268_s22 = sshll.u32 %s5697_s21, 4  ;;  %s269_s22 = int_to_ptr.vmem [resolvable:$true] %s268_s22 }
  0x1a   : > { %s5698_s24 = smov [#allocation4]   ;;  %s6228_s2 = sld [smem:[#allocation19_spill]] }
  0x1b   : > { %p5820_p13 = pnand %p5812_p11, %p5189_p12  ;;  %s255_s25 = sshll.u32 %s5698_s24, 4  ;;  %s256_s25 = int_to_ptr.vmem [resolvable:$true] %s255_s25 }
  0x1d   : > { %p5832_p1 = pneg %p5820_p13 }
  0x20   : > { %s5525_s11 = scalar_lea.hbm %s6228_s2, 15360 }
  0x21   : > { %p5526_p0 = scmp.ne.s32.totalorder %s6228_s2, %s5525_s11  ;;  %p5532_p5 = scmp.lt.u32.totalorder %s5525_s11, %s6228_s2 }
  0x23   : > { %p5528_p2 = pnand %p5832_p1, %p5526_p0 }
  0x25   : > { %p5529_p3 = pneg %p5528_p2 }
  0x27   : > { %p5534_p6 = pnand %p5532_p5, %p5529_p3 }
  0x29   : > { %5537 = shalt.err (!%p5534_p6)
}
  0x2a   : > { %s5538_s24 = scalar_lea.vmem %s269_s22, 15360  ;;  %p5546_p8 = scmp.lt.s32.totalorder %s269_s22, %s269_s22 }
  0x2b   : > { %p5539_p7 = scmp.ne.s32.totalorder %s269_s22, %s5538_s24  ;;  %p5547_p4 = scmp.lt.s32.totalorder %s5538_s24, %s5538_s24 }
  0x2d   : > { %p5541_p9 = pnand %p5539_p7, %p5832_p1  ;;  %p5548_p11 = por %p5547_p4, %p5546_p8 }
  0x2f   : > { %p5542_p12 = pneg %p5541_p9 }
  0x31   : > { %p5549_p10 = pnand %p5548_p11, %p5542_p12 }
  0x33   : > { %5552 = shalt.err (!%p5549_p10)
}
  0x34   : > { %s5699_s26 = smov 64   ;;  %s5700_s12 = smov 4  }
  0x35   : > { %5195 = dma.hbm_to_vmem [thread:$0]  (!%p5820_p13), %s6228_s2, 15360, %s269_s22, [#allocation8], %s5699_s26, %s5699_s26, %s5700_s12  }
  0x36   : > { %s5553_s16 = scalar_lea.hbm %s6201_s1, 5120 }
  0x37   : > { %p5554_p4 = scmp.ne.s32.totalorder %s6201_s1, %s5553_s16  ;;  %p5560_p11 = scmp.lt.u32.totalorder %s5553_s16, %s6201_s1 }
  0x39   : > { %p5556_p8 = pnand %p5554_p4, %p5832_p1 }
  0x3b   : > { %p5557_p10 = pneg %p5556_p8 }
  0x3d   : > { %p5562_p0 = pnand %p5560_p11, %p5557_p10 }
  0x3f   : > { %5565 = shalt.err (!%p5562_p0)
}
  0x40   : > { %s5566_s9 = scalar_lea.vmem %s256_s25, 5120  ;;  %p5574_p6 = scmp.lt.s32.totalorder %s256_s25, %s256_s25 }
  0x41   : > { %p5567_p2 = scmp.ne.s32.totalorder %s256_s25, %s5566_s9  ;;  %p5575_p7 = scmp.lt.s32.totalorder %s5566_s9, %s5566_s9 }
  0x43   : > { %p5569_p3 = pnand %p5567_p2, %p5832_p1  ;;  %p5576_p9 = por %p5575_p7, %p5574_p6 }
  0x45   : > { %p5570_p5 = pneg %p5569_p3 }
  0x47   : > { %p5577_p12 = pnand %p5576_p9, %p5570_p5 }
  0x49   : > { %5580 = shalt.err (!%p5577_p12)
}
  0x4a   : > { %5192 = dma.hbm_to_vmem [thread:$0]  (!%p5820_p13), %s6201_s1, 5120, %s256_s25, [#allocation5], %s5699_s26, %s5699_s26, %s5700_s12  }
  0x4b   : > { %s5701_s18 = smov [#allocation9]   ;;  %s5581_s14 = scalar_lea.hbm %s6203_s3, 5120 }
  0x4c   : > { %s281_s22 = sshll.u32 %s5701_s18, 4  ;;  %p5582_p4 = scmp.ne.s32.totalorder %s6203_s3, %s5581_s14  ;;  %s282_s22 = int_to_ptr.vmem [resolvable:$true] %s281_s22 }
  0x4d   : > { %p5588_p11 = scmp.lt.u32.totalorder %s5581_s14, %s6203_s3 }
  0x4e   : > { %p5584_p8 = pnand %p5582_p4, %p5832_p1 }
  0x50   : > { %p5585_p10 = pneg %p5584_p8 }
  0x52   : > { %p5590_p0 = pnand %p5588_p11, %p5585_p10 }
  0x54   : > { %5593 = shalt.err (!%p5590_p0)
}
  0x55   : > { %s5594_s25 = scalar_lea.vmem %s282_s22, 5120  ;;  %p5602_p6 = scmp.lt.s32.totalorder %s282_s22, %s282_s22 }
  0x56   : > { %p5595_p2 = scmp.ne.s32.totalorder %s282_s22, %s5594_s25  ;;  %p5603_p7 = scmp.lt.s32.totalorder %s5594_s25, %s5594_s25 }
  0x58   : > { %p5597_p3 = pnand %p5595_p2, %p5832_p1  ;;  %p5604_p9 = por %p5603_p7, %p5602_p6 }
  0x5a   : > { %p5598_p5 = pneg %p5597_p3 }
  0x5c   : > { %p5605_p12 = pnand %p5604_p9, %p5598_p5 }
  0x5e   : > { %5608 = shalt.err (!%p5605_p12)
}
  0x5f   : > { %5198 = dma.hbm_to_vmem [thread:$0]  (!%p5820_p13), %s6203_s3, 5120, %s282_s22, [#allocation8], %s5699_s26, %s5699_s26, %s5700_s12  }
  0x60   : > { %p6230_p4 = scmp.ne.s32.totalorder %s6225_s19, 0 }
  0x61   : > { %p6231_p1 = scmp.ne.s32.totalorder (!%p6230_p4), %s6226_s20, 0 }
  0x62   : > { %321 = sbr.rel (%p6230_p4) target bundleno = 1958 (0x7a6), region = 52 }
  0x69   : > { %5662 = dma.done.wait (%p6231_p1), [#allocation5], 5120  }
  0x6a   : > { %5664 = vsyncadd (%p6231_p1), [#allocation5], 4294962176 }
  0x6b   : > { %5666 = dma.done.wait (%p6231_p1), [#allocation8], 20480  }
  0x6c   : > { %5668 = vsyncadd (%p6231_p1), [#allocation8], 4294946816  ;;  %v5268_v0 = vld [vmem:[#allocation4 + $0x40] sm:$0xff]   ;;  %p367_p13 = scmp.lt.s32.totalorder %s5687_s30, 1  ;;  %v5270_v2 = vld [vmem:[#allocation4 + $0x48] sm:$0xff]   ;;  %vm708_vm1 = vcmask 1046528  }
  0x6d   : > { %v5269_v1 = vld [vmem:[#allocation4 + $0x80] sm:$0xff]   ;;  %4594 = vmatprep.subr.bf16.mxu1 %v5268_v0  ;;  %v5271_v3 = vld [vmem:[#allocation4 + $0x88] sm:$0xff]   ;;  %v5272_v4 = vld [vmem:[#allocation4 + $0x50] sm:$0xff]   ;;  %vm468_vm0 = vsmask.f32 7424  ;;  %vm984_vm3 = vcmask 1045504  }
  0x6e   : > { %4634 = vmatprep.subr.bf16.mxu0 %v5269_v1  ;;  %4595 = vmatpush3.bf16.msra.mxu1 %v5268_v0  ;;  %v5273_v5 = vld [vmem:[#allocation4 + $0x90] sm:$0xff]   ;;  %s368_s19 = scalar_select %p367_p13, %s5687_s30, 1  ;;  %v5274_v6 = vld [vmem:[#allocation4 + $0x58] sm:$0xff]   ;;  %v5276_v8 = vld [vmem:[#allocation4 + $0x60] sm:$0xff]   ;;  %vm838_vm2 = vsmask.f32 6400 }
  0x6f   : > { %4635 = vmatpush3.bf16.msra.mxu0 %v5269_v1  ;;  %4596 = vmatprep.subr.bf16.mxu1 %v5270_v2  ;;  %v5275_v7 = vld [vmem:[#allocation4 + $0x98] sm:$0xff]   ;;  %v5277_v9 = vld [vmem:[#allocation4 + $0xa0] sm:$0xff]   ;;  %v5278_v10 = vld [vmem:[#allocation4 + $0x68] sm:$0xff]   ;;  %vm1849_vm6 = vcmask 1043456   ;;  %vm2559_vm7 = vcmask 1041408   ;;  %vm5704_vm8 = vmmov 0  }
  0x70   : > { %4636 = vmatprep.subr.bf16.mxu0 %v5271_v3  ;;  %s5174_s20 = smul.u32 20, %s368_s19  ;;  %v5279_v11 = vld [vmem:[#allocation4 + $0xa8] sm:$0xff]   ;;  %v5280_v17 = vld [vmem:[#allocation4 + $0x70] sm:$0xff]   ;;  %v5282_v33 = vld [vmem:[#allocation4 + $0x78] sm:$0xff]   ;;  %s364_s21 = sand.u32 1, %s5679_s28  }
  0x71   : > { %v5281_v22 = vld [vmem:[#allocation4 + $0xb0] sm:$0xff]   ;;  %v5283_v34 = vld [vmem:[#allocation4 + $0xb8] sm:$0xff]   ;;  %v5286_v36 = vld [vmem:[#allocation4] sm:$0xff]   ;;  %s4322_s14 = sshll.u32 %s5687_s30, 8  ;;  %s6154_s25 = scalar_lea.sflag [#allocation6], %s364_s21 }
  0x72   : > { %4597 = vmatpush3.bf16.msra.mxu1 %v5270_v2  ;;  %s5908_s26 = scalar_lea.vmem %s6200_s0, %s5174_s20  ;;  %v5288_v43 = vld [vmem:[#allocation4 + $0xc0] sm:$0xff]   ;;  %v5290_v49 = vld [vmem:[#allocation4 + $0x8] sm:$0xff]   ;;  %v5292_v53 = vld [vmem:[#allocation4 + $0x10] sm:$0xff]   ;;  %s6152_s9 = scalar_lea.hbm %s6208_s8, %s4322_s14 }
  0x73   : > { %4637 = vmatpush3.bf16.msra.mxu0 %v5271_v3  ;;  %4598 = vmatprep.subr.bf16.mxu1 %v5272_v4  ;;  %v417_v12 = vld [vmem:[%s5908_s26] sm:$0xf]  ;;  %v5912_v13 = vld [vmem:[%s5908_s26 + $0x4] sm:$0xf]  ;;  %v5918_v15 = vld [vmem:[%s5908_s26 + $0x8] sm:$0xff]   ;;  %p6232_p10 = scmp.ne.s32.totalorder %s6221_s15, 0 }
  0x74   : > { %4638 = vmatprep.subr.bf16.mxu0 %v5273_v5  ;;  %v5915_v14 = vcombine.low %v417_v12, %v5912_v13  ;;  %v687_v16 = vld [vmem:[%s5908_s26] sm:$0xe]  ;;  %v477_v20 = vshll.u32 %v5918_v15, 16  ;;  %v710_v23 = vrot.slane %v5918_v15, 1  ;;  %v481_v28 = vshrl.u32 %v5918_v15, 16  ;;  %v5291_v51 = vld [vmem:[#allocation4 + $0xc8] sm:$0xff]  }
  0x75   : > { %v4063_v21 = vcombine.low %v687_v16, %v5912_v13  ;;  %v5289_v27 = vld [vmem:[%s5908_s26 + $0x10] ss:$0 sps:$4 sm:$0x11]   ;;  %v5293_v54 = vld [vmem:[#allocation4 + $0xd0] sm:$0xff]   ;;  %v5294_v56 = vld [vmem:[#allocation4 + $0x18] sm:$0xff]   ;;  %v986_v62 = vrot.slane %v5918_v15, 2 }
  0x76   : > { %4599 = vmatpush3.bf16.msra.mxu1 %v5272_v4  ;;  %v470_v18 = vshrl.u32 %v5915_v14, 16  ;;  %v472_v19 = vshll.u32 %v5915_v14, 16  ;;  %v479_v25 = vrot.slane %v477_v20, 1  ;;  %v485_v31 = vshll.u32 %v5289_v27, 16  ;;  %v5295_v59 = vld [vmem:[#allocation4 + $0xd8] sm:$0xff]   ;;  %v5296_v60 = vld [vmem:[#allocation4 + $0x20] sm:$0xff]  }
  0x77   : > { %4639 = vmatpush3.bf16.msra.mxu0 %v5273_v5  ;;  %4600 = vmatprep.subr.bf16.mxu1 %v5274_v6  ;;  %v709_v26 = vrot.slane %v4063_v21, 1  ;;  %v840_v32 = vshrl.u32 %v4063_v21, 16  ;;  %v843_v40 = vshll.u32 %v4063_v21, 16  ;;  %v712_v41 = vrot.slane %v5289_v27, 1  ;;  %v5297_v61 = vld [vmem:[#allocation4 + $0xe0] sm:$0xff]   ;;  %v5298_v3 = vld [vmem:[#allocation4 + $0x28] sm:$0xff]  }
  0x78   : > { %4640 = vmatprep.subr.bf16.mxu0 %v5275_v7  ;;  %v474_v24 = vrot.slane %v472_v19, 1  ;;  %v487_v37 = vrot.slane %v485_v31, 1  ;;  %v483_v38 = vor.u32 %v481_v28, %v479_v25  ;;  %v847_v42 = vrot.slane %v481_v28, 1  ;;  %v5938_v55 = vld [vmem:[%s5908_s26 + $0x10] ss:$0 sps:$4 sm:$0x33]  }
  0x79   : > { %v711_v30 = vsel %vm708_vm1, %v709_v26, %v710_v23  ;;  %v842_v39 = vrot.slane %v840_v32, 1  ;;  %v845_v44 = vrot.slane %v843_v40, 2  ;;  %v848_v45 = vrot.slane %v477_v20, 2  ;;  %v963_v1 = vld [vmem:[%s5908_s26] sm:$0xc]  ;;  %v5299_v4 = vld [vmem:[#allocation4 + $0xe8] sm:$0xff]  }
  0x7a   : > { %4601 = vmatpush3.bf16.msra.mxu1 %v5274_v6  ;;  %v475_v29 = vor.u32 %v474_v24, %v470_v18  ;;  %4650 = vmatprep.mubr.bf16.mxu0 %v711_v30  ;;  %v488_v46 = vsel %vm468_vm0, %v483_v38, %v487_v37  ;;  %v713_v48 = vsel %vm708_vm1, %v710_v23, %v712_v41  ;;  %v852_v57 = vshrl.u32 %v5938_v55, 16  ;;  %v5308_v18 = vld [vmem:[#allocation4 + $0x118] sm:$0xff]   ;;  %v5309_v19 = vld [vmem:[#allocation4 + $0x120] sm:$0xff]   ;;  %v5310_v20 = vld [vmem:[#allocation4 + $0x128] sm:$0xff]   ;;  %s4040_s26 = sshll.u32 %s364_s21, 4  ;;  %s5705_s30 = smov [#allocation10]  }
  0x7b   : > { %4641 = vmatpush3.bf16.msra.mxu0 %v5275_v7  ;;  %4602 = vmatprep.subr.bf16.mxu1 %v5276_v8  ;;  %v846_v47 = vor.u32 %v845_v44, %v842_v39  ;;  %v5932_v50 = vor.u32 %v848_v45, %v847_v42  ;;  %v855_v58 = vshll.u32 %v5938_v55, 16  ;;  %v4081_v2 = vcombine.low %v963_v1, %v5912_v13  ;;  %v5300_v7 = vld [vmem:[#allocation4 + $0x30] sm:$0xff]   ;;  %v5306_v13 = vld [vmem:[#allocation4 + $0x108] sm:$0xff]   ;;  %v5314_v24 = vld [vmem:[#allocation7 + $0x40] sm:$0xff]   ;;  %s366_s13 = scalar_lea.vmem [#allocation10], %s4040_s26  ;;  %s5613_s29 = sshll.u32 %s5705_s30, 4  ;;  %s5614_s29 = int_to_ptr.vmem [resolvable:$false] %s5613_s29 }
  0x7c   : > { %4642 = vmatprep.subr.bf16.mxu0 %v5277_v9  ;;  %v480_v35 = vsel %vm468_vm0, %v475_v29, %v479_v25  ;;  %v854_v63 = vrot.slane %v852_v57, 1  ;;  %v988_v6 = vrot.slane %v5938_v55, 2  ;;  %v5311_v21 = vld [vmem:[#allocation4 + $0x130] sm:$0xff]   ;;  %v5315_v25 = vld [vmem:[#allocation7 + $0x48] sm:$0xff]   ;;  %v5317_v27 = vld [vmem:[#allocation7 + $0x58] sm:$0xff]   ;;  %s3916_s11 = sshll.u32 %s366_s13, 4  ;;  %s6147_s11 = int_to_ptr.vmem [resolvable:$true] %s3916_s11 }
  0x7d   : > { %4610 = vmatprep.mubr.bf16.mxu1 %v480_v35  ;;  %v850_v52 = vsel %vm838_vm2, %v846_v47, %v5932_v50  ;;  %v857_v0 = vrot.slane %v855_v58, 2  ;;  %v985_v5 = vrot.slane %v4081_v2, 2  ;;  %v5316_v26 = vld [vmem:[#allocation7 + $0x50] sm:$0xff]   ;;  %v5318_v28 = vld [vmem:[#allocation7 + $0x60] sm:$0xff]   ;;  %v5319_v29 = vld [vmem:[#allocation7 + $0x68] sm:$0xff]   ;;  %s5609_s2 = scalar_lea.vmem %s6147_s11, 256  ;;  %p5616_p2 = scmp.lt.s32.totalorder %s6147_s11, %s5614_s29 }
  0x7e   : > { %4603 = vmatpush3.bf16.msra.mxu1 %v5276_v8  ;;  %v5301_v8 = vld [vmem:[#allocation4 + $0xf0] sm:$0xff]   ;;  %v989_v23 = vsel %vm984_vm3, %v986_v62, %v988_v6  ;;  %v5321_v30 = vld [vmem:[#allocation7 + $0x78] sm:$0xff]   ;;  %v5955_v31 = vld [vmem:[#allocation7] sm:$0xff]   ;;  %p5610_p8 = scmp.ne.s32.totalorder %s6147_s11, %s5609_s2  ;;  %s5615_s19 = scalar_lea.vmem %s5614_s29, 512 }
  0x7f   : > { %4643 = vmatpush3.bf16.msra.mxu0 %v5277_v9  ;;  %4604 = vmatprep.subr.bf16.mxu1 %v5278_v10  ;;  %v5302_v9 = vld [vmem:[#allocation4 + $0x38] sm:$0xff]   ;;  %v858_v12 = vor.u32 %v857_v0, %v854_v63  ;;  %v987_v16 = vsel %vm984_vm3, %v985_v5, %v986_v62  ;;  %v5703_v63 = vmov 1.0   ;;  %p5617_p3 = scmp.lt.s32.totalorder %s5615_s19, %s5609_s2 }
  0x80   : > { %4644 = vmatprep.subr.bf16.mxu0 %v5279_v11  ;;  %v4090_v40 = vld [vmem:[%s6204_s4] ss:$0 sm:$0xff]  ;;  %v1128_v0 = vrot.slane %v5703_v63, 2  ;;  %p5611_p11 = pnand %p5610_p8, %p6232_p10 }
  0x81   : > { %v4091_v44 = vld [vmem:[%s6205_s5] ss:$0 sm:$0xff]  ;;  %p5618_p5 = por %p5617_p3, %p5616_p2 }
  0x82   : > { %4605 = vmatpush3.bf16.msra.mxu1 %v5278_v10  ;;  %v5303_v10 = vld [vmem:[#allocation4 + $0xf8] sm:$0xff]   ;;  %p5612_p0 = pneg %p5611_p11 }
  0x83   : > { %4645 = vmatpush3.bf16.msra.mxu0 %v5279_v11  ;;  %4606 = vmatprep.subr.bf16.mxu1 %v5280_v17  ;;  %v5304_v11 = vld [vmem:[#allocation4 + $0x100] sm:$0xff]  }
  0x84   : > { %4646 = vmatprep.subr.bf16.mxu0 %v5281_v22  ;;  %p5619_p6 = pnand %p5618_p5, %p5612_p0 }
  0x86   : > { %4607 = vmatpush3.bf16.msra.mxu1 %v5280_v17  ;;  %v5307_v17 = vld [vmem:[#allocation4 + $0x110] sm:$0xff]  }
  0x87   : > { %4647 = vmatpush3.bf16.msra.mxu0 %v5281_v22  ;;  %4608 = vmatprep.subr.bf16.mxu1 %v5282_v33  ;;  %v5312_v22 = vld [vmem:[#allocation4 + $0x138] sm:$0xff]  }
  0x88   : > { %4648 = vmatprep.subr.bf16.mxu0 %v5283_v34 }
  0x8a   : > { %4609 = vmatpush3.bf16.msra.mxu1 %v5282_v33 }
  0x8b   : > { %4649 = vmatpush3.bf16.msra.mxu0 %v5283_v34  ;;  %4614 = vmatprep.subr.bf16.mxu1 %v5286_v36 }
  0x8c   : > { %4654 = vmatprep.subr.bf16.mxu0 %v5288_v43 }
  0x8d   : > { %4611 = vmatmul.mubr.bf16.vlgmr.msra.gmra.mrb[0].mxu1 %v488_v46 }
  0x8e   : > { %4615 = vmatpush3.bf16.msra.mxu1 %v5286_v36  ;;  %4651 = vmatmul.mubr.bf16.vlgmr.msra.gmra.mrb[0].mxu0 %v713_v48  ;;  %v379_v36 = vlaneseq }
  0x8f   : > { %4655 = vmatpush3.bf16.msra.mxu0 %v5288_v43  ;;  %4616 = vmatprep.subr.bf16.mxu1 %v5290_v49 }
  0x90   : > { %4656 = vmatprep.subr.bf16.mxu0 %v5291_v51  ;;  %4630 = vmatprep.mubr.bf16.mxu1 %v5915_v14  ;;  %v859_v14 = vsel %vm838_vm2, %v5932_v50, %v858_v12  ;;  %v380_v37 = vshrl.u32 %v379_v36, 7  ;;  %v5327_v36 = vld [vmem:[#allocation7 + $0x18] sm:$0xff]  }
  0x91   : > { %4670 = vmatprep.mubr.bf16.mxu0 %v850_v52 }
  0x92   : > { %4617 = vmatpush3.bf16.msra.mxu1 %v5290_v49  ;;  %v383_v38 = vadd.s32 24, %v380_v37  ;;  %v381_v41 = vadd.s32 8, %v380_v37  ;;  %v5328_v37 = vld [vmem:[#allocation7 + $0x20] sm:$0xff]  }
  0x93   : > { %4657 = vmatpush3.bf16.msra.mxu0 %v5291_v51  ;;  %4618 = vmatprep.subr.bf16.mxu1 %v5292_v53 }
  0x94   : > { %4658 = vmatprep.subr.bf16.mxu0 %v5293_v54  ;;  %v390_v47 = vadd.s32 4294967286, %v383_v38  ;;  %v388_v51 = vadd.s32 4294967286, %v381_v41  ;;  %v5329_v38 = vld [vmem:[#allocation7 + $0x28] sm:$0xff]   ;;  %v5331_v41 = vld [vmem:[#allocation7 + $0x38] sm:$0xff]  }
  0x96   : > { %4619 = vmatpush3.bf16.msra.mxu1 %v5292_v53  ;;  %vm400_vm4 = vcmp.lt.s32.totalorder %v390_v47, 16  ;;  %vm393_vm5 = vcmp.ge.s32.totalorder %v388_v51, 0  ;;  %v5335_v47 = vld [vmem:[#allocation7 + $0x88] sm:$0xff]   ;;  %v5338_v51 = vld [vmem:[#allocation7 + $0xa0] sm:$0xff]  }
  0x97   : > { %4659 = vmatpush3.bf16.msra.mxu0 %v5293_v54  ;;  %4620 = vmatprep.subr.bf16.mxu1 %v5294_v56 }
  0x98   : > { %4660 = vmatprep.subr.bf16.mxu0 %v5295_v59 }
  0x9a   : > { %4621 = vmatpush3.bf16.msra.mxu1 %v5294_v56 }
  0x9b   : > { %4661 = vmatpush3.bf16.msra.mxu0 %v5295_v59  ;;  %4622 = vmatprep.subr.bf16.mxu1 %v5296_v60 }
  0x9c   : > { %4662 = vmatprep.subr.bf16.mxu0 %v5297_v61 }
  0x9e   : > { %4623 = vmatpush3.bf16.msra.mxu1 %v5296_v60  ;;  %v5702_v60 = vmov 0.0  }
  0x9f   : > { %4663 = vmatpush3.bf16.msra.mxu0 %v5297_v61  ;;  %4624 = vmatprep.subr.bf16.mxu1 %v5298_v3  ;;  %v5965_v61 = vsel %vm400_vm4, 1.0, %v5702_v60  ;;  %v5968_v62 = vsel %vm393_vm5, 1.0, %v5702_v60  ;;  %v1125_v2 = vrot.slane %v5702_v60, 2 }
  0xa0   : > { %4664 = vmatprep.subr.bf16.mxu0 %v5299_v4  ;;  %v1130_v1 = vrot.slane %v5965_v61, 2 }
  0xa2   : > { %4625 = vmatpush3.bf16.msra.mxu1 %v5298_v3  ;;  %v1126_v3 = vrot.slane %v5968_v62, 2  ;;  %v1131_v5 = vsel %vm984_vm3, %v1128_v0, %v1130_v1  ;;  %v1133_v6 = vsel %vm984_vm3, %v1130_v1, %v1125_v2 }
  0xa3   : > { %4665 = vmatpush3.bf16.msra.mxu0 %v5299_v4  ;;  %4626 = vmatprep.subr.bf16.mxu1 %v5300_v7 }
  0xa4   : > { %4666 = vmatprep.subr.bf16.mxu0 %v5301_v8 }
  0xa6   : > { %4627 = vmatpush3.bf16.msra.mxu1 %v5300_v7 }
  0xa7   : > { %4667 = vmatpush3.bf16.msra.mxu0 %v5301_v8  ;;  %4628 = vmatprep.subr.bf16.mxu1 %v5302_v9  ;;  %v1127_v8 = vsel %vm984_vm3, %v1125_v2, %v1126_v3 }
  0xa8   : > { %4668 = vmatprep.subr.bf16.mxu0 %v5303_v10 }
  0xaa   : > { %4629 = vmatpush3.bf16.msra.mxu1 %v5302_v9  ;;  %v1129_v9 = vsel %vm984_vm3, %v1126_v3, %v1128_v0  ;;  %v5341_v0 = vld [vmem:[#allocation7 + $0xb8] sm:$0xff]  }
  0xab   : > { %4669 = vmatpush3.bf16.msra.mxu0 %v5303_v10  ;;  %4694 = vmatprep.subr.bf16.mxu1 %v5314_v24 }
  0xac   : > { %4674 = vmatprep.subr.bf16.mxu0 %v5304_v11 }
  0xad   : > { %4631 = vmatmul.mubr.bf16.vlgmr.msra.gmra.mrb[0].mxu1 %v5918_v15  ;;  %v5320_v15 = vld [vmem:[#allocation7 + $0x70] sm:$0xff]  }
  0xae   : > { %4671 = vmatmul.mubr.bf16.vlgmr.msra.gmra.mrb[0].mxu0 %v859_v14  ;;  %4695 = vmatpush3.bf16.msra.mxu1 %v5314_v24 }
  0xaf   : > { %4675 = vmatpush3.bf16.msra.mxu0 %v5304_v11  ;;  %4690 = vmatprep.mubr.bf16.mxu0 %v987_v16 }
  0xb0   : > { %4676 = vmatprep.subr.bf16.mxu0 %v5306_v13  ;;  %4696 = vmatprep.subr.bf16.mxu1 %v5315_v25 }
  0xb2   : > { %4697 = vmatpush3.bf16.msra.mxu1 %v5315_v25 }
  0xb3   : > { %4677 = vmatpush3.bf16.msra.mxu0 %v5306_v13  ;;  %4698 = vmatprep.subr.bf16.mxu1 %v5316_v26 }
  0xb4   : > { %4678 = vmatprep.subr.bf16.mxu0 %v5307_v17 }
  0xb6   : > { %4699 = vmatpush3.bf16.msra.mxu1 %v5316_v26 }
  0xb7   : > { %4679 = vmatpush3.bf16.msra.mxu0 %v5307_v17  ;;  %4700 = vmatprep.subr.bf16.mxu1 %v5317_v27 }
  0xb8   : > { %4680 = vmatprep.subr.bf16.mxu0 %v5308_v18 }
  0xba   : > { %4701 = vmatpush3.bf16.msra.mxu1 %v5317_v27 }
  0xbb   : > { %4681 = vmatpush3.bf16.msra.mxu0 %v5308_v18  ;;  %4702 = vmatprep.subr.bf16.mxu1 %v5318_v28 }
  0xbc   : > { %4682 = vmatprep.subr.bf16.mxu0 %v5309_v19 }
  0xbe   : > { %4703 = vmatpush3.bf16.msra.mxu1 %v5318_v28 }
  0xbf   : > { %4683 = vmatpush3.bf16.msra.mxu0 %v5309_v19  ;;  %4704 = vmatprep.subr.bf16.mxu1 %v5319_v29 }
  0xc0   : > { %4684 = vmatprep.subr.bf16.mxu0 %v5310_v20 }
  0xc2   : > { %4705 = vmatpush3.bf16.msra.mxu1 %v5319_v29 }
  0xc3   : > { %4685 = vmatpush3.bf16.msra.mxu0 %v5310_v20  ;;  %4706 = vmatprep.subr.bf16.mxu1 %v5320_v15 }
  0xc4   : > { %4686 = vmatprep.subr.bf16.mxu0 %v5311_v21 }
  0xc6   : > { %4707 = vmatpush3.bf16.msra.mxu1 %v5320_v15 }
  0xc7   : > { %4687 = vmatpush3.bf16.msra.mxu0 %v5311_v21  ;;  %4708 = vmatprep.subr.bf16.mxu1 %v5321_v30 }
  0xc8   : > { %4688 = vmatprep.subr.bf16.mxu0 %v5312_v22 }
  0xca   : > { %4709 = vmatpush3.bf16.msra.mxu1 %v5321_v30 }
  0xcb   : > { %4689 = vmatpush3.bf16.msra.mxu0 %v5312_v22  ;;  %4714 = vmatprep.subr.bf16.mxu1 %v5955_v31 }
  0xce   : > { %4691 = vmatmul.mubr.bf16.vlgmr.msra.gmra.mrb[0].mxu0 %v989_v23 }
 0x180   : > { %v4632_v32 = vpop.f32.mrb[0].mxu1 }
 0x181   : > { %v672_v33 = vpop.f32.mrb[1].mxu1 }
 0x182   : > { %v4633_v34 = vpop.f32.mrb[2].mxu1 }
 0x183   : > { %v675_v35 = vpop.f32.mrb[3].mxu1 }
 0x1a1   : > { %v4692_v39 = vpop.f32.mrb[0].mxu0 }
 0x1a2   : > { %v5094_v42 = vadd.f32 %v4692_v39, %v4632_v32  ;;  %v1074_v43 = vpop.f32.mrb[1].mxu0  ;;  %v5330_v39 = vld [vmem:[#allocation7 + $0x30] sm:$0xff]  }
 0x1a3   : > { %v5095_v45 = vadd.f32 %v1074_v43, %v672_v33  ;;  %v4693_v46 = vpop.f32.mrb[2].mxu0 }
 0x1a4   : > { %v1102_v48 = vmul.f32 %v5094_v42, %v4090_v40  ;;  %v5096_v49 = vadd.f32 %v4693_v46, %v4633_v34  ;;  %v1077_v50 = vpop.f32.mrb[3].mxu0  ;;  %v5325_v34 = vld [vmem:[#allocation7 + $0x8] sm:$0xff]   ;;  %v5333_v42 = vld [vmem:[#allocation7 + $0x80] sm:$0xff]  }
 0x1a5   : > { %v1100_v52 = vmul.f32 %v5095_v45, %v4090_v40  ;;  %v5097_v53 = vadd.f32 %v1077_v50, %v675_v35  ;;  %v5326_v35 = vld [vmem:[#allocation7 + $0x10] sm:$0xff]   ;;  %v5337_v50 = vld [vmem:[#allocation7 + $0x98] sm:$0xff]  }
 0x1a6   : > { %v1113_v54 = vadd.f32 %v4091_v44, %v1102_v48  ;;  %v1103_v55 = vmul.f32 %v5096_v49, %v4090_v40  ;;  %v5336_v49 = vld [vmem:[#allocation7 + $0x90] sm:$0xff]  }
 0x1a7   : > { %v1111_v56 = vadd.f32 %v4091_v44, %v1100_v52  ;;  %v1101_v57 = vmul.f32 %v5097_v53, %v4090_v40  ;;  %v5339_v53 = vld [vmem:[#allocation7 + $0xa8] sm:$0xff]  }
 0x1a8   : > { %5497 = vtanh.f32 %v1113_v54  ;;  %v1114_v58 = vadd.f32 %v4091_v44, %v1103_v55  ;;  %v5340_v55 = vld [vmem:[#allocation7 + $0xb0] sm:$0xff]  }
 0x1a9   : > { %5499 = vtanh.f32 %v1111_v56  ;;  %v1112_v59 = vadd.f32 %v4091_v44, %v1101_v57 }
 0x1aa   : > { %5501 = vtanh.f32 %v1114_v58 }
 0x1ab   : > { %5503 = vtanh.f32 %v1112_v59 }
 0x1b2   : > { %v5498_v4 = vpop.eup %5497 }
 0x1b3   : > { %v5500_v7 = vpop.eup %5499  ;;  %v1140_v12 = vmul.f32 %v5498_v4, %v1131_v5  ;;  %v5342_v5 = vld [vmem:[#allocation7 + $0xc0] sm:$0xff]  }
 0x1b4   : > { %v5502_v10 = vpop.eup %5501  ;;  %v1138_v14 = vmul.f32 %v5500_v7, %v1127_v8  ;;  %v5344_v8 = vld [vmem:[#allocation7 + $0xc8] sm:$0xff]  }
 0x1b5   : > { %v5504_v11 = vpop.eup %5503  ;;  %v1141_v13 = vmul.f32 %v5502_v10, %v1133_v6  ;;  %v5345_v10 = vld [vmem:[#allocation7 + $0xd0] sm:$0xff]  }
 0x1b6   : > { %v1139_v16 = vmul.f32 %v5504_v11, %v1129_v9  ;;  %v5346_v11 = vld [vmem:[#allocation7 + $0xd8] sm:$0xff]  }
 0x1b7   : > { %v4331_v17 = vpack.c.bf16 %v1141_v13, %v1140_v12  ;;  %v5347_v12 = vld [vmem:[#allocation7 + $0xe0] sm:$0xff]   ;;  %v5348_v13 = vld [vmem:[#allocation7 + $0xe8] sm:$0xff]  }
 0x1b8   : > { %v4326_v18 = vpack.c.bf16 %v1139_v16, %v1138_v14  ;;  %v5349_v14 = vld [vmem:[#allocation7 + $0xf0] sm:$0xff]  }
 0x1b9   : > { %4348 = vst [vmem:[#allocation2 + $0x8] sm:$0xff] %v4331_v17   ;;  %v5350_v17 = vld [vmem:[#allocation7 + $0xf8] sm:$0xff]  }
 0x1ba   : > { %4327 = vst [vmem:[#allocation2] sm:$0xff] %v4326_v18  }
 0x1c0   : > { %v5978_v19 = vld [vmem:[#allocation2 + $0x8] sm:$0xf]  ;;  %v1182_v20 = vld [vmem:[#allocation2 + $0xc] sm:$0x7] }
 0x1c1   : > { %v1162_v21 = vld [vmem:[#allocation2] sm:$0xf]  ;;  %v5980_v22 = vld [vmem:[#allocation2 + $0x4] sm:$0xf]  ;;  %v5983_v23 = vcombine.low %v5978_v19, %v1182_v20  ;;  %v1165_v43 = vld [vmem:[#allocation2 + $0xc] sm:$0x3] }
 0x1c2   : > { %v4096_v24 = vcombine.low %v1162_v21, %v5980_v22  ;;  %v1426_v40 = vld [vmem:[#allocation2] sm:$0xe]  ;;  %v4106_v46 = vcombine.low %v5978_v19, %v1165_v43  ;;  %v1553_v52 = vld [vmem:[#allocation2 + $0xc] sm:$0xf] }
 0x1c3   : > { %v1218_v25 = vshll.u32 %v5983_v23, 16  ;;  %v1222_v30 = vshrl.u32 %v5983_v23, 16  ;;  %v1448_v45 = vrot.slane %v5983_v23, 1  ;;  %v5995_v54 = vcombine.low %v5978_v19, %v1553_v52  ;;  %v1694_v16 = vld [vmem:[#allocation2] sm:$0xc]  ;;  %v5351_v19 = vld [vmem:[#allocation7 + $0x100] sm:$0xff]  }
 0x1c4   : > { %v1213_v26 = vshll.u32 %v4096_v24, 16  ;;  %v1211_v27 = vshrl.u32 %v4096_v24, 16  ;;  %v4133_v18 = vcombine.low %v1694_v16, %v5980_v22  ;;  %v5353_v23 = vld [vmem:[#allocation7 + $0x108] sm:$0xff]   ;;  %v1853_v52 = vrot.slane %v5703_v63, 4 }
 0x1c5   : > { %v1220_v29 = vrot.slane %v1218_v25, 1  ;;  %v1583_v58 = vshrl.u32 %v5995_v54, 16  ;;  %v1586_v59 = vshll.u32 %v5995_v54, 16  ;;  %v1716_v21 = vrot.slane %v5995_v54, 2  ;;  %v5354_v25 = vld [vmem:[#allocation7 + $0x110] sm:$0xff]  }
 0x1c6   : > { %v1215_v28 = vrot.slane %v1213_v26, 1  ;;  %v1715_v20 = vrot.slane %v4133_v18, 2  ;;  %v5355_v26 = vld [vmem:[#allocation7 + $0x118] sm:$0xff]   ;;  %v1850_v54 = vrot.slane %v5702_v60, 4 }
 0x1c7   : > { %v1224_v33 = vor.u32 %v1222_v30, %v1220_v29  ;;  %v1585_v3 = vrot.slane %v1583_v58, 1  ;;  %v1588_v4 = vrot.slane %v1586_v59, 2  ;;  %v5361_v30 = vld [vmem:[#allocation7 + $0x188] sm:$0xff]  }
 0x1c8   : > { %v1216_v15 = vor.u32 %v1215_v28, %v1211_v27  ;;  %v5357_v27 = vld [vmem:[#allocation7 + $0x128] sm:$0xff]   ;;  %v5358_v28 = vld [vmem:[#allocation7 + $0x130] sm:$0xff]  }
 0x1c9   : > { %v1589_v7 = vor.u32 %v1588_v4, %v1585_v3 }
 0x1ca   : > { %v1221_v32 = vsel %vm468_vm0, %v1216_v15, %v1220_v29  ;;  %v5359_v29 = vld [vmem:[#allocation7 + $0x138] sm:$0xff]   ;;  %v5360_v15 = vld [vmem:[#allocation7 + $0x180] sm:$0xff]  }
 0x1cb   : > { %4710 = vmatprep.mubr.bf16.mxu1 %v1221_v32  ;;  %4794 = vmatprep.subr.bf16.mxu0 %v5360_v15  ;;  %v5362_v32 = vld [vmem:[#allocation7 + $0x190] sm:$0xff]  }
 0x1cc   : > { %4711 = vmatmul.mubr.bf16.vlgmr.msra.gmra.mrb[4].mxu1 %v1224_v33  ;;  %4795 = vmatpush3.bf16.msra.mxu0 %v5360_v15  ;;  %v5363_v33 = vld [vmem:[#allocation7 + $0x198] sm:$0xff]   ;;  %v5375_v15 = vld [vmem:[#allocation7 + $0x168] sm:$0xff]  }
 0x1cd   : > { %4715 = vmatpush3.bf16.msra.mxu1 %v5955_v31  ;;  %4730 = vmatprep.mubr.bf16.mxu1 %v4096_v24  ;;  %v4115_v31 = vcombine.low %v1426_v40, %v5980_v22  ;;  %v1717_v24 = vsel %vm984_vm3, %v1715_v20, %v1716_v21  ;;  %v5356_v22 = vld [vmem:[#allocation7 + $0x120] sm:$0xff]  }
 0x1ce   : > { %4716 = vmatprep.subr.bf16.mxu1 %v5325_v34  ;;  %4796 = vmatprep.subr.bf16.mxu0 %v5361_v30 }
 0x1cf   : > { %v1447_v44 = vrot.slane %v4115_v31, 1  ;;  %v1575_v56 = vshrl.u32 %v4115_v31, 16  ;;  %v1578_v57 = vshll.u32 %v4115_v31, 16 }
 0x1d0   : > { %4797 = vmatpush3.bf16.msra.mxu0 %v5361_v30  ;;  %v5376_v30 = vld [vmem:[#allocation7 + $0x170] sm:$0xff]  }
 0x1d1   : > { %4717 = vmatpush3.bf16.msra.mxu1 %v5325_v34  ;;  %v1449_v48 = vsel %vm708_vm1, %v1447_v44, %v1448_v45  ;;  %v1577_v1 = vrot.slane %v1575_v56, 1  ;;  %v1580_v2 = vrot.slane %v1578_v57, 2  ;;  %4798 = vmatprep.subr.bf16.mxu0 %v5362_v32  ;;  %v5364_v34 = vld [vmem:[#allocation7 + $0x1a0] sm:$0xff]  }
 0x1d2   : > { %4718 = vmatprep.subr.bf16.mxu1 %v5326_v35 }
 0x1d3   : > { %v1581_v6 = vor.u32 %v1580_v2, %v1577_v1 }
 0x1d4   : > { %4799 = vmatpush3.bf16.msra.mxu0 %v5362_v32 }
 0x1d5   : > { %4719 = vmatpush3.bf16.msra.mxu1 %v5326_v35  ;;  %v1590_v9 = vsel %vm838_vm2, %v1581_v6, %v1589_v7  ;;  %4800 = vmatprep.subr.bf16.mxu0 %v5363_v33  ;;  %v5365_v35 = vld [vmem:[#allocation7 + $0x1a8] sm:$0xff]  }
 0x1d6   : > { %4720 = vmatprep.subr.bf16.mxu1 %v5327_v36 }
 0x1d8   : > { %4801 = vmatpush3.bf16.msra.mxu0 %v5363_v33  ;;  %v5377_v33 = vld [vmem:[#allocation7 + $0x178] sm:$0xff]  }
 0x1d9   : > { %4721 = vmatpush3.bf16.msra.mxu1 %v5327_v36  ;;  %4802 = vmatprep.subr.bf16.mxu0 %v5364_v34  ;;  %v5366_v36 = vld [vmem:[#allocation7 + $0x1b0] sm:$0xff]  }
 0x1da   : > { %4722 = vmatprep.subr.bf16.mxu1 %v5328_v37 }
 0x1dc   : > { %4803 = vmatpush3.bf16.msra.mxu0 %v5364_v34 }
 0x1dd   : > { %4723 = vmatpush3.bf16.msra.mxu1 %v5328_v37  ;;  %4804 = vmatprep.subr.bf16.mxu0 %v5365_v35  ;;  %v5367_v37 = vld [vmem:[#allocation7 + $0x1b8] sm:$0xff]  }
 0x1de   : > { %4724 = vmatprep.subr.bf16.mxu1 %v5329_v38 }
 0x1e0   : > { %4805 = vmatpush3.bf16.msra.mxu0 %v5365_v35  ;;  %v5379_v35 = vld [vmem:[#allocation7 + $0x1c0] sm:$0xff]  }
 0x1e1   : > { %4725 = vmatpush3.bf16.msra.mxu1 %v5329_v38  ;;  %4806 = vmatprep.subr.bf16.mxu0 %v5366_v36  ;;  %v5370_v38 = vld [vmem:[#allocation7 + $0x140] sm:$0xff]  }
 0x1e2   : > { %4726 = vmatprep.subr.bf16.mxu1 %v5330_v39 }
 0x1e4   : > { %4807 = vmatpush3.bf16.msra.mxu0 %v5366_v36 }
 0x1e5   : > { %4727 = vmatpush3.bf16.msra.mxu1 %v5330_v39  ;;  %4808 = vmatprep.subr.bf16.mxu0 %v5367_v37  ;;  %v4143_v39 = vld [vmem:[%s6204_s4 + $0x1] ss:$0 sm:$0xff] }
 0x1e6   : > { %4728 = vmatprep.subr.bf16.mxu1 %v5331_v41 }
 0x1e8   : > { %4809 = vmatpush3.bf16.msra.mxu0 %v5367_v37 }
 0x1e9   : > { %4729 = vmatpush3.bf16.msra.mxu1 %v5331_v41  ;;  %4814 = vmatprep.subr.bf16.mxu0 %v5370_v38  ;;  %v4145_v41 = vld [vmem:[%s6205_s5 + $0x1] ss:$0 sm:$0xff] }
 0x1ea   : > { %4734 = vmatprep.subr.bf16.mxu1 %v5333_v42 }
 0x1ec   : > { %4731 = vmatmul.mubr.bf16.vlgmr.msra.gmra.mrb[4].mxu1 %v4106_v46 }
 0x1ed   : > { %4735 = vmatpush3.bf16.msra.mxu1 %v5333_v42  ;;  %4750 = vmatprep.mubr.bf16.mxu1 %v1449_v48 }
 0x1ee   : > { %4736 = vmatprep.subr.bf16.mxu1 %v5335_v47 }
 0x1f1   : > { %4737 = vmatpush3.bf16.msra.mxu1 %v5335_v47 }
 0x1f2   : > { %4738 = vmatprep.subr.bf16.mxu1 %v5336_v49 }
 0x1f5   : > { %4739 = vmatpush3.bf16.msra.mxu1 %v5336_v49 }
 0x1f6   : > { %4740 = vmatprep.subr.bf16.mxu1 %v5337_v50 }
 0x1f9   : > { %4741 = vmatpush3.bf16.msra.mxu1 %v5337_v50 }
 0x1fa   : > { %4742 = vmatprep.subr.bf16.mxu1 %v5338_v51 }
 0x1fd   : > { %4743 = vmatpush3.bf16.msra.mxu1 %v5338_v51 }
 0x1fe   : > { %4744 = vmatprep.subr.bf16.mxu1 %v5339_v53 }
 0x201   : > { %4745 = vmatpush3.bf16.msra.mxu1 %v5339_v53  ;;  %v1855_v53 = vrot.slane %v5965_v61, 4 }
 0x202   : > { %4746 = vmatprep.subr.bf16.mxu1 %v5340_v55 }
 0x203   : > { %v1856_v56 = vsel %vm1849_vm6, %v1853_v52, %v1855_v53 }
 0x205   : > { %4747 = vmatpush3.bf16.msra.mxu1 %v5340_v55  ;;  %v1851_v55 = vrot.slane %v5968_v62, 4 }
 0x206   : > { %4748 = vmatprep.subr.bf16.mxu1 %v5341_v0 }
 0x207   : > { %v1854_v1 = vsel %vm1849_vm6, %v1851_v55, %v1853_v52 }
 0x209   : > { %4749 = vmatpush3.bf16.msra.mxu1 %v5341_v0  ;;  %v1852_v0 = vsel %vm1849_vm6, %v1850_v54, %v1851_v55 }
 0x20a   : > { %4754 = vmatprep.subr.bf16.mxu1 %v5342_v5 }
 0x20c   : > { %4751 = vmatmul.mubr.bf16.vlgmr.msra.gmra.mrb[4].mxu1 %v1448_v45 }
 0x20d   : > { %4755 = vmatpush3.bf16.msra.mxu1 %v5342_v5  ;;  %4770 = vmatprep.mubr.bf16.mxu1 %v1590_v9 }
 0x20e   : > { %4756 = vmatprep.subr.bf16.mxu1 %v5344_v8 }
 0x211   : > { %4757 = vmatpush3.bf16.msra.mxu1 %v5344_v8 }
 0x212   : > { %4758 = vmatprep.subr.bf16.mxu1 %v5345_v10 }
 0x215   : > { %4759 = vmatpush3.bf16.msra.mxu1 %v5345_v10 }
 0x216   : > { %4760 = vmatprep.subr.bf16.mxu1 %v5346_v11 }
 0x219   : > { %4761 = vmatpush3.bf16.msra.mxu1 %v5346_v11 }
 0x21a   : > { %4762 = vmatprep.subr.bf16.mxu1 %v5347_v12 }
 0x21d   : > { %4763 = vmatpush3.bf16.msra.mxu1 %v5347_v12 }
 0x21e   : > { %4764 = vmatprep.subr.bf16.mxu1 %v5348_v13 }
 0x221   : > { %4765 = vmatpush3.bf16.msra.mxu1 %v5348_v13 }
 0x222   : > { %4766 = vmatprep.subr.bf16.mxu1 %v5349_v14 }
 0x225   : > { %4767 = vmatpush3.bf16.msra.mxu1 %v5349_v14 }
 0x226   : > { %4768 = vmatprep.subr.bf16.mxu1 %v5350_v17 }
 0x229   : > { %4769 = vmatpush3.bf16.msra.mxu1 %v5350_v17 }
 0x22a   : > { %4774 = vmatprep.subr.bf16.mxu1 %v5351_v19 }
 0x22c   : > { %4771 = vmatmul.mubr.bf16.vlgmr.msra.gmra.mrb[4].mxu1 %v1589_v7 }
 0x22d   : > { %4775 = vmatpush3.bf16.msra.mxu1 %v5351_v19  ;;  %4790 = vmatprep.mubr.bf16.mxu1 %v1717_v24 }
 0x22e   : > { %4776 = vmatprep.subr.bf16.mxu1 %v5353_v23 }
 0x231   : > { %4777 = vmatpush3.bf16.msra.mxu1 %v5353_v23 }
 0x232   : > { %4778 = vmatprep.subr.bf16.mxu1 %v5354_v25 }
 0x235   : > { %4779 = vmatpush3.bf16.msra.mxu1 %v5354_v25 }
 0x236   : > { %4780 = vmatprep.subr.bf16.mxu1 %v5355_v26 }
 0x239   : > { %4781 = vmatpush3.bf16.msra.mxu1 %v5355_v26 }
 0x23a   : > { %4782 = vmatprep.subr.bf16.mxu1 %v5356_v22 }
 0x23d   : > { %4783 = vmatpush3.bf16.msra.mxu1 %v5356_v22  ;;  %v5371_v22 = vld [vmem:[#allocation7 + $0x148] sm:$0xff]  }
 0x23e   : > { %4784 = vmatprep.subr.bf16.mxu1 %v5357_v27 }
 0x241   : > { %4785 = vmatpush3.bf16.msra.mxu1 %v5357_v27  ;;  %v5372_v27 = vld [vmem:[#allocation7 + $0x150] sm:$0xff]  }
 0x242   : > { %4786 = vmatprep.subr.bf16.mxu1 %v5358_v28 }
 0x245   : > { %4787 = vmatpush3.bf16.msra.mxu1 %v5358_v28  ;;  %v5373_v28 = vld [vmem:[#allocation7 + $0x158] sm:$0xff]  }
 0x246   : > { %4788 = vmatprep.subr.bf16.mxu1 %v5359_v29 }
 0x249   : > { %4789 = vmatpush3.bf16.msra.mxu1 %v5359_v29  ;;  %v5374_v29 = vld [vmem:[#allocation7 + $0x160] sm:$0xff]  }
 0x24c   : > { %4791 = vmatmul.mubr.bf16.vlgmr.msra.gmra.mrb[4].mxu1 %v1716_v21 }
 0x31f   : > { %v4792_v40 = vpop.f32.mrb[4].mxu1 }
 0x320   : > { %v1831_v31 = vmul.f32 %v4792_v40, %v4143_v39  ;;  %v1802_v42 = vpop.f32.mrb[5].mxu1 }
 0x321   : > { %v1829_v43 = vmul.f32 %v4143_v39, %v1802_v42  ;;  %v4793_v44 = vpop.f32.mrb[6].mxu1  ;;  %v5384_v42 = vld [vmem:[#allocation7 + $0x1e0] sm:$0xff]  }
 0x322   : > { %v1843_v45 = vadd.f32 %v4145_v41, %v1831_v31  ;;  %v1832_v46 = vmul.f32 %v4793_v44, %v4143_v39  ;;  %v1805_v47 = vpop.f32.mrb[7].mxu1  ;;  %v5383_v31 = vld [vmem:[#allocation7 + $0x1d8] sm:$0xff]   ;;  %v5385_v44 = vld [vmem:[#allocation7 + $0x1e8] sm:$0xff]  }
 0x323   : > { %v1841_v48 = vadd.f32 %v4145_v41, %v1829_v43  ;;  %v1830_v49 = vmul.f32 %v4143_v39, %v1805_v47  ;;  %v5381_v39 = vld [vmem:[#allocation7 + $0x1c8] sm:$0xff]  }
 0x324   : > { %5505 = vtanh.f32 %v1843_v45  ;;  %v1844_v50 = vadd.f32 %v4145_v41, %v1832_v46  ;;  %v5386_v46 = vld [vmem:[#allocation7 + $0x1f0] sm:$0xff]  }
 0x325   : > { %5507 = vtanh.f32 %v1841_v48  ;;  %v1842_v51 = vadd.f32 %v4145_v41, %v1830_v49  ;;  %v5382_v41 = vld [vmem:[#allocation7 + $0x1d0] sm:$0xff]  }
 0x326   : > { %5509 = vtanh.f32 %v1844_v50 }
 0x327   : > { %5511 = vtanh.f32 %v1842_v51  ;;  %v5387_v51 = vld [vmem:[#allocation7 + $0x1f8] sm:$0xff]  }
 0x32e   : > { %v5506_v57 = vpop.eup %5505 }
 0x32f   : > { %v5508_v58 = vpop.eup %5507  ;;  %v1863_v59 = vmul.f32 %v5506_v57, %v1856_v56  ;;  %v5388_v56 = vld [vmem:[#allocation7 + $0x200] sm:$0xff]  }
 0x330   : > { %v5510_v2 = vpop.eup %5509  ;;  %v1861_v6 = vmul.f32 %v5508_v58, %v1852_v0 }
 0x331   : > { %v5512_v3 = vpop.eup %5511  ;;  %v4314_v4 = vpack.c.bf16 %v1863_v59, %v1863_v59  ;;  %v1864_v5 = vmul.f32 %v5510_v2, %v1855_v53  ;;  %v5390_v59 = vld [vmem:[#allocation7 + $0x208] sm:$0xff]   ;;  %v5392_v2 = vld [vmem:[#allocation7 + $0x218] sm:$0xff]  }
 0x332   : > { %v1862_v7 = vmul.f32 %v5512_v3, %v1854_v1  ;;  %v5391_v1 = vld [vmem:[#allocation7 + $0x210] sm:$0xff]   ;;  %v5393_v3 = vld [vmem:[#allocation7 + $0x220] sm:$0xff]  }
 0x333   : > { %1883 = vst [vmem:[#allocation3 + $0x8] sm:$0xf] %v4314_v4  ;;  %v4315_v8 = vpack.c.bf16 %v1864_v5, %v1864_v5  ;;  %v5394_v4 = vld [vmem:[#allocation7 + $0x228] sm:$0xff]   ;;  %v5395_v5 = vld [vmem:[#allocation7 + $0x230] sm:$0xff]  }
 0x334   : > { %v4336_v9 = vpack.c.bf16 %v1862_v7, %v1861_v6  ;;  %v5396_v7 = vld [vmem:[#allocation7 + $0x238] sm:$0xff]  }
 0x335   : > { %1884 = vst [vmem:[#allocation3 + $0xc] sm:$0x3] %v4315_v8 }
 0x336   : > { %4337 = vst [vmem:[#allocation3] sm:$0xff] %v4336_v9   ;;  %v5397_v9 = vld [vmem:[#allocation7 + $0x240] sm:$0xff]  }
 0x33a   : > { %v6013_v10 = vld [vmem:[#allocation3 + $0x8] sm:$0xf] }
 0x33c   : > { %v1905_v11 = vld [vmem:[#allocation3 + $0xc] sm:$0x1] }
 0x33d   : > { %v1885_v12 = vld [vmem:[#allocation3] sm:$0xf]  ;;  %v6015_v13 = vld [vmem:[#allocation3 + $0x4] sm:$0xf]  ;;  %v6018_v14 = vcombine.low %v6013_v10, %v1905_v11  ;;  %v2270_v43 = vld [vmem:[#allocation3 + $0xc] sm:$0x3] }
 0x33e   : > { %v4150_v16 = vcombine.low %v1885_v12, %v6015_v13  ;;  %v2145_v32 = vld [vmem:[#allocation3] sm:$0xe]  ;;  %v6030_v45 = vcombine.low %v6013_v10, %v2270_v43  ;;  %v2560_v43 = vrot.slane %v5702_v60, 6 }
 0x33f   : > { %v1941_v17 = vshll.u32 %v6018_v14, 16  ;;  %v1945_v24 = vshrl.u32 %v6018_v14, 16  ;;  %v4169_v34 = vcombine.low %v2145_v32, %v6015_v13  ;;  %v2167_v37 = vrot.slane %v6018_v14, 1  ;;  %v2409_v6 = vld [vmem:[#allocation3] sm:$0xc] }
 0x340   : > { %v1936_v18 = vshll.u32 %v4150_v16, 16  ;;  %v1934_v19 = vshrl.u32 %v4150_v16, 16  ;;  %v2300_v49 = vshrl.u32 %v6030_v45, 16  ;;  %v2303_v50 = vshll.u32 %v6030_v45, 16  ;;  %v5399_v12 = vld [vmem:[#allocation7 + $0x248] sm:$0xff]  }
 0x341   : > { %v1943_v21 = vrot.slane %v1941_v17, 1  ;;  %v2166_v36 = vrot.slane %v4169_v34, 1  ;;  %v2292_v47 = vshrl.u32 %v4169_v34, 16  ;;  %v2295_v48 = vshll.u32 %v4169_v34, 16  ;;  %v5401_v17 = vld [vmem:[#allocation7 + $0x258] sm:$0xff]  }
 0x342   : > { %v1938_v20 = vrot.slane %v1936_v18, 1  ;;  %v2302_v54 = vrot.slane %v2300_v49, 1  ;;  %v2305_v55 = vrot.slane %v2303_v50, 2  ;;  %v4187_v8 = vcombine.low %v2409_v6, %v6015_v13  ;;  %v5402_v13 = vld [vmem:[#allocation7 + $0x260] sm:$0xff]   ;;  %v5403_v18 = vld [vmem:[#allocation7 + $0x268] sm:$0xff]  }
 0x343   : > { %v1947_v26 = vor.u32 %v1945_v24, %v1943_v21  ;;  %v2168_v40 = vsel %vm708_vm1, %v2166_v36, %v2167_v37  ;;  %v2294_v52 = vrot.slane %v2292_v47, 1  ;;  %v2297_v53 = vrot.slane %v2295_v48, 2  ;;  %v5408_v24 = vld [vmem:[#allocation7 + $0x2d0] sm:$0xff]   ;;  %v4199_v32 = vld [vmem:[%s6205_s5 + $0x2] ss:$0 sm:$0xff] }
 0x344   : > { %v1939_v23 = vor.u32 %v1938_v20, %v1934_v19  ;;  %v2306_v58 = vor.u32 %v2305_v55, %v2302_v54  ;;  %v2431_v11 = vrot.slane %v6030_v45, 2  ;;  %v5404_v19 = vld [vmem:[#allocation7 + $0x270] sm:$0xff]   ;;  %v5405_v20 = vld [vmem:[#allocation7 + $0x278] sm:$0xff]  }
 0x345   : > { %v2298_v57 = vor.u32 %v2297_v53, %v2294_v52 }
 0x346   : > { %v1944_v25 = vsel %vm468_vm0, %v1939_v23, %v1943_v21  ;;  %v5406_v21 = vld [vmem:[#allocation7 + $0x2c0] sm:$0xff]   ;;  %v5407_v23 = vld [vmem:[#allocation7 + $0x2c8] sm:$0xff]  }
 0x347   : > { %4810 = vmatprep.mubr.bf16.mxu0 %v1944_v25  ;;  %v2307_v0 = vsel %vm838_vm2, %v2298_v57, %v2306_v58  ;;  %4894 = vmatprep.subr.bf16.mxu1 %v5406_v21  ;;  %v5409_v25 = vld [vmem:[#allocation7 + $0x2d8] sm:$0xff]  }
 0x348   : > { %4811 = vmatmul.mubr.bf16.vlgmr.msra.gmra.mrb[4].mxu0 %v1947_v26  ;;  %4895 = vmatpush3.bf16.msra.mxu1 %v5406_v21  ;;  %v5410_v26 = vld [vmem:[#allocation7 + $0x2e0] sm:$0xff]  }
 0x349   : > { %4815 = vmatpush3.bf16.msra.mxu0 %v5370_v38  ;;  %4830 = vmatprep.mubr.bf16.mxu0 %v4150_v16  ;;  %v4160_v38 = vcombine.low %v6013_v10, %v6013_v10  ;;  %v2430_v10 = vrot.slane %v4187_v8, 2  ;;  %v5400_v16 = vld [vmem:[#allocation7 + $0x250] sm:$0xff]   ;;  %v5417_v8 = vld [vmem:[#allocation7 + $0x288] sm:$0xff]  }
 0x34a   : > { %4816 = vmatprep.subr.bf16.mxu0 %v5371_v22  ;;  %4896 = vmatprep.subr.bf16.mxu1 %v5407_v23 }
 0x34b   : > { %v2432_v14 = vsel %vm984_vm3, %v2430_v10, %v2431_v11  ;;  %v5419_v10 = vld [vmem:[#allocation7 + $0x298] sm:$0xff]  }
 0x34c   : > { %4897 = vmatpush3.bf16.msra.mxu1 %v5407_v23  ;;  %v5427_v23 = vld [vmem:[#allocation7 + $0x308] sm:$0xff]  }
 0x34d   : > { %4817 = vmatpush3.bf16.msra.mxu0 %v5371_v22  ;;  %4898 = vmatprep.subr.bf16.mxu1 %v5408_v24  ;;  %v5411_v22 = vld [vmem:[#allocation7 + $0x2e8] sm:$0xff]  }
 0x34e   : > { %4818 = vmatprep.subr.bf16.mxu0 %v5372_v27 }
 0x350   : > { %4899 = vmatpush3.bf16.msra.mxu1 %v5408_v24 }
 0x351   : > { %4819 = vmatpush3.bf16.msra.mxu0 %v5372_v27  ;;  %4900 = vmatprep.subr.bf16.mxu1 %v5409_v25  ;;  %v5412_v27 = vld [vmem:[#allocation7 + $0x2f0] sm:$0xff]  }
 0x352   : > { %4820 = vmatprep.subr.bf16.mxu0 %v5373_v28 }
 0x354   : > { %4901 = vmatpush3.bf16.msra.mxu1 %v5409_v25  ;;  %v5428_v25 = vld [vmem:[#allocation7 + $0x310] sm:$0xff]  }
 0x355   : > { %4821 = vmatpush3.bf16.msra.mxu0 %v5373_v28  ;;  %4902 = vmatprep.subr.bf16.mxu1 %v5410_v26  ;;  %v5413_v28 = vld [vmem:[#allocation7 + $0x2f8] sm:$0xff]  }
 0x356   : > { %4822 = vmatprep.subr.bf16.mxu0 %v5374_v29 }
 0x358   : > { %4903 = vmatpush3.bf16.msra.mxu1 %v5410_v26  ;;  %v5429_v26 = vld [vmem:[#allocation7 + $0x318] sm:$0xff]  }
 0x359   : > { %4823 = vmatpush3.bf16.msra.mxu0 %v5374_v29  ;;  %4904 = vmatprep.subr.bf16.mxu1 %v5411_v22  ;;  %v5416_v29 = vld [vmem:[#allocation7 + $0x280] sm:$0xff]  }
 0x35a   : > { %4824 = vmatprep.subr.bf16.mxu0 %v5375_v15 }
 0x35c   : > { %4905 = vmatpush3.bf16.msra.mxu1 %v5411_v22  ;;  %v5430_v22 = vld [vmem:[#allocation7 + $0x320] sm:$0xff]  }
 0x35d   : > { %4825 = vmatpush3.bf16.msra.mxu0 %v5375_v15  ;;  %4906 = vmatprep.subr.bf16.mxu1 %v5412_v27  ;;  %v4197_v15 = vld [vmem:[%s6204_s4 + $0x2] ss:$0 sm:$0xff] }
 0x35e   : > { %4826 = vmatprep.subr.bf16.mxu0 %v5376_v30 }
 0x360   : > { %4907 = vmatpush3.bf16.msra.mxu1 %v5412_v27  ;;  %v5431_v27 = vld [vmem:[#allocation7 + $0x328] sm:$0xff]  }
 0x361   : > { %4827 = vmatpush3.bf16.msra.mxu0 %v5376_v30  ;;  %4908 = vmatprep.subr.bf16.mxu1 %v5413_v28 }
 0x362   : > { %4828 = vmatprep.subr.bf16.mxu0 %v5377_v33 }
 0x364   : > { %4909 = vmatpush3.bf16.msra.mxu1 %v5413_v28  ;;  %v5432_v28 = vld [vmem:[#allocation7 + $0x330] sm:$0xff]  }
 0x365   : > { %4829 = vmatpush3.bf16.msra.mxu0 %v5377_v33  ;;  %4914 = vmatprep.subr.bf16.mxu1 %v5416_v29 }
 0x366   : > { %4834 = vmatprep.subr.bf16.mxu0 %v5379_v35 }
 0x368   : > { %4831 = vmatmul.mubr.bf16.vlgmr.msra.gmra.mrb[4].mxu0 %v4160_v38 }
 0x369   : > { %4835 = vmatpush3.bf16.msra.mxu0 %v5379_v35  ;;  %4850 = vmatprep.mubr.bf16.mxu0 %v2168_v40 }
 0x36a   : > { %4836 = vmatprep.subr.bf16.mxu0 %v5381_v39 }
 0x36d   : > { %4837 = vmatpush3.bf16.msra.mxu0 %v5381_v39 }
 0x36e   : > { %4838 = vmatprep.subr.bf16.mxu0 %v5382_v41 }
 0x371   : > { %4839 = vmatpush3.bf16.msra.mxu0 %v5382_v41 }
 0x372   : > { %4840 = vmatprep.subr.bf16.mxu0 %v5383_v31 }
 0x375   : > { %4841 = vmatpush3.bf16.msra.mxu0 %v5383_v31  ;;  %v2563_v31 = vrot.slane %v5703_v63, 6 }
 0x376   : > { %4842 = vmatprep.subr.bf16.mxu0 %v5384_v42 }
 0x379   : > { %4843 = vmatpush3.bf16.msra.mxu0 %v5384_v42  ;;  %v2565_v42 = vrot.slane %v5965_v61, 6 }
 0x37a   : > { %4844 = vmatprep.subr.bf16.mxu0 %v5385_v44 }
 0x37b   : > { %v2566_v45 = vsel %vm2559_vm7, %v2563_v31, %v2565_v42 }
 0x37d   : > { %4845 = vmatpush3.bf16.msra.mxu0 %v5385_v44  ;;  %v2561_v44 = vrot.slane %v5968_v62, 6 }
 0x37e   : > { %4846 = vmatprep.subr.bf16.mxu0 %v5386_v46 }
 0x37f   : > { %v2562_v49 = vsel %vm2559_vm7, %v2560_v43, %v2561_v44  ;;  %v2564_v50 = vsel %vm2559_vm7, %v2561_v44, %v2563_v31  ;;  %v5436_v31 = vld [vmem:[#allocation7 + $0x348] sm:$0xff]   ;;  %v5437_v43 = vld [vmem:[#allocation7 + $0x350] sm:$0xff]   ;;  %v5438_v44 = vld [vmem:[#allocation7 + $0x358] sm:$0xff]  }
 0x381   : > { %4847 = vmatpush3.bf16.msra.mxu0 %v5386_v46 }
 0x382   : > { %4848 = vmatprep.subr.bf16.mxu0 %v5387_v51 }
 0x385   : > { %4849 = vmatpush3.bf16.msra.mxu0 %v5387_v51 }
 0x386   : > { %4854 = vmatprep.subr.bf16.mxu0 %v5388_v56 }
 0x388   : > { %4851 = vmatmul.mubr.bf16.vlgmr.msra.gmra.mrb[4].mxu0 %v2167_v37 }
 0x389   : > { %4855 = vmatpush3.bf16.msra.mxu0 %v5388_v56  ;;  %4870 = vmatprep.mubr.bf16.mxu0 %v2307_v0 }
 0x38a   : > { %4856 = vmatprep.subr.bf16.mxu0 %v5390_v59 }
 0x38d   : > { %4857 = vmatpush3.bf16.msra.mxu0 %v5390_v59 }
 0x38e   : > { %4858 = vmatprep.subr.bf16.mxu0 %v5391_v1 }
 0x391   : > { %4859 = vmatpush3.bf16.msra.mxu0 %v5391_v1 }
 0x392   : > { %4860 = vmatprep.subr.bf16.mxu0 %v5392_v2 }
 0x395   : > { %4861 = vmatpush3.bf16.msra.mxu0 %v5392_v2 }
 0x396   : > { %4862 = vmatprep.subr.bf16.mxu0 %v5393_v3 }
 0x399   : > { %4863 = vmatpush3.bf16.msra.mxu0 %v5393_v3 }
 0x39a   : > { %4864 = vmatprep.subr.bf16.mxu0 %v5394_v4 }
 0x39d   : > { %4865 = vmatpush3.bf16.msra.mxu0 %v5394_v4 }
 0x39e   : > { %4866 = vmatprep.subr.bf16.mxu0 %v5395_v5 }
 0x3a1   : > { %4867 = vmatpush3.bf16.msra.mxu0 %v5395_v5 }
 0x3a2   : > { %4868 = vmatprep.subr.bf16.mxu0 %v5396_v7 }
 0x3a5   : > { %4869 = vmatpush3.bf16.msra.mxu0 %v5396_v7 }
 0x3a6   : > { %4874 = vmatprep.subr.bf16.mxu0 %v5397_v9 }
 0x3a8   : > { %4871 = vmatmul.mubr.bf16.vlgmr.msra.gmra.mrb[4].mxu0 %v2306_v58 }
 0x3a9   : > { %4875 = vmatpush3.bf16.msra.mxu0 %v5397_v9  ;;  %4890 = vmatprep.mubr.bf16.mxu0 %v2432_v14  ;;  %v5418_v9 = vld [vmem:[#allocation7 + $0x290] sm:$0xff]  }
 0x3aa   : > { %4876 = vmatprep.subr.bf16.mxu0 %v5399_v12  ;;  %v5422_v14 = vld [vmem:[#allocation7 + $0x2b0] sm:$0xff]  }
 0x3ad   : > { %4877 = vmatpush3.bf16.msra.mxu0 %v5399_v12  ;;  %v5421_v12 = vld [vmem:[#allocation7 + $0x2a8] sm:$0xff]  }
 0x3ae   : > { %4878 = vmatprep.subr.bf16.mxu0 %v5400_v16 }
 0x3b1   : > { %4879 = vmatpush3.bf16.msra.mxu0 %v5400_v16 }
 0x3b2   : > { %4880 = vmatprep.subr.bf16.mxu0 %v5401_v17 }
 0x3b5   : > { %4881 = vmatpush3.bf16.msra.mxu0 %v5401_v17  ;;  %v5423_v17 = vld [vmem:[#allocation7 + $0x2b8] sm:$0xff]  }
 0x3b6   : > { %4882 = vmatprep.subr.bf16.mxu0 %v5402_v13 }
 0x3b9   : > { %4883 = vmatpush3.bf16.msra.mxu0 %v5402_v13 }
 0x3ba   : > { %4884 = vmatprep.subr.bf16.mxu0 %v5403_v18 }
 0x3bd   : > { %4885 = vmatpush3.bf16.msra.mxu0 %v5403_v18  ;;  %v5425_v18 = vld [vmem:[#allocation7 + $0x300] sm:$0xff]  }
 0x3be   : > { %4886 = vmatprep.subr.bf16.mxu0 %v5404_v19 }
 0x3c1   : > { %4887 = vmatpush3.bf16.msra.mxu0 %v5404_v19 }
 0x3c2   : > { %4888 = vmatprep.subr.bf16.mxu0 %v5405_v20 }
 0x3c5   : > { %4889 = vmatpush3.bf16.msra.mxu0 %v5405_v20 }
 0x3c6   : > { %4994 = vmatprep.subr.bf16.mxu0 %v5702_v60 }
 0x3c8   : > { %4891 = vmatmul.mubr.bf16.vlgmr.msra.gmra.mrb[4].mxu0 %v2431_v11  ;;  %v5420_v11 = vld [vmem:[#allocation7 + $0x2a0] sm:$0xff]  }
 0x3c9   : > { %5010 = vmatprep.mubr.msk.bf16.mxu0 %vm5704_vm8, %v5702_v60 }
 0x49b   : > { %v4892_v30 = vpop.f32.mrb[4].mxu0 }
 0x49c   : > { %v2544_v33 = vmul.f32 %v4892_v30, %v4197_v15  ;;  %v2517_v34 = vpop.f32.mrb[5].mxu0 }
 0x49d   : > { %v2542_v35 = vmul.f32 %v4197_v15, %v2517_v34  ;;  %v4893_v36 = vpop.f32.mrb[6].mxu0 }
 0x49e   : > { %v2555_v37 = vadd.f32 %v4199_v32, %v2544_v33  ;;  %v2520_v38 = vpop.f32.mrb[7].mxu0 }
 0x49f   : > { %v2553_v39 = vadd.f32 %v4199_v32, %v2542_v35  ;;  %v2543_v40 = vmul.f32 %v4197_v15, %v2520_v38 }
 0x4a0   : > { %5513 = vtanh.f32 %v2555_v37  ;;  %v5434_v37 = vld [vmem:[#allocation7 + $0x340] sm:$0xff]  }
 0x4a1   : > { %5515 = vtanh.f32 %v2553_v39  ;;  %v2554_v41 = vadd.f32 %v4199_v32, %v2543_v40  ;;  %v5433_v32 = vld [vmem:[#allocation7 + $0x338] sm:$0xff]  }
 0x4a3   : > { %5517 = vtanh.f32 %v2554_v41 }
 0x4aa   : > { %v5514_v46 = vpop.eup %5513 }
 0x4ab   : > { %v5516_v47 = vpop.eup %5515  ;;  %v2572_v48 = vmul.f32 %v5514_v46, %v2566_v45  ;;  %v5439_v45 = vld [vmem:[#allocation7 + $0x360] sm:$0xff]   ;;  %v5440_v46 = vld [vmem:[#allocation7 + $0x368] sm:$0xff]  }
 0x4ac   : > { %v2570_v53 = vmul.f32 %v5516_v47, %v2562_v49  ;;  %v5441_v47 = vld [vmem:[#allocation7 + $0x370] sm:$0xff]   ;;  %v5442_v49 = vld [vmem:[#allocation7 + $0x378] sm:$0xff]  }
 0x4ad   : > { %v5518_v51 = vpop.eup %5517  ;;  %v4318_v52 = vpack.c.bf16 %v2572_v48, %v2572_v48 }
 0x4ae   : > { %v2571_v54 = vmul.f32 %v5518_v51, %v2564_v50  ;;  %v5443_v51 = vld [vmem:[#allocation7 + $0x380] sm:$0xff]  }
 0x4af   : > { %2588 = vst [vmem:[#allocation2 + $0x8] sm:$0xf] %v4318_v52 }
 0x4b0   : > { %v4341_v55 = vpack.c.bf16 %v2571_v54, %v2570_v53  ;;  %v5445_v54 = vld [vmem:[#allocation7 + $0x388] sm:$0xff]  }
 0x4b2   : > { %4342 = vst [vmem:[#allocation2] sm:$0xff] %v4341_v55  }
 0x4b6   : > { %v6049_v63 = vld [vmem:[#allocation2 + $0x8] ss:$0 sps:$4 sm:$0x77]  }
 0x4b7   : > { %v2643_v59 = vshll.u32 %v6049_v63, 16  ;;  %v2647_v5 = vshrl.u32 %v6049_v63, 16  ;;  %v5424_v20 = vld [vmem:[#allocation2 + $0x8] ss:$0 sps:$4 sm:$0x33]   ;;  %v2871_v21 = vrot.slane %v6049_v63, 1 }
 0x4b8   : > { %v5446_v63 = vld [vmem:[#allocation7 + $0x390] sm:$0xff]  }
 0x4b9   : > { %v2589_v56 = vld [vmem:[#allocation2] sm:$0xf]  ;;  %v6051_v57 = vld [vmem:[#allocation2 + $0x4] sm:$0xf]  ;;  %v2645_v3 = vrot.slane %v2643_v59, 1  ;;  %v5450_v59 = vld [vmem:[#allocation7 + $0x3b0] sm:$0xff]  }
 0x4ba   : > { %v4203_v58 = vcombine.low %v2589_v56, %v6051_v57  ;;  %v2849_v16 = vld [vmem:[#allocation2] sm:$0xe] }
 0x4bb   : > { %v2649_v7 = vor.u32 %v2647_v5, %v2645_v3  ;;  %v4222_v13 = vcombine.low %v2849_v16, %v6051_v57  ;;  %v3113_v48 = vld [vmem:[#allocation2] sm:$0xc]  ;;  %v5456_v5 = vld [vmem:[#allocation9 + $0x60] sm:$0xff]  }
 0x4bc   : > { %v2638_v0 = vshll.u32 %v4203_v58, 16  ;;  %v2636_v1 = vshrl.u32 %v4203_v58, 16  ;;  %v4240_v50 = vcombine.low %v3113_v48, %v6051_v57  ;;  %v5447_v56 = vld [vmem:[#allocation7 + $0x398] sm:$0xff]   ;;  %v5448_v57 = vld [vmem:[#allocation7 + $0x3a0] sm:$0xff]   ;;  %v5468_v48 = vld [vmem:[#allocation9 + $0x30] sm:$0xff]  }
 0x4bd   : > { %v2870_v19 = vrot.slane %v4222_v13, 1  ;;  %v2996_v15 = vshrl.u32 %v4222_v13, 16  ;;  %v2999_v30 = vshll.u32 %v4222_v13, 16 }
 0x4be   : > { %v2640_v2 = vrot.slane %v2638_v0, 1  ;;  %v3134_v52 = vrot.slane %v4240_v50, 2  ;;  %v5451_v0 = vld [vmem:[#allocation7 + $0x3b8] sm:$0xff]   ;;  %v5470_v50 = vld [vmem:[#allocation9 + $0x80] sm:$0xff]  }
 0x4bf   : > { %v2872_v24 = vsel %vm708_vm1, %v2870_v19, %v2871_v21  ;;  %v2998_v35 = vrot.slane %v2996_v15, 1  ;;  %v3001_v36 = vrot.slane %v2999_v30, 2 }
 0x4c0   : > { %v2641_v4 = vor.u32 %v2640_v2, %v2636_v1  ;;  %v5452_v1 = vld [vmem:[#allocation9 + $0x40] sm:$0xff]   ;;  %v5453_v2 = vld [vmem:[#allocation9 + $0x48] sm:$0xff]  }
 0x4c1   : > { %v3002_v40 = vor.u32 %v3001_v36, %v2998_v35  ;;  %4995 = vmatpush3.bf16.msra.mxu0 %v5452_v1  ;;  %v5483_v1 = vld [vmem:[#allocation9 + $0xe0] sm:$0xff]  }
 0x4c2   : > { %v2646_v6 = vsel %vm468_vm0, %v2641_v4, %v2645_v3  ;;  %4996 = vmatprep.subr.bf16.mxu0 %v5702_v60  ;;  %v5454_v3 = vld [vmem:[#allocation9 + $0x50] sm:$0xff]   ;;  %v5455_v4 = vld [vmem:[#allocation9 + $0x58] sm:$0xff]  }
 0x4c3   : > { %4910 = vmatprep.mubr.bf16.mxu1 %v2646_v6  ;;  %v5457_v6 = vld [vmem:[#allocation9 + $0x68] sm:$0xff]  }
 0x4c4   : > { %4911 = vmatmul.mubr.bf16.vlgmr.msra.gmra.mrb[8].mxu1 %v2649_v7  ;;  %v5458_v7 = vld [vmem:[#allocation9 + $0x70] sm:$0xff]  }
 0x4c5   : > { %4915 = vmatpush3.bf16.msra.mxu1 %v5416_v29  ;;  %4930 = vmatprep.mubr.bf16.mxu1 %v4203_v58  ;;  %v6060_v29 = vld [vmem:[#allocation2 + $0x8] ss:$0 sps:$4 sm:$0xff]   ;;  %v5449_v58 = vld [vmem:[#allocation7 + $0x3a8] sm:$0xff]  }
 0x4c6   : > { %4916 = vmatprep.subr.bf16.mxu1 %v5417_v8  ;;  %v3004_v33 = vshrl.u32 %v6060_v29, 16  ;;  %v3007_v34 = vshll.u32 %v6060_v29, 16  ;;  %v3135_v53 = vrot.slane %v6060_v29, 2  ;;  %4997 = vmatpush3.bf16.msra.mxu0 %v5453_v2  ;;  %v5484_v2 = vld [vmem:[#allocation9 + $0xe8] sm:$0xff]  }
 0x4c7   : > { %4998 = vmatprep.subr.bf16.mxu0 %v5702_v60 }
 0x4c8   : > { %v3006_v38 = vrot.slane %v3004_v33, 1  ;;  %v3009_v39 = vrot.slane %v3007_v34, 2  ;;  %v3136_v55 = vsel %vm984_vm3, %v3134_v52, %v3135_v53  ;;  %v5472_v52 = vld [vmem:[#allocation9 + $0x90] sm:$0xff]  }
 0x4c9   : > { %4917 = vmatpush3.bf16.msra.mxu1 %v5417_v8  ;;  %v5459_v8 = vld [vmem:[#allocation9 + $0x78] sm:$0xff]  }
 0x4ca   : > { %4918 = vmatprep.subr.bf16.mxu1 %v5418_v9  ;;  %v3010_v41 = vor.u32 %v3009_v39, %v3006_v38  ;;  %4999 = vmatpush3.bf16.msra.mxu0 %v5454_v3 }
 0x4cb   : > { %5000 = vmatprep.subr.bf16.mxu0 %v5702_v60 }
 0x4cc   : > { %v3011_v42 = vsel %vm838_vm2, %v3002_v40, %v3010_v41 }
 0x4cd   : > { %4919 = vmatpush3.bf16.msra.mxu1 %v5418_v9  ;;  %v4250_v9 = vld [vmem:[%s6204_s4 + $0x3] ss:$0 sm:$0xff] }
 0x4ce   : > { %4920 = vmatprep.subr.bf16.mxu1 %v5419_v10  ;;  %5001 = vmatpush3.bf16.msra.mxu0 %v5455_v4 }
 0x4cf   : > { %5002 = vmatprep.subr.bf16.mxu0 %v5702_v60 }
 0x4d1   : > { %4921 = vmatpush3.bf16.msra.mxu1 %v5419_v10 }
 0x4d2   : > { %4922 = vmatprep.subr.bf16.mxu1 %v5420_v11  ;;  %5003 = vmatpush3.bf16.msra.mxu0 %v5456_v5 }
 0x4d3   : > { %5004 = vmatprep.subr.bf16.mxu0 %v5702_v60 }
 0x4d5   : > { %4923 = vmatpush3.bf16.msra.mxu1 %v5420_v11  ;;  %v4252_v11 = vld [vmem:[%s6205_s5 + $0x3] ss:$0 sm:$0xff] }
 0x4d6   : > { %4924 = vmatprep.subr.bf16.mxu1 %v5421_v12  ;;  %5005 = vmatpush3.bf16.msra.mxu0 %v5457_v6  ;;  %v5485_v6 = vld [vmem:[#allocation9 + $0xf0] sm:$0xff]  }
 0x4d7   : > { %5006 = vmatprep.subr.bf16.mxu0 %v5702_v60 }
 0x4d9   : > { %4925 = vmatpush3.bf16.msra.mxu1 %v5421_v12 }
 0x4da   : > { %4926 = vmatprep.subr.bf16.mxu1 %v5422_v14  ;;  %5007 = vmatpush3.bf16.msra.mxu0 %v5458_v7 }
 0x4db   : > { %5008 = vmatprep.subr.bf16.mxu0 %v5702_v60 }
 0x4dd   : > { %4927 = vmatpush3.bf16.msra.mxu1 %v5422_v14 }
 0x4de   : > { %4928 = vmatprep.subr.bf16.mxu1 %v5423_v17  ;;  %5009 = vmatpush3.bf16.msra.mxu0 %v5459_v8 }
 0x4df   : > { %5014 = vmatprep.subr.bf16.mxu0 %v5702_v60 }
 0x4e1   : > { %4929 = vmatpush3.bf16.msra.mxu1 %v5423_v17 }
 0x4e2   : > { %4934 = vmatprep.subr.bf16.mxu1 %v5425_v18 }
 0x4e4   : > { %4931 = vmatmul.mubr.bf16.vlgmr.msra.gmra.mrb[8].mxu1 %v5424_v20 }
 0x4e5   : > { %4935 = vmatpush3.bf16.msra.mxu1 %v5425_v18  ;;  %4950 = vmatprep.mubr.bf16.mxu1 %v2872_v24 }
 0x4e6   : > { %4936 = vmatprep.subr.bf16.mxu1 %v5427_v23 }
 0x4e9   : > { %4937 = vmatpush3.bf16.msra.mxu1 %v5427_v23 }
 0x4ea   : > { %4938 = vmatprep.subr.bf16.mxu1 %v5428_v25 }
 0x4ed   : > { %4939 = vmatpush3.bf16.msra.mxu1 %v5428_v25 }
 0x4ee   : > { %4940 = vmatprep.subr.bf16.mxu1 %v5429_v26 }
 0x4f1   : > { %4941 = vmatpush3.bf16.msra.mxu1 %v5429_v26 }
 0x4f2   : > { %4942 = vmatprep.subr.bf16.mxu1 %v5430_v22 }
 0x4f5   : > { %4943 = vmatpush3.bf16.msra.mxu1 %v5430_v22 }
 0x4f6   : > { %4944 = vmatprep.subr.bf16.mxu1 %v5431_v27 }
 0x4f9   : > { %4945 = vmatpush3.bf16.msra.mxu1 %v5431_v27 }
 0x4fa   : > { %4946 = vmatprep.subr.bf16.mxu1 %v5432_v28 }
 0x4fd   : > { %4947 = vmatpush3.bf16.msra.mxu1 %v5432_v28 }
 0x4fe   : > { %4948 = vmatprep.subr.bf16.mxu1 %v5433_v32 }
 0x501   : > { %4949 = vmatpush3.bf16.msra.mxu1 %v5433_v32 }
 0x502   : > { %4954 = vmatprep.subr.bf16.mxu1 %v5434_v37 }
 0x504   : > { %4951 = vmatmul.mubr.bf16.vlgmr.msra.gmra.mrb[8].mxu1 %v2871_v21 }
 0x505   : > { %4955 = vmatpush3.bf16.msra.mxu1 %v5434_v37  ;;  %4970 = vmatprep.mubr.bf16.mxu1 %v3011_v42 }
 0x506   : > { %4956 = vmatprep.subr.bf16.mxu1 %v5436_v31 }
 0x509   : > { %4957 = vmatpush3.bf16.msra.mxu1 %v5436_v31  ;;  %v5462_v31 = vld [vmem:[#allocation9] sm:$0xff]  }
 0x50a   : > { %4958 = vmatprep.subr.bf16.mxu1 %v5437_v43 }
 0x50d   : > { %4959 = vmatpush3.bf16.msra.mxu1 %v5437_v43  ;;  %v5463_v43 = vld [vmem:[#allocation9 + $0x8] sm:$0xff]  }
 0x50e   : > { %4960 = vmatprep.subr.bf16.mxu1 %v5438_v44 }
 0x511   : > { %4961 = vmatpush3.bf16.msra.mxu1 %v5438_v44  ;;  %v5464_v44 = vld [vmem:[#allocation9 + $0x10] sm:$0xff]  }
 0x512   : > { %4962 = vmatprep.subr.bf16.mxu1 %v5439_v45 }
 0x515   : > { %4963 = vmatpush3.bf16.msra.mxu1 %v5439_v45  ;;  %v5465_v45 = vld [vmem:[#allocation9 + $0x18] sm:$0xff]  }
 0x516   : > { %4964 = vmatprep.subr.bf16.mxu1 %v5440_v46 }
 0x519   : > { %4965 = vmatpush3.bf16.msra.mxu1 %v5440_v46  ;;  %v5466_v46 = vld [vmem:[#allocation9 + $0x20] sm:$0xff]  }
 0x51a   : > { %4966 = vmatprep.subr.bf16.mxu1 %v5441_v47 }
 0x51d   : > { %4967 = vmatpush3.bf16.msra.mxu1 %v5441_v47  ;;  %v5467_v47 = vld [vmem:[#allocation9 + $0x28] sm:$0xff]  }
 0x51e   : > { %4968 = vmatprep.subr.bf16.mxu1 %v5442_v49 }
 0x521   : > { %4969 = vmatpush3.bf16.msra.mxu1 %v5442_v49  ;;  %v5469_v49 = vld [vmem:[#allocation9 + $0x38] sm:$0xff]  }
 0x522   : > { %4974 = vmatprep.subr.bf16.mxu1 %v5443_v51 }
 0x524   : > { %4971 = vmatmul.mubr.bf16.vlgmr.msra.gmra.mrb[8].mxu1 %v3010_v41 }
 0x525   : > { %4975 = vmatpush3.bf16.msra.mxu1 %v5443_v51  ;;  %4990 = vmatprep.mubr.bf16.mxu1 %v3136_v55  ;;  %v5471_v51 = vld [vmem:[#allocation9 + $0x88] sm:$0xff]  }
 0x526   : > { %4976 = vmatprep.subr.bf16.mxu1 %v5445_v54  ;;  %v5475_v55 = vld [vmem:[#allocation9 + $0xa8] sm:$0xff]  }
 0x529   : > { %4977 = vmatpush3.bf16.msra.mxu1 %v5445_v54  ;;  %v5474_v54 = vld [vmem:[#allocation9 + $0xa0] sm:$0xff]  }
 0x52a   : > { %4978 = vmatprep.subr.bf16.mxu1 %v5446_v63 }
 0x52d   : > { %4979 = vmatpush3.bf16.msra.mxu1 %v5446_v63  ;;  %v5476_v63 = vld [vmem:[#allocation9 + $0xb0] sm:$0xff]  }
 0x52e   : > { %4980 = vmatprep.subr.bf16.mxu1 %v5447_v56 }
 0x531   : > { %4981 = vmatpush3.bf16.msra.mxu1 %v5447_v56  ;;  %v5477_v56 = vld [vmem:[#allocation9 + $0xb8] sm:$0xff]  }
 0x532   : > { %4982 = vmatprep.subr.bf16.mxu1 %v5448_v57 }
 0x535   : > { %4983 = vmatpush3.bf16.msra.mxu1 %v5448_v57  ;;  %v5479_v57 = vld [vmem:[#allocation9 + $0xc0] sm:$0xff]  }
 0x536   : > { %4984 = vmatprep.subr.bf16.mxu1 %v5449_v58 }
 0x539   : > { %4985 = vmatpush3.bf16.msra.mxu1 %v5449_v58  ;;  %v5480_v58 = vld [vmem:[#allocation9 + $0xc8] sm:$0xff]  }
 0x53a   : > { %4986 = vmatprep.subr.bf16.mxu1 %v5450_v59 }
 0x53d   : > { %4987 = vmatpush3.bf16.msra.mxu1 %v5450_v59  ;;  %v5481_v59 = vld [vmem:[#allocation9 + $0xd0] sm:$0xff]  }
 0x53e   : > { %4988 = vmatprep.subr.bf16.mxu1 %v5451_v0 }
 0x541   : > { %4989 = vmatpush3.bf16.msra.mxu1 %v5451_v0  ;;  %v5482_v0 = vld [vmem:[#allocation9 + $0xd8] sm:$0xff]  }
 0x544   : > { %4991 = vmatmul.mubr.bf16.vlgmr.msra.gmra.mrb[8].mxu1 %v3135_v53  ;;  %v5473_v53 = vld [vmem:[#allocation9 + $0x98] sm:$0xff]  }
 0x617   : > { %v4992_v10 = vpop.f32.mrb[8].mxu1 }
 0x618   : > { %v3248_v12 = vmul.f32 %v4992_v10, %v4250_v9  ;;  %v3221_v14 = vpop.f32.mrb[9].mxu1 }
 0x619   : > { %v3246_v16 = vmul.f32 %v4250_v9, %v3221_v14  ;;  %v4993_v17 = vpop.f32.mrb[10].mxu1 }
 0x61a   : > { %v3259_v13 = vadd.f32 %v4252_v11, %v3248_v12  ;;  %v3224_v18 = vpop.f32.mrb[11].mxu1 }
 0x61b   : > { %v3257_v19 = vadd.f32 %v4252_v11, %v3246_v16  ;;  %v3247_v20 = vmul.f32 %v4250_v9, %v3224_v18 }
 0x61c   : > { %5519 = vtanh.f32 %v3259_v13  ;;  %v5488_v13 = vld [vmem:[#allocation9 + $0x100] sm:$0xff]  }
 0x61d   : > { %5521 = vtanh.f32 %v3257_v19  ;;  %v3258_v21 = vadd.f32 %v4252_v11, %v3247_v20  ;;  %v5486_v11 = vld [vmem:[#allocation9 + $0xf8] sm:$0xff]   ;;  %v5489_v19 = vld [vmem:[#allocation9 + $0x108] sm:$0xff]   ;;  %v5490_v20 = vld [vmem:[#allocation9 + $0x110] sm:$0xff]  }
 0x61f   : > { %5523 = vtanh.f32 %v3258_v21  ;;  %v5491_v21 = vld [vmem:[#allocation9 + $0x118] sm:$0xff]  }
 0x626   : > { %v5520_v23 = vpop.eup %5519 }
 0x627   : > { %v5522_v24 = vpop.eup %5521  ;;  %v3265_v25 = vmul.f32 %v5520_v23, %v5965_v61  ;;  %v5492_v23 = vld [vmem:[#allocation9 + $0x120] sm:$0xff]  }
 0x628   : > { %v3263_v26 = vmul.f32 %v5522_v24, %v5968_v62  ;;  %v5493_v24 = vld [vmem:[#allocation9 + $0x128] sm:$0xff]  }
 0x629   : > { %v5524_v22 = vpop.eup %5523  ;;  %v4321_v27 = vpack.c.bf16 %v3265_v25, %v3265_v25 }
 0x62a   : > { %v4346_v28 = vpack.c.bf16 %v5524_v22, %v3263_v26  ;;  %v5494_v26 = vld [vmem:[#allocation9 + $0x130] sm:$0xff]  }
 0x62b   : > { %3281 = vst [vmem:[#allocation3 + $0x8] sm:$0x3] %v4321_v27  ;;  %v5495_v27 = vld [vmem:[#allocation9 + $0x138] sm:$0xff]  }
 0x62c   : > { %4347 = vst [vmem:[#allocation3] sm:$0xff] %v4346_v28  }
 0x632   : > { %v5461_v29 = vld [vmem:[#allocation3 + $0x8] ss:$0 sps:$4 sm:$0x11]  }
 0x633   : > { %v3282_v15 = vld [vmem:[#allocation3] sm:$0xf]  ;;  %v6086_v30 = vld [vmem:[#allocation3 + $0x4] sm:$0xf]  ;;  %v3334_v36 = vshll.u32 %v5461_v29, 16  ;;  %v3540_v62 = vrot.slane %v5461_v29, 1 }
 0x634   : > { %v3518_v32 = vld [vmem:[#allocation3] sm:$0xe]  ;;  %v4256_v33 = vcombine.low %v3282_v15, %v6086_v30  ;;  %v5487_v3 = vld [vmem:[#allocation3 + $0x8] ss:$0 sps:$4 sm:$0x33]  }
 0x635   : > { %v6090_v34 = vcombine.low %v3518_v32, %v6086_v30  ;;  %v3336_v41 = vrot.slane %v3334_v36, 1  ;;  %v3664_v7 = vshrl.u32 %v5487_v3, 16  ;;  %v3667_v8 = vshll.u32 %v5487_v3, 16  ;;  %v3764_v25 = vld [vmem:[#allocation3] sm:$0xc] }
 0x636   : > { %v3329_v35 = vshll.u32 %v4256_v33, 16  ;;  %v3327_v37 = vshrl.u32 %v4256_v33, 16  ;;  %v4292_v22 = vcombine.low %v3764_v25, %v6086_v30  ;;  %v3786_v29 = vrot.slane %v5487_v3, 2  ;;  %v4301_v32 = vld [vmem:[%s6206_s6] ss:$0 sm:$0xff] }
 0x637   : > { %v3539_v61 = vrot.slane %v6090_v34, 1  ;;  %v3656_v4 = vshrl.u32 %v6090_v34, 16  ;;  %v3659_v5 = vshll.u32 %v6090_v34, 16  ;;  %v3666_v12 = vrot.slane %v3664_v7, 1  ;;  %v4302_v30 = vld [vmem:[%s6207_s7] ss:$0 sm:$0xff] }
 0x638   : > { %v3331_v38 = vrot.slane %v3329_v35, 1  ;;  %v3669_v14 = vrot.slane %v3667_v8, 2  ;;  %v3785_v28 = vrot.slane %v4292_v22, 2 }
 0x639   : > { %v3541_v39 = vsel %vm708_vm1, %v3539_v61, %v3540_v62  ;;  %v3658_v9 = vrot.slane %v3656_v4, 1  ;;  %v3661_v10 = vrot.slane %v3659_v5, 2 }
 0x63a   : > { %v3332_v40 = vor.u32 %v3331_v38, %v3327_v37  ;;  %v3670_v17 = vor.u32 %v3669_v14, %v3666_v12  ;;  %v3787_v15 = vsel %vm984_vm3, %v3785_v28, %v3786_v29 }
 0x63b   : > { %v3662_v16 = vor.u32 %v3661_v10, %v3658_v9 }
 0x63c   : > { %v3337_v42 = vsel %vm468_vm0, %v3332_v40, %v3336_v41 }
 0x63d   : > { %5011 = vmatmul.mubr.bf16.vlgmr.msra.gmra.mrb[8].mxu0 %v3337_v42  ;;  %v3671_v18 = vsel %vm838_vm2, %v3662_v16, %v3670_v17 }
 0x63e   : > { %5015 = vmatpush3.bf16.msra.mxu0 %v5462_v31  ;;  %5030 = vmatprep.mubr.msk.bf16.mxu0 %vm5704_vm8, %v5702_v60 }
 0x63f   : > { %5016 = vmatprep.subr.bf16.mxu0 %v5702_v60 }
 0x642   : > { %5017 = vmatpush3.bf16.msra.mxu0 %v5463_v43 }
 0x643   : > { %5018 = vmatprep.subr.bf16.mxu0 %v5702_v60 }
 0x646   : > { %5019 = vmatpush3.bf16.msra.mxu0 %v5464_v44 }
 0x647   : > { %5020 = vmatprep.subr.bf16.mxu0 %v5702_v60 }
 0x64a   : > { %5021 = vmatpush3.bf16.msra.mxu0 %v5465_v45 }
 0x64b   : > { %5022 = vmatprep.subr.bf16.mxu0 %v5702_v60 }
 0x64e   : > { %5023 = vmatpush3.bf16.msra.mxu0 %v5466_v46 }
 0x64f   : > { %5024 = vmatprep.subr.bf16.mxu0 %v5702_v60 }
 0x652   : > { %5025 = vmatpush3.bf16.msra.mxu0 %v5467_v47 }
 0x653   : > { %5026 = vmatprep.subr.bf16.mxu0 %v5702_v60 }
 0x656   : > { %5027 = vmatpush3.bf16.msra.mxu0 %v5468_v48 }
 0x657   : > { %5028 = vmatprep.subr.bf16.mxu0 %v5702_v60 }
 0x65a   : > { %5029 = vmatpush3.bf16.msra.mxu0 %v5469_v49 }
 0x65b   : > { %5034 = vmatprep.subr.bf16.mxu0 %v5702_v60 }
 0x65d   : > { %5031 = vmatmul.mubr.bf16.vlgmr.msra.gmra.mrb[8].mxu0 %v4256_v33 }
 0x65e   : > { %5035 = vmatpush3.bf16.msra.mxu0 %v5470_v50  ;;  %5050 = vmatprep.mubr.msk.bf16.mxu0 %vm5704_vm8, %v5702_v60 }
 0x65f   : > { %5036 = vmatprep.subr.bf16.mxu0 %v5702_v60 }
 0x662   : > { %5037 = vmatpush3.bf16.msra.mxu0 %v5471_v51 }
 0x663   : > { %5038 = vmatprep.subr.bf16.mxu0 %v5702_v60 }
 0x666   : > { %5039 = vmatpush3.bf16.msra.mxu0 %v5472_v52 }
 0x667   : > { %5040 = vmatprep.subr.bf16.mxu0 %v5702_v60 }
 0x66a   : > { %5041 = vmatpush3.bf16.msra.mxu0 %v5473_v53 }
 0x66b   : > { %5042 = vmatprep.subr.bf16.mxu0 %v5702_v60 }
 0x66e   : > { %5043 = vmatpush3.bf16.msra.mxu0 %v5474_v54 }
 0x66f   : > { %5044 = vmatprep.subr.bf16.mxu0 %v5702_v60 }
 0x672   : > { %5045 = vmatpush3.bf16.msra.mxu0 %v5475_v55 }
 0x673   : > { %5046 = vmatprep.subr.bf16.mxu0 %v5702_v60 }
 0x676   : > { %5047 = vmatpush3.bf16.msra.mxu0 %v5476_v63 }
 0x677   : > { %5048 = vmatprep.subr.bf16.mxu0 %v5702_v60 }
 0x67a   : > { %5049 = vmatpush3.bf16.msra.mxu0 %v5477_v56 }
 0x67b   : > { %5054 = vmatprep.subr.bf16.mxu0 %v5702_v60 }
 0x67d   : > { %5051 = vmatmul.mubr.bf16.vlgmr.msra.gmra.mrb[8].mxu0 %v3541_v39 }
 0x67e   : > { %5055 = vmatpush3.bf16.msra.mxu0 %v5479_v57  ;;  %5070 = vmatprep.mubr.msk.bf16.mxu0 %vm5704_vm8, %v5702_v60 }
 0x67f   : > { %5056 = vmatprep.subr.bf16.mxu0 %v5702_v60 }
 0x682   : > { %5057 = vmatpush3.bf16.msra.mxu0 %v5480_v58 }
 0x683   : > { %5058 = vmatprep.subr.bf16.mxu0 %v5702_v60 }
 0x686   : > { %5059 = vmatpush3.bf16.msra.mxu0 %v5481_v59 }
 0x687   : > { %5060 = vmatprep.subr.bf16.mxu0 %v5702_v60 }
 0x68a   : > { %5061 = vmatpush3.bf16.msra.mxu0 %v5482_v0 }
 0x68b   : > { %5062 = vmatprep.subr.bf16.mxu0 %v5702_v60 }
 0x68e   : > { %5063 = vmatpush3.bf16.msra.mxu0 %v5483_v1 }
 0x68f   : > { %5064 = vmatprep.subr.bf16.mxu0 %v5702_v60 }
 0x692   : > { %5065 = vmatpush3.bf16.msra.mxu0 %v5484_v2 }
 0x693   : > { %5066 = vmatprep.subr.bf16.mxu0 %v5702_v60 }
 0x696   : > { %5067 = vmatpush3.bf16.msra.mxu0 %v5485_v6 }
 0x697   : > { %5068 = vmatprep.subr.bf16.mxu0 %v5702_v60 }
 0x69a   : > { %5069 = vmatpush3.bf16.msra.mxu0 %v5486_v11 }
 0x69b   : > { %5074 = vmatprep.subr.bf16.mxu0 %v5702_v60 }
 0x69d   : > { %5071 = vmatmul.mubr.bf16.vlgmr.msra.gmra.mrb[8].mxu0 %v3671_v18 }
 0x69e   : > { %5075 = vmatpush3.bf16.msra.mxu0 %v5488_v13  ;;  %5090 = vmatprep.mubr.msk.bf16.mxu0 %vm5704_vm8, %v5702_v60 }
 0x69f   : > { %5076 = vmatprep.subr.bf16.mxu0 %v5702_v60 }
 0x6a2   : > { %5077 = vmatpush3.bf16.msra.mxu0 %v5489_v19 }
 0x6a3   : > { %5078 = vmatprep.subr.bf16.mxu0 %v5702_v60 }
 0x6a6   : > { %5079 = vmatpush3.bf16.msra.mxu0 %v5490_v20 }
 0x6a7   : > { %5080 = vmatprep.subr.bf16.mxu0 %v5702_v60 }
 0x6aa   : > { %5081 = vmatpush3.bf16.msra.mxu0 %v5491_v21 }
 0x6ab   : > { %5082 = vmatprep.subr.bf16.mxu0 %v5702_v60 }
 0x6ae   : > { %5083 = vmatpush3.bf16.msra.mxu0 %v5492_v23 }
 0x6af   : > { %5084 = vmatprep.subr.bf16.mxu0 %v5702_v60 }
 0x6b2   : > { %5085 = vmatpush3.bf16.msra.mxu0 %v5493_v24 }
 0x6b3   : > { %5086 = vmatprep.subr.bf16.mxu0 %v5702_v60 }
 0x6b6   : > { %5087 = vmatpush3.bf16.msra.mxu0 %v5494_v26 }
 0x6b7   : > { %5088 = vmatprep.subr.bf16.mxu0 %v5702_v60 }
 0x6ba   : > { %5089 = vmatpush3.bf16.msra.mxu0 %v5495_v27 }
 0x6bd   : > { %5091 = vmatmul.mubr.bf16.vlgmr.msra.gmra.mrb[8].mxu0 %v3787_v15 }
 0x790   : > { %v3871_v33 = vpop.f32.mrb[8].mxu0 }
 0x791   : > { %v3887_v34 = vmul.f32 %v4301_v32, %v3871_v33  ;;  %v5092_v60 = vpop.f32.mrb[9].mxu0 }
 0x792   : > { %v3874_v35 = vpop.f32.mrb[10].mxu0 }
 0x793   : > { %v3896_v36 = vadd.f32 %v4302_v30, %v3887_v34  ;;  %v3888_v61 = vmul.f32 %v4301_v32, %v3874_v35  ;;  %v5093_v62 = vpop.f32.mrb[11].mxu0 }
 0x795   : > { %3898 = vst [vmem:[%s366_s13] sm:$0xff] %v3896_v36  ;;  %v3897_v37 = vadd.f32 %v4302_v30, %v3888_v61 }
 0x797   : > { %3899 = vst [vmem:[%s366_s13 + $0x8] sm:$0xff] %v3897_v37 }
 0x798   : > { %5622 = shalt.err (!%p5619_p6)
}
 0x799   : > { %s5623_s20 = scalar_lea.hbm %s6152_s9, 256  ;;  %s5627_s26 = scalar_lea.hbm %s6208_s8, 512 }
 0x79a   : > { %p5624_p7 = scmp.ne.s32.totalorder %s6152_s9, %s5623_s20  ;;  %p5628_p4 = scmp.lt.u32.totalorder %s6152_s9, %s6208_s8 }
 0x79b   : > { %p5629_p1 = scmp.lt.u32.totalorder %s5627_s26, %s5623_s20  ;;  %p5631_p8 = scmp.lt.u32.totalorder %s5623_s20, %s6152_s9 }
 0x79c   : > { %p5625_p9 = pnand %p5624_p7, %p6232_p10 }
 0x79d   : > { %p5630_p13 = por %p5629_p1, %p5628_p4 }
 0x79e   : > { %p5626_p12 = pneg %p5625_p9 }
 0x79f   : > { %p5632_p11 = por %p5631_p8, %p5630_p13 }
 0x7a1   : > { %p5633_p0 = pnand %p5632_p11, %p5626_p12 }
 0x7a3   : > { %5636 = shalt.err (!%p5633_p0)
}
 0x7a4   : > { %s5706_s18 = smov 128   ;;  %s5707_s22 = smov 8  }
 0x7a5   : > { %5187 = dma.vmem_to_hbm [thread:$0]  (%p6232_p10), %s6147_s11, 256, %s6152_s9, %s6154_s25, %s5706_s18, %s5706_s18, %s5707_s22  }
 0x7a6 PF: > { %s6233_s13 = sld [smem:[#allocation17_spill]]  ;;  %p5209_p2 = scmp.ge.s32.totalorder %s5695_s10, 2 }
 0x7a7   : > { %s3931_s14 = sand.u32 1, %s5675_s27  }
 0x7a8   : > { %s3932_s16 = scalar_lea.sflag [#allocation6], %s3931_s14 }
 0x7ac   : > { %p6234_p3 = scmp.ne.s32.totalorder %s6233_s13, 0 }
 0x7ae   : > { %p5200_p5 = pnand %p5209_p2, %p6234_p3 }
 0x7b0   : > { %5670 = dma.done.wait (!%p5200_p5), %s3932_s16, 256  }
 0x7b1   : > { %5672 = vsyncadd (!%p5200_p5), %s3932_s16, 4294967040  ;;  %s23_s10 = sadd.s32 1, %s5695_s10   ;;  %s6235_s24 = sld [smem:[#allocation14_spill]] }
 0x7b2   : > { %p20_p6 = scmp.ge.s32.totalorder %s23_s10, 4   ;;  %s6236_s29 = sld [smem:[#allocation18_spill]] }
 0x7b3   : > { %s6237_s30 = sld [smem:[#allocation15_spill]]  ;;  %s6238_s9 = sld [smem:[#allocation16_spill]] }
 0x7b4   : > { %s6239_s27 = smov %s5679_s28  ;;  %22 = sbr.rel (!%p20_p6) target bundleno = 8 (0x8), region = 128 }
 0x7b7   : > { %s6240_s28 = smov %s6235_s24 }
 0x7bb   :  { %3937 = vsyncpa [#allocation5], 1 }
 0x7bc   :  { %3939 = vsyncpa [#allocation5 + $0x1], 1 }
 0x7bd   :  { %3940 = vsyncpa [#allocation8], 1 }
 0x7be   :  { %3941 = vsyncpa [#allocation6], 1 }
 0x7bf   :  { %3943 = vsyncpa [#allocation6 + $0x1], 1 }

</bundles_post_ra>
